<compile_context>
chip_gen: v7x
topology: tpu7x:2x2x1
jax: 0.10.0
libtpu: 0.0.40
codegen_flags: <defaults>
</compile_context>

<pallas_src>
from functools import partial

import jax
import jax.numpy as jnp
from jax.experimental import pallas as pl
from jax.experimental.pallas import tpu as pltpu

EPS = 1e-5
_VMEM_LIMIT = 48 * 1024 * 1024  # fits v7x (64 MiB physical) with headroom


def _round_up(x, m):
    return (x + m - 1) // m * m


# --------------------------------------------------------------------------
# Kernels
# --------------------------------------------------------------------------
def _affine_relu_conv3x3_kernel(a_ref, scale_ref, shift_ref, w_ref,
                                y_ref, s_ref, ss_ref, *, compute_dtype):
    """Per-sample tile: y = conv3x3(relu(a*scale+shift)); also emits channel
    sum / sum-of-squares of y for the following BatchNorm's batch statistics.

    a_ref     : (1, H, W, Cin_p)   f32
    scale_ref : (1, Cin_p)         f32   (per-channel affine; ones/zeros for pass 1)
    shift_ref : (1, Cin_p)         f32
    w_ref     : (9, Cin_p, Cout_p) f32   per-tap weight matrices, tap = ki*3+kj
    y_ref     : (1, H-2, W-2, Cout_p) f32
    s_ref/ss_ref : (1, 1, Cout_p)  f32   per-sample channel sum / sumsq of y
    """
    a = (a_ref[...] * scale_ref[...].reshape(1, 1, 1, -1)
         + shift_ref[...].reshape(1, 1, 1, -1))
    a = jnp.maximum(a, 0.0)

    _, h, w, c = a.shape
    ho, wo = h - 2, w - 2
    cout = w_ref.shape[2]

    # 9 accumulating matmuls over the shifted 3x3 taps (no materialized im2col).
    acc = jnp.zeros((ho * wo, cout), jnp.float32)
    for t in range(9):
        ki, kj = divmod(t, 3)
        patch = a[0, ki:ki + ho, kj:kj + wo, :].reshape(ho * wo, c)
        acc = acc + jnp.dot(patch.astype(compute_dtype),
                            w_ref[t].astype(compute_dtype),
                            preferred_element_type=jnp.float32)

    y_ref[...] = acc.reshape(1, ho, wo, cout)
    # One-pass f32 statistics for the *next* BatchNorm (finalized in wrapper).
    s_ref[...] = jnp.sum(acc, axis=0).reshape(1, 1, cout)
    ss_ref[...] = jnp.sum(acc * acc, axis=0).reshape(1, 1, cout)


def _affine_kernel(y_ref, scale_ref, shift_ref, o_ref):
    """Final BatchNorm applied as a single per-channel FMA."""
    o_ref[...] = (y_ref[...] * scale_ref[...].reshape(1, 1, 1, -1)
                  + shift_ref[...].reshape(1, 1, 1, -1))


# --------------------------------------------------------------------------
# Wrapper
# --------------------------------------------------------------------------
def _bn_scale_shift(s, ss, count, gamma, beta):
    """Fold per-sample sums into BN scale/shift (tiny per-channel math)."""
    total = jnp.sum(s, axis=0)        # (1, C)
    total_sq = jnp.sum(ss, axis=0)    # (1, C)
    mean = total / count
    var = jnp.maximum(total_sq / count - mean * mean, 0.0)  # guard cancellation
    scale = gamma * jax.lax.rsqrt(var + EPS)
    shift = beta - mean * scale
    return scale, shift


def _compiler_params():
    return pltpu.CompilerParams(dimension_semantics=("parallel",),
                                vmem_limit_bytes=_VMEM_LIMIT)


def _conv_pass(a, scale, shift, wmat, compute_dtype):
    n, h, w, c = a.shape
    co = wmat.shape[2]
    ho, wo = h - 2, w - 2
    kernel = partial(_affine_relu_conv3x3_kernel, compute_dtype=compute_dtype)
    return pl.pallas_call(
        kernel,
        grid=(n,),
        in_specs=[
            pl.BlockSpec((1, h, w, c), lambda i: (i, 0, 0, 0)),
            pl.BlockSpec((1, c), lambda i: (0, 0)),
            pl.BlockSpec((1, c), lambda i: (0, 0)),
            pl.BlockSpec((9, c, co), lambda i: (0, 0, 0)),
        ],
        out_specs=(
            pl.BlockSpec((1, ho, wo, co), lambda i: (i, 0, 0, 0)),
            pl.BlockSpec((1, 1, co), lambda i: (i, 0, 0)),
            pl.BlockSpec((1, 1, co), lambda i: (i, 0, 0)),
        ),
        out_shape=(
            jax.ShapeDtypeStruct((n, ho, wo, co), jnp.float32),
            jax.ShapeDtypeStruct((n, 1, co), jnp.float32),
            jax.ShapeDtypeStruct((n, 1, co), jnp.float32),
        ),
        compiler_params=_compiler_params(),
    )(a, scale, shift, wmat)


def block_forward_nhwc(x_nhwc, pp, compute_dtype=jnp.float32):
    """x_nhwc: (N, H, W, in_ch) f32. Returns (N, H-4, W-4, out_ch) f32."""
    n, h, w, cin = x_nhwc.shape
    cin_p, cout_p, out_ch = pp["cin_p"], pp["cout_p"], pp["out_ch"]
    h1, w1 = h - 2, w - 2
    h2, w2 = h - 4, w - 4

    x = jnp.pad(x_nhwc.astype(jnp.float32),
                ((0, 0), (0, 0), (0, 0), (0, cin_p - cin)))

    # Pass 1: ReLU(x) -> conv1 (+ per-sample channel sums for BN1).
    ones_in = jnp.ones((1, cin_p), jnp.float32)
    zeros_in = jnp.zeros((1, cin_p), jnp.float32)
    y1, s1, ss1 = _conv_pass(x, ones_in, zeros_in, pp["w1"], compute_dtype)
    scale1, shift1 = _bn_scale_shift(s1, ss1, n * h1 * w1, pp["g1"], pp["be1"])

    # Pass 2: BN1 (FMA) -> ReLU -> conv2 (+ per-sample channel sums for BN2).
    y2, s2, ss2 = _conv_pass(y1, scale1, shift1, pp["w2"], compute_dtype)
    scale2, shift2 = _bn_scale_shift(s2, ss2, n * h2 * w2, pp["g2"], pp["be2"])

    # Pass 3: apply BN2 elementwise (lane-dense padded-channel output).
    out_p = pl.pallas_call(
        _affine_kernel,
        grid=(n,),
        in_specs=[
            pl.BlockSpec((1, h2, w2, cout_p), lambda i: (i, 0, 0, 0)),
            pl.BlockSpec((1, cout_p), lambda i: (0, 0)),
            pl.BlockSpec((1, cout_p), lambda i: (0, 0)),
        ],
        out_specs=pl.BlockSpec((1, h2, w2, cout_p), lambda i: (i, 0, 0, 0)),
        out_shape=jax.ShapeDtypeStruct((n, h2, w2, cout_p), jnp.float32),
        compiler_params=_compiler_params(),
    )(y2, scale2, shift2)

    return out_p[..., :out_ch]


def block_forward(x_nchw, pp, compute_dtype=jnp.float32):
    """PyTorch-layout entry: (N, in_ch, H, W) -> (N, out_ch, H-4, W-4)."""
    x = jnp.transpose(x_nchw, (0, 2, 3, 1))
    y = block_forward_nhwc(x, pp, compute_dtype)
    return jnp.transpose(y, (0, 3, 1, 2))


# --------------------------------------------------------------------------
# Parameters
# --------------------------------------------------------------------------
def init_params(key, in_ch, out_ch):
    """PyTorch-shaped logical parameters.

    Conv biases are omitted: a per-channel bias immediately before
    training-mode BatchNorm is cancelled exactly by the mean subtraction.
    Gamma/beta are randomized (instead of 1/0 defaults) to exercise the
    affine path; semantics match PyTorch's learnable BN parameters.
    """
    k1, k2, k3, k4, k5, k6 = jax.random.split(key, 6)

    def conv_w(k, ci, co):
        bound = 1.0 / jnp.sqrt(ci * 9.0)
        return jax.random.uniform(k, (co, ci, 3, 3), jnp.float32, -bound, bound)

    w1 = conv_w(k1, in_ch, out_ch)
    w2 = conv_w(k2, out_ch, out_ch)
    g1 = jax.random.uniform(k3, (out_ch,), jnp.float32, 0.5, 1.5)
    be1 = jax.random.uniform(k4, (out_ch,), jnp.float32, -0.5, 0.5)
    g2 = jax.random.uniform(k5, (out_ch,), jnp.float32, 0.5, 1.5)
    be2 = jax.random.uniform(k6, (out_ch,), jnp.float32, -0.5, 0.5)
    return (w1, g1, be1, w2, g2, be2)


def prepare_params(params, lane=128, sublane=8):
    """Convert PyTorch-shaped params to padded, MXU/lane-friendly layout."""
    w1, g1, be1, w2, g2, be2 = params
    out_ch, in_ch = w1.shape[0], w1.shape[1]
    cin_p = _round_up(in_ch, sublane)
    cout_p = _round_up(out_ch, lane)

    def pack(w, ci, ci_p, co, co_p):
        # (co, ci, 3, 3) -> (3, 3, ci, co) -> (9, ci, co), zero-pad channels.
        wm = jnp.transpose(w, (2, 3, 1, 0)).reshape(9, ci, co)
        return jnp.pad(wm, ((0, 0), (0, ci_p - ci), (0, co_p - co)))

    def pad_vec(v, co, co_p):
        return jnp.pad(v.reshape(1, co), ((0, 0), (0, co_p - co)))

    return dict(
        w1=pack(w1, in_ch, cin_p, out_ch, cout_p),
        w2=pack(w2, out_ch, cout_p, out_ch, cout_p),
        g1=pad_vec(g1, out_ch, cout_p), be1=pad_vec(be1, out_ch, cout_p),
        g2=pad_vec(g2, out_ch, cout_p), be2=pad_vec(be2, out_ch, cout_p),
        in_ch=in_ch, out_ch=out_ch, cin_p=cin_p, cout_p=cout_p)


# --------------------------------------------------------------------------
# Pure-JAX reference (lax conv) for validation
# --------------------------------------------------------------------------
def _reference_forward(x_nchw, params):
    w1, g1, be1, w2, g2, be2 = params

    def conv(a_nhwc, w):
        w_hwio = jnp.transpose(w, (2, 3, 1, 0))
        return jax.lax.conv_general_dilated(
            a_nhwc, w_hwio, window_strides=(1, 1), padding="VALID",
            dimension_numbers=("NHWC", "HWIO", "NHWC"))

    def bn(y, g, be):
        mean = jnp.mean(y, axis=(0, 1, 2), keepdims=True)
        var = jnp.mean((y - mean) ** 2, axis=(0, 1, 2), keepdims=True)
        return ((y - mean) * jax.lax.rsqrt(var + EPS) * g.reshape(1, 1, 1, -1)
                + be.reshape(1, 1, 1, -1))

    x = jnp.transpose(x_nchw, (0, 2, 3, 1))
    x = jnp.maximum(x, 0.0)
    y = bn(conv(x, w1), g1, be1)
    y = jnp.maximum(y, 0.0)
    y = bn(conv(y, w2), g2, be2)
    return jnp.transpose(y, (0, 3, 1, 2))


if __name__ == "__main__":
    key = jax.random.PRNGKey(0)
    kx, kp = jax.random.split(key)

    N, IN_CH, OUT_CH, H, W = 2, 4, 8, 16, 16
    x = jax.random.normal(kx, (N, IN_CH, H, W), jnp.float32)
    params = init_params(kp, IN_CH, OUT_CH)
    packed = prepare_params(params)

    out = jax.block_until_ready(block_forward(x, packed))
    ref = jax.block_until_ready(_reference_forward(x, params))

    assert out.shape == (N, OUT_CH, H - 4, W - 4), out.shape
    max_err = float(jnp.max(jnp.abs(out - ref)))
    assert jnp.allclose(out, ref, atol=1e-3, rtol=1e-3), max_err

    print("KERNEL_OK")
</pallas_src>

<mosaic_0001>
module attributes {stable_mosaic.version = 11 : i64} {
  func.func @_affine_relu_conv3x3_kernel(%arg0: i32, %arg1: memref<1x16x16x8xf32, #tpu.memory_space<vmem>>, %arg2: memref<1x8xf32, #tpu.memory_space<vmem>>, %arg3: memref<1x8xf32, #tpu.memory_space<vmem>>, %arg4: memref<9x8x128xf32, #tpu.memory_space<vmem>>, %arg5: memref<1x14x14x128xf32, #tpu.memory_space<vmem>>, %arg6: memref<1x1x128xf32, #tpu.memory_space<vmem>>, %arg7: memref<1x1x128xf32, #tpu.memory_space<vmem>>) attributes {dimension_semantics = [#tpu.dimension_semantics<parallel>], iteration_bounds = array<i64: 2>, scalar_prefetch = 0 : i64, scratch_operands = 0 : i64, tpu.core_type = #tpu.core_type<tc>, window_params = [{transform_indices = @transform_0, window_bounds = array<i64: 1, 16, 16, 8>}, {pipeline_mode = #tpu.pipeline_mode<synchronous>, transform_indices = @transform_1, window_bounds = array<i64: 1, 8>}, {pipeline_mode = #tpu.pipeline_mode<synchronous>, transform_indices = @transform_2, window_bounds = array<i64: 1, 8>}, {pipeline_mode = #tpu.pipeline_mode<synchronous>, transform_indices = @transform_3, window_bounds = array<i64: 9, 8, 128>}, {transform_indices = @transform_4, window_bounds = array<i64: 1, 14, 14, 128>}, {transform_indices = @transform_5, window_bounds = array<i64: 1, 1, 128>}, {transform_indices = @transform_6, window_bounds = array<i64: 1, 1, 128>}]} {
    %c0 = arith.constant 0 : index
    %c0_0 = arith.constant 0 : index
    %c0_1 = arith.constant 0 : index
    %c0_2 = arith.constant 0 : index
    %0 = vector.load %arg1[%c0, %c0_0, %c0_1, %c0_2] : memref<1x16x16x8xf32, #tpu.memory_space<vmem>>, vector<1x16x16x8xf32>
    %c0_3 = arith.constant 0 : index
    %c0_4 = arith.constant 0 : index
    %1 = vector.load %arg2[%c0_3, %c0_4] : memref<1x8xf32, #tpu.memory_space<vmem>>, vector<1x8xf32>
    %2 = vector.shape_cast %1 : vector<1x8xf32> to vector<1x1x1x8xf32>
    %3 = vector.broadcast %2 : vector<1x1x1x8xf32> to vector<1x16x16x8xf32>
    %4 = arith.mulf %0, %3 : vector<1x16x16x8xf32>
    %c0_5 = arith.constant 0 : index
    %c0_6 = arith.constant 0 : index
    %5 = vector.load %arg3[%c0_5, %c0_6] : memref<1x8xf32, #tpu.memory_space<vmem>>, vector<1x8xf32>
    %6 = vector.shape_cast %5 : vector<1x8xf32> to vector<1x1x1x8xf32>
    %7 = vector.broadcast %6 : vector<1x1x1x8xf32> to vector<1x16x16x8xf32>
    %8 = arith.addf %4, %7 : vector<1x16x16x8xf32>
    %cst = arith.constant 0.000000e+00 : f32
    %9 = vector.broadcast %cst : f32 to vector<1x16x16x8xf32>
    %10 = arith.maximumf %8, %9 : vector<1x16x16x8xf32>
    %cst_7 = arith.constant 0.000000e+00 : f32
    %11 = vector.broadcast %cst_7 : f32 to vector<196x128xf32>
    %12 = vector.extract_strided_slice %10 {offsets = [0, 0, 0, 0], sizes = [1, 14, 14, 8], strides = [1, 1, 1, 1]} : vector<1x16x16x8xf32> to vector<1x14x14x8xf32>
    %13 = vector.shape_cast %12 : vector<1x14x14x8xf32> to vector<14x14x8xf32>
    %14 = vector.shape_cast %13 : vector<14x14x8xf32> to vector<196x8xf32>
    %c0_8 = arith.constant 0 : index
    %c0_9 = arith.constant 0 : index
    %c0_10 = arith.constant 0 : index
    %15 = vector.load %arg4[%c0_8, %c0_9, %c0_10] : memref<9x8x128xf32, #tpu.memory_space<vmem>>, vector<1x8x128xf32>
    %16 = vector.shape_cast %15 : vector<1x8x128xf32> to vector<8x128xf32>
    %cst_11 = arith.constant dense<0.000000e+00> : vector<196x128xf32>
    %17 = tpu.matmul %14, %16, %cst_11 {dimension_numbers = #tpu.dot_dimension_numbers<[1], [0], [0], [1], [0, 0, 1, 1], [], []>} : vector<196x8xf32>, vector<8x128xf32>, vector<196x128xf32> -> vector<196x128xf32>
    %18 = arith.addf %11, %17 : vector<196x128xf32>
    %19 = vector.extract_strided_slice %10 {offsets = [0, 0, 1, 0], sizes = [1, 14, 14, 8], strides = [1, 1, 1, 1]} : vector<1x16x16x8xf32> to vector<1x14x14x8xf32>
    %20 = vector.shape_cast %19 : vector<1x14x14x8xf32> to vector<14x14x8xf32>
    %21 = vector.shape_cast %20 : vector<14x14x8xf32> to vector<196x8xf32>
    %c1 = arith.constant 1 : index
    %c0_12 = arith.constant 0 : index
    %c0_13 = arith.constant 0 : index
    %22 = vector.load %arg4[%c1, %c0_12, %c0_13] : memref<9x8x128xf32, #tpu.memory_space<vmem>>, vector<1x8x128xf32>
    %23 = vector.shape_cast %22 : vector<1x8x128xf32> to vector<8x128xf32>
    %cst_14 = arith.constant dense<0.000000e+00> : vector<196x128xf32>
    %24 = tpu.matmul %21, %23, %cst_14 {dimension_numbers = #tpu.dot_dimension_numbers<[1], [0], [0], [1], [0, 0, 1, 1], [], []>} : vector<196x8xf32>, vector<8x128xf32>, vector<196x128xf32> -> vector<196x128xf32>
    %25 = arith.addf %18, %24 : vector<196x128xf32>
    %26 = vector.extract_strided_slice %10 {offsets = [0, 0, 2, 0], sizes = [1, 14, 14, 8], strides = [1, 1, 1, 1]} : vector<1x16x16x8xf32> to vector<1x14x14x8xf32>
    %27 = vector.shape_cast %26 : vector<1x14x14x8xf32> to vector<14x14x8xf32>
    %28 = vector.shape_cast %27 : vector<14x14x8xf32> to vector<196x8xf32>
    %c2 = arith.constant 2 : index
    %c0_15 = arith.constant 0 : index
    %c0_16 = arith.constant 0 : index
    %29 = vector.load %arg4[%c2, %c0_15, %c0_16] : memref<9x8x128xf32, #tpu.memory_space<vmem>>, vector<1x8x128xf32>
    %30 = vector.shape_cast %29 : vector<1x8x128xf32> to vector<8x128xf32>
    %cst_17 = arith.constant dense<0.000000e+00> : vector<196x128xf32>
    %31 = tpu.matmul %28, %30, %cst_17 {dimension_numbers = #tpu.dot_dimension_numbers<[1], [0], [0], [1], [0, 0, 1, 1], [], []>} : vector<196x8xf32>, vector<8x128xf32>, vector<196x128xf32> -> vector<196x128xf32>
    %32 = arith.addf %25, %31 : vector<196x128xf32>
    %33 = vector.extract_strided_slice %10 {offsets = [0, 1, 0, 0], sizes = [1, 14, 14, 8], strides = [1, 1, 1, 1]} : vector<1x16x16x8xf32> to vector<1x14x14x8xf32>
    %34 = vector.shape_cast %33 : vector<1x14x14x8xf32> to vector<14x14x8xf32>
    %35 = vector.shape_cast %34 : vector<14x14x8xf32> to vector<196x8xf32>
    %c3 = arith.constant 3 : index
    %c0_18 = arith.constant 0 : index
    %c0_19 = arith.constant 0 : index
    %36 = vector.load %arg4[%c3, %c0_18, %c0_19] : memref<9x8x128xf32, #tpu.memory_space<vmem>>, vector<1x8x128xf32>
    %37 = vector.shape_cast %36 : vector<1x8x128xf32> to vector<8x128xf32>
    %cst_20 = arith.constant dense<0.000000e+00> : vector<196x128xf32>
    %38 = tpu.matmul %35, %37, %cst_20 {dimension_numbers = #tpu.dot_dimension_numbers<[1], [0], [0], [1], [0, 0, 1, 1], [], []>} : vector<196x8xf32>, vector<8x128xf32>, vector<196x128xf32> -> vector<196x128xf32>
    %39 = arith.addf %32, %38 : vector<196x128xf32>
    %40 = vector.extract_strided_slice %10 {offsets = [0, 1, 1, 0], sizes = [1, 14, 14, 8], strides = [1, 1, 1, 1]} : vector<1x16x16x8xf32> to vector<1x14x14x8xf32>
    %41 = vector.shape_cast %40 : vector<1x14x14x8xf32> to vector<14x14x8xf32>
    %42 = vector.shape_cast %41 : vector<14x14x8xf32> to vector<196x8xf32>
    %c4 = arith.constant 4 : index
    %c0_21 = arith.constant 0 : index
    %c0_22 = arith.constant 0 : index
    %43 = vector.load %arg4[%c4, %c0_21, %c0_22] : memref<9x8x128xf32, #tpu.memory_space<vmem>>, vector<1x8x128xf32>
    %44 = vector.shape_cast %43 : vector<1x8x128xf32> to vector<8x128xf32>
    %cst_23 = arith.constant dense<0.000000e+00> : vector<196x128xf32>
    %45 = tpu.matmul %42, %44, %cst_23 {dimension_numbers = #tpu.dot_dimension_numbers<[1], [0], [0], [1], [0, 0, 1, 1], [], []>} : vector<196x8xf32>, vector<8x128xf32>, vector<196x128xf32> -> vector<196x128xf32>
    %46 = arith.addf %39, %45 : vector<196x128xf32>
    %47 = vector.extract_strided_slice %10 {offsets = [0, 1, 2, 0], sizes = [1, 14, 14, 8], strides = [1, 1, 1, 1]} : vector<1x16x16x8xf32> to vector<1x14x14x8xf32>
    %48 = vector.shape_cast %47 : vector<1x14x14x8xf32> to vector<14x14x8xf32>
    %49 = vector.shape_cast %48 : vector<14x14x8xf32> to vector<196x8xf32>
    %c5 = arith.constant 5 : index
    %c0_24 = arith.constant 0 : index
    %c0_25 = arith.constant 0 : index
    %50 = vector.load %arg4[%c5, %c0_24, %c0_25] : memref<9x8x128xf32, #tpu.memory_space<vmem>>, vector<1x8x128xf32>
    %51 = vector.shape_cast %50 : vector<1x8x128xf32> to vector<8x128xf32>
    %cst_26 = arith.constant dense<0.000000e+00> : vector<196x128xf32>
    %52 = tpu.matmul %49, %51, %cst_26 {dimension_numbers = #tpu.dot_dimension_numbers<[1], [0], [0], [1], [0, 0, 1, 1], [], []>} : vector<196x8xf32>, vector<8x128xf32>, vector<196x128xf32> -> vector<196x128xf32>
    %53 = arith.addf %46, %52 : vector<196x128xf32>
    %54 = vector.extract_strided_slice %10 {offsets = [0, 2, 0, 0], sizes = [1, 14, 14, 8], strides = [1, 1, 1, 1]} : vector<1x16x16x8xf32> to vector<1x14x14x8xf32>
    %55 = vector.shape_cast %54 : vector<1x14x14x8xf32> to vector<14x14x8xf32>
    %56 = vector.shape_cast %55 : vector<14x14x8xf32> to vector<196x8xf32>
    %c6 = arith.constant 6 : index
    %c0_27 = arith.constant 0 : index
    %c0_28 = arith.constant 0 : index
    %57 = vector.load %arg4[%c6, %c0_27, %c0_28] : memref<9x8x128xf32, #tpu.memory_space<vmem>>, vector<1x8x128xf32>
    %58 = vector.shape_cast %57 : vector<1x8x128xf32> to vector<8x128xf32>
    %cst_29 = arith.constant dense<0.000000e+00> : vector<196x128xf32>
    %59 = tpu.matmul %56, %58, %cst_29 {dimension_numbers = #tpu.dot_dimension_numbers<[1], [0], [0], [1], [0, 0, 1, 1], [], []>} : vector<196x8xf32>, vector<8x128xf32>, vector<196x128xf32> -> vector<196x128xf32>
    %60 = arith.addf %53, %59 : vector<196x128xf32>
    %61 = vector.extract_strided_slice %10 {offsets = [0, 2, 1, 0], sizes = [1, 14, 14, 8], strides = [1, 1, 1, 1]} : vector<1x16x16x8xf32> to vector<1x14x14x8xf32>
    %62 = vector.shape_cast %61 : vector<1x14x14x8xf32> to vector<14x14x8xf32>
    %63 = vector.shape_cast %62 : vector<14x14x8xf32> to vector<196x8xf32>
    %c7 = arith.constant 7 : index
    %c0_30 = arith.constant 0 : index
    %c0_31 = arith.constant 0 : index
    %64 = vector.load %arg4[%c7, %c0_30, %c0_31] : memref<9x8x128xf32, #tpu.memory_space<vmem>>, vector<1x8x128xf32>
    %65 = vector.shape_cast %64 : vector<1x8x128xf32> to vector<8x128xf32>
    %cst_32 = arith.constant dense<0.000000e+00> : vector<196x128xf32>
    %66 = tpu.matmul %63, %65, %cst_32 {dimension_numbers = #tpu.dot_dimension_numbers<[1], [0], [0], [1], [0, 0, 1, 1], [], []>} : vector<196x8xf32>, vector<8x128xf32>, vector<196x128xf32> -> vector<196x128xf32>
    %67 = arith.addf %60, %66 : vector<196x128xf32>
    %68 = vector.extract_strided_slice %10 {offsets = [0, 2, 2, 0], sizes = [1, 14, 14, 8], strides = [1, 1, 1, 1]} : vector<1x16x16x8xf32> to vector<1x14x14x8xf32>
    %69 = vector.shape_cast %68 : vector<1x14x14x8xf32> to vector<14x14x8xf32>
    %70 = vector.shape_cast %69 : vector<14x14x8xf32> to vector<196x8xf32>
    %c8 = arith.constant 8 : index
    %c0_33 = arith.constant 0 : index
    %c0_34 = arith.constant 0 : index
    %71 = vector.load %arg4[%c8, %c0_33, %c0_34] : memref<9x8x128xf32, #tpu.memory_space<vmem>>, vector<1x8x128xf32>
    %72 = vector.shape_cast %71 : vector<1x8x128xf32> to vector<8x128xf32>
    %cst_35 = arith.constant dense<0.000000e+00> : vector<196x128xf32>
    %73 = tpu.matmul %70, %72, %cst_35 {dimension_numbers = #tpu.dot_dimension_numbers<[1], [0], [0], [1], [0, 0, 1, 1], [], []>} : vector<196x8xf32>, vector<8x128xf32>, vector<196x128xf32> -> vector<196x128xf32>
    %74 = arith.addf %67, %73 : vector<196x128xf32>
    %75 = vector.shape_cast %74 : vector<196x128xf32> to vector<1x14x14x128xf32>
    %c0_36 = arith.constant 0 : index
    %c0_37 = arith.constant 0 : index
    %c0_38 = arith.constant 0 : index
    %c0_39 = arith.constant 0 : index
    %76 = vector.load %arg5[%c0_36, %c0_37, %c0_38, %c0_39] : memref<1x14x14x128xf32, #tpu.memory_space<vmem>>, vector<1x14x14x128xf32>
    tpu.vector_store %arg5[%c0_36, %c0_37, %c0_38, %c0_39], %75 {strides = array<i32>} : memref<1x14x14x128xf32, #tpu.memory_space<vmem>>, vector<1x14x14x128xf32>,
    %cst_40 = arith.constant dense<0.000000e+00> : vector<128xf32>
    %77 = vector.multi_reduction <add>, %74, %cst_40 [0] : vector<196x128xf32> to vector<128xf32>
    %78 = vector.shape_cast %77 : vector<128xf32> to vector<1x1x128xf32>
    %c0_41 = arith.constant 0 : index
    %c0_42 = arith.constant 0 : index
    %c0_43 = arith.constant 0 : index
    %79 = vector.load %arg6[%c0_41, %c0_42, %c0_43] : memref<1x1x128xf32, #tpu.memory_space<vmem>>, vector<1x1x128xf32>
    tpu.vector_store %arg6[%c0_41, %c0_42, %c0_43], %78 {strides = array<i32>} : memref<1x1x128xf32, #tpu.memory_space<vmem>>, vector<1x1x128xf32>,
    %80 = arith.mulf %74, %74 : vector<196x128xf32>
    %cst_44 = arith.constant dense<0.000000e+00> : vector<128xf32>
    %81 = vector.multi_reduction <add>, %80, %cst_44 [0] : vector<196x128xf32> to vector<128xf32>
    %82 = vector.shape_cast %81 : vector<128xf32> to vector<1x1x128xf32>
    %c0_45 = arith.constant 0 : index
    %c0_46 = arith.constant 0 : index
    %c0_47 = arith.constant 0 : index
    %83 = vector.load %arg7[%c0_45, %c0_46, %c0_47] : memref<1x1x128xf32, #tpu.memory_space<vmem>>, vector<1x1x128xf32>
    tpu.vector_store %arg7[%c0_45, %c0_46, %c0_47], %82 {strides = array<i32>} : memref<1x1x128xf32, #tpu.memory_space<vmem>>, vector<1x1x128xf32>,
    return
  }
  func.func @transform_0(%arg0: i32) -> (i32, i32, i32, i32) {
    %c0_i32 = arith.constant 0 : i32
    %c0_i32_0 = arith.constant 0 : i32
    %c0_i32_1 = arith.constant 0 : i32
    %c0_i32_2 = arith.constant 0 : i32
    return %arg0, %c0_i32, %c0_i32_0, %c0_i32_1 : i32, i32, i32, i32
  }
  func.func @transform_1(%arg0: i32) -> (i32, i32) {
    %c0_i32 = arith.constant 0 : i32
    %c0_i32_0 = arith.constant 0 : i32
    %c0_i32_1 = arith.constant 0 : i32
    return %c0_i32, %c0_i32_0 : i32, i32
  }
  func.func @transform_2(%arg0: i32) -> (i32, i32) {
    %c0_i32 = arith.constant 0 : i32
    %c0_i32_0 = arith.constant 0 : i32
    %c0_i32_1 = arith.constant 0 : i32
    return %c0_i32, %c0_i32_0 : i32, i32
  }
  func.func @transform_3(%arg0: i32) -> (i32, i32, i32) {
    %c0_i32 = arith.constant 0 : i32
    %c0_i32_0 = arith.constant 0 : i32
    %c0_i32_1 = arith.constant 0 : i32
    %c0_i32_2 = arith.constant 0 : i32
    return %c0_i32, %c0_i32_0, %c0_i32_1 : i32, i32, i32
  }
  func.func @transform_4(%arg0: i32) -> (i32, i32, i32, i32) {
    %c0_i32 = arith.constant 0 : i32
    %c0_i32_0 = arith.constant 0 : i32
    %c0_i32_1 = arith.constant 0 : i32
    %c0_i32_2 = arith.constant 0 : i32
    return %arg0, %c0_i32, %c0_i32_0, %c0_i32_1 : i32, i32, i32, i32
  }
  func.func @transform_5(%arg0: i32) -> (i32, i32, i32) {
    %c0_i32 = arith.constant 0 : i32
    %c0_i32_0 = arith.constant 0 : i32
    %c0_i32_1 = arith.constant 0 : i32
    return %arg0, %c0_i32, %c0_i32_0 : i32, i32, i32
  }
  func.func @transform_6(%arg0: i32) -> (i32, i32, i32) {
    %c0_i32 = arith.constant 0 : i32
    %c0_i32_0 = arith.constant 0 : i32
    %c0_i32_1 = arith.constant 0 : i32
    return %arg0, %c0_i32, %c0_i32_0 : i32, i32, i32
  }
}

</mosaic_0001>

<bundles_post_ra>
// kernel: tpu_custom_call.1
= control target key start
LH: loop header
LB: loop body
LE: loop exit
PB: predicated region body
PF: predicated region fallthrough
CT: control target
= control target key end

     0   :  { %12 = vsyncpa [#allocation3], 0  ;;  %s12136_s0 = inlined_call_operand.vmem [shape: f32[2,16,16,8], index: 0, kind: input, shape index: {}]   ;;  %s12137_s1 = inlined_call_operand.vmem [shape: f32[1,8], index: 1, kind: input, shape index: {}]   ;;  %s12138_s2 = inlined_call_operand.vmem [shape: f32[1,8], index: 2, kind: input, shape index: {}]   ;;  %s12139_s3 = inlined_call_operand.vmem [shape: f32[9,8,128], index: 3, kind: input, shape index: {}]   ;;  %s12140_s4 = inlined_call_operand.vmem [shape: f32[2,14,14,128], index: 4, kind: output, shape index: {0}]   ;;  %s12141_s5 = inlined_call_operand.hbm [shape: f32[2,1,128], index: 5, kind: output, shape index: {1}]   ;;  %s12142_s6 = inlined_call_operand.hbm [shape: f32[2,1,128], index: 6, kind: output, shape index: {2}]  }
   0x1   :  { %14 = vsyncpa [#allocation3 + $0x1], 0 }
   0x2   :  { %15 = vsyncpa [#allocation5], 0 }
   0x3   :  { %17 = vsyncpa [#allocation5 + $0x1], 0  ;;  %s8783_s21 = smov 0   ;;  %s8785_s22 = smov 0  }
   0x4   :  { %s8787_s23 = smov 0   ;;  %s8789_s24 = smov 0  }
   0x5 LB: > { %s8804_s25 = sadd.s32 4294967295, %s8741_s24   ;;  %s7012_s26 = sadd.s32 4294967294, %s8741_s24   ;;  %s8741_s24 = sphi %s8789_s24, %s12942_s24   ;;  %s8737_s23 = sphi %s8787_s23, %s12941_s23   ;;  %s8733_s22 = sphi %s8785_s22, %s12940_s22   ;;  %s8729_s21 = sphi %s8783_s21, %s12939_s21  }
   0x6   : > { %s8808_s27 = sadd.s32 1, %s8741_s24   ;;  %s145_s28 = sadd.s32 1, %s8737_s23 }
   0x7   : > { %s142_s29 = ssub.s32 %s8741_s24, %s8808_s27  ;;  %p155_p0 = scmp.ne.s32.totalorder %s8737_s23, %s8733_s22 }
   0x8   : > { %p143_p1 = scmp.eq.s32.totalorder %s142_s29, 0  ;;  %p156_p2 = scmp.eq.s32.totalorder %s8804_s25, 1 }
   0x9   : > { %p161_p3 = scmp.ne.s32.totalorder %s8733_s22, %s8729_s21  ;;  %p162_p4 = scmp.eq.s32.totalorder %s7012_s26, 1 }
   0xa   : > { %s8819_s30 = scalar_select %p143_p1, %s8737_s23, %s145_s28  }
   0xb   : > { %p8821_p5 = por %p156_p2, %p155_p0  ;;  %p8825_p6 = por %p162_p4, %p161_p3 }
   0xc   : > { %p7015_p7 = scmp.ge.s32.totalorder %s8741_s24, 1  ;;  %p223_p8 = scmp.lt.s32.totalorder %s8741_s24, 3 }
   0xe   : > { %p224_p9 = pnand %p7015_p7, %p223_p8 }
  0x10   : > { %227 = sbr.rel (%p224_p9) target bundleno = 852 (0x354), region = 36 }
  0x17   : > { %v7146_v0 = vld [vmem:[%s12139_s3 + $0x20] sm:$0xff]  ;;  %v7035_v1 = vld [vmem:[%s12139_s3 + $0x8] sm:$0xff]  ;;  %p261_p10 = scmp.lt.s32.totalorder %s8804_s25, 1  ;;  %v445_v2 = vlaneseq  ;;  %v12143_v3 = vmov 0.0   ;;  %v8744_v4 = vmov 1983009808  }
  0x18   : > { %7832 = vmatprep.subr.mxu0 %v12143_v3  ;;  %7524 = vmatprep.subr.mxu1 %v12143_v3  ;;  %v443_v5 = vunpack.c.l.s4 %v8744_v4  ;;  %vm8745_vm0 = vmmov 0   ;;  %v8852_v6 = vld [vmem:[%s12137_s1] ss:$0 sm:$0xff]  ;;  %vm918_vm1 = vcmask 1040384   ;;  %vm919_vm2 = vcmask 1042434   ;;  %s12049_s28 = sand.u32 1, %s8733_s22  }
  0x19   : > { %7833 = vmatpush3.msra.mxu0 %v7146_v0  ;;  %7525 = vmatpush3.msra.mxu1 %v7035_v1  ;;  %s8841_s13 = scalar_select %p261_p10, %s8804_s25, 1  ;;  %v446_v8 = vshrl.u32 %v445_v2, 7  ;;  %v8863_v9 = vld [vmem:[%s12138_s2] ss:$0 sm:$0xff]  ;;  %vm921_vm3 = vcmask 1044484   ;;  %vm923_vm4 = vcmask 1046534   ;;  %vm8887_vm5 = vmor %vm918_vm1, %vm919_vm2 }
  0x1a   : > { %7526 = vmatprep.mubr.msk.f32.mxu1 %vm8745_vm0, %v12143_v3  ;;  %7834 = vmatprep.mubr.msk.f32.mxu0 %vm8745_vm0, %v12143_v3  ;;  %v444_v7 = vunpack.c.0.s8 %v443_v5  ;;  %vm922_vm6 = vmor %vm8887_vm5, %vm921_vm3  ;;  %v12445_v54 = vmov 0  ;;  %vm1651_vm8 = vcmask 64512   ;;  %vm6799_vm9 = vcmask 1043456   ;;  %s7285_s29 = sshll.u32 %s8804_s25, 4  ;;  %s254_s9 = scalar_lea.vmem [#allocation2], %s12049_s28 }
  0x1b   : > { %7909 = vmatprep.subr.mxu0 %v12143_v3  ;;  %s7289_s14 = sshll.u32 %s8841_s13, 8  ;;  %7601 = vmatprep.subr.mxu1 %v12143_v3  ;;  %vm8930_vm7 = vmor %vm922_vm6, %vm923_vm4  ;;  %s8594_s18 = smul.u32 224, %s8841_s13 }
  0x1c   : > { %s8858_s19 = scalar_lea.vmem %s12136_s0, %s7289_s14  ;;  %v8874_v19 = vsub.s32 %v444_v7, %v446_v8  ;;  %v12446_v54 = vsel %vm8930_vm7, 4294967295, %v12445_v54  ;;  %s6891_s10 = sshll.u32 %s254_s9, 4  ;;  %s12064_s10 = int_to_ptr.vmem [resolvable:$true] %s6891_s10 }
  0x1d   : > { %v271_v10 = vld [vmem:[%s8858_s19] sm:$0xff]  ;;  %v272_v11 = vld [vmem:[%s8858_s19 + $0x8] sm:$0xff]  ;;  %v273_v12 = vld [vmem:[%s8858_s19 + $0x10] sm:$0xff]  ;;  %12447 = vst [vmem:[#allocation14_spill] sm:$0xff] %v12446_v54  ;;  %s11911_s13 = scalar_lea.vmem %s12140_s4, %s8594_s18  ;;  %s260_s11 = scalar_lea.vmem [#allocation4], %s12049_s28 }
  0x1e   : > { %v310_v13 = vmul.f32 %v8852_v6, %v271_v10  ;;  %v311_v14 = vmul.f32 %v8852_v6, %v272_v11  ;;  %v274_v15 = vld [vmem:[%s8858_s19 + $0x18] sm:$0xff]  ;;  %v312_v16 = vmul.f32 %v8852_v6, %v273_v12  ;;  %v275_v17 = vld [vmem:[%s8858_s19 + $0x20] sm:$0xff]  ;;  %v276_v18 = vld [vmem:[%s8858_s19 + $0x28] sm:$0xff]  ;;  %s6904_s12 = sshll.u32 %s260_s11, 4  ;;  %s12062_s15 = scalar_lea.hbm %s12141_s5, %s7285_s29  ;;  %s12071_s12 = int_to_ptr.vmem [resolvable:$true] %s6904_s12 }
  0x1f   : > { %v313_v20 = vmul.f32 %v8852_v6, %v274_v15  ;;  %v314_v21 = vmul.f32 %v8852_v6, %v275_v17  ;;  %v315_v22 = vmul.f32 %v8852_v6, %v276_v18  ;;  %v277_v23 = vld [vmem:[%s8858_s19 + $0x30] sm:$0xff]  ;;  %v278_v24 = vld [vmem:[%s8858_s19 + $0x38] sm:$0xff]  ;;  %s12069_s17 = scalar_lea.hbm %s12142_s6, %s7285_s29  ;;  %s6872_s18 = scalar_lea.sflag [#allocation3], %s12049_s28 }
  0x20   : > { %v349_v25 = vadd.f32 %v8863_v9, %v310_v13  ;;  %v350_v26 = vadd.f32 %v8863_v9, %v311_v14  ;;  %v351_v27 = vadd.f32 %v8863_v9, %v312_v16  ;;  %v316_v28 = vmul.f32 %v8852_v6, %v277_v23  ;;  %s8647_s20 = scalar_lea.vmem %s12064_s10, 16  ;;  %s8746_s26 = smov [#allocation2]  }
  0x21   : > { %v352_v30 = vadd.f32 %v8863_v9, %v313_v20  ;;  %v353_v31 = vadd.f32 %v8863_v9, %v314_v21  ;;  %v354_v32 = vadd.f32 %v8863_v9, %v315_v22  ;;  %v317_v33 = vmul.f32 %v8852_v6, %v278_v24  ;;  %p8648_p11 = scmp.ne.s32.totalorder %s12064_s10, %s8647_s20 }
  0x22   : > { %v381_v34 = vmax.f32 %v349_v25, 0.0  ;;  %v382_v35 = vmax.f32 %v350_v26, 0.0  ;;  %v383_v36 = vmax.f32 %v351_v27, 0.0  ;;  %v8896_v37 = vadd.f32 %v8863_v9, %v316_v28 }
  0x23   : > { %v384_v38 = vmax.f32 %v352_v30, 0.0  ;;  %v8898_v39 = vmax.f32 %v353_v31, 0.0  ;;  %v8900_v40 = vmax.f32 %v354_v32, 0.0  ;;  %v8903_v41 = vadd.f32 %v8863_v9, %v317_v33  ;;  %p8649_p12 = pnand %p8648_p11, %p8821_p5 }
  0x24   : > { %v441_v42 = vcombine.high %v381_v34, %v381_v34  ;;  %v8906_v43 = vrot.slane %v381_v34, %v8874_v19  ;;  %v458_v44 = vcombine.high %v382_v35, %v382_v35  ;;  %v8909_v45 = vrot.slane %v382_v35, %v8874_v19 }
  0x25   : > { %v474_v46 = vcombine.high %v383_v36, %v383_v36  ;;  %v8915_v47 = vrot.slane %v383_v36, %v8874_v19  ;;  %v491_v48 = vcombine.high %v384_v38, %v384_v38  ;;  %v8918_v49 = vrot.slane %v384_v38, %v8874_v19  ;;  %p8650_p13 = pneg %p8649_p12 }
  0x26   : > { %12439 = vst [vmem:[#allocation8_spill] sm:$0xff] %v8906_v43  ;;  %12440 = vst [vmem:[#allocation9_spill] sm:$0xff] %v8909_v45  ;;  %v8921_v50 = vrot.slane %v441_v42, %v8874_v19  ;;  %v8925_v51 = vcombine.high %v8906_v43, %v8906_v43  ;;  %v7021_v52 = vrot.slane %v8906_v43, 9  ;;  %v936_v53 = vrot.slane %v8909_v45, 7 }
  0x27   : > { %12441 = vst [vmem:[#allocation10_spill] sm:$0xff] %v8915_v47  ;;  %12442 = vst [vmem:[#allocation11_spill] sm:$0xff] %v8918_v49  ;;  %v8935_v55 = vrot.slane %v474_v46, %v8874_v19  ;;  %v8939_v56 = vcombine.high %v8915_v47, %v8915_v47  ;;  %v8942_v57 = vrot.slane %v491_v48, %v8874_v19  ;;  %v7022_v58 = vrot.slane %v8915_v47, 9 }
  0x28   : > { %12443 = vst [vmem:[#allocation12_spill] sm:$0xff] %v8921_v50  ;;  %12444 = vst [vmem:[#allocation13_spill] sm:$0xff] %v8925_v51  ;;  %v8947_v59 = vcombine.high %v8921_v50, %v8921_v50  ;;  %v927_v60 = vrot.slane %v8925_v51, 7  ;;  %v930_v61 = vrot.slane %v8921_v50, 7  ;;  %v958_v62 = vrot.slane %v8918_v49, 7 }
  0x29   : > { %12448 = vst [vmem:[#allocation15_spill] sm:$0xff] %v8935_v55  ;;  %12449 = vst [vmem:[#allocation16_spill] sm:$0xff] %v8939_v56  ;;  %v8954_v63 = vcombine.high %v8935_v55, %v8935_v55  ;;  %v949_v0 = vrot.slane %v8939_v56, 7  ;;  %v952_v1 = vrot.slane %v8935_v55, 7  ;;  %v8959_v2 = vrot.slane %v458_v44, %v8874_v19 }
  0x2a   : > { %12450 = vst [vmem:[#allocation17_spill] sm:$0xff] %v8942_v57  ;;  %12451 = vst [vmem:[#allocation18_spill] sm:$0xff] %v8947_v59  ;;  %v928_v4 = vsel %vm8930_vm7, %v7021_v52, %v927_v60  ;;  %v929_v5 = vrot.slane %v927_v60, 2  ;;  %v932_v7 = vrot.slane %v930_v61, 2  ;;  %v933_v8 = vrot.slane %v8947_v59, 7 }
  0x2b   : > { %12452 = vst [vmem:[#allocation19_spill] sm:$0xff] %v8954_v63  ;;  %12453 = vst [vmem:[#allocation20_spill] sm:$0xff] %v8959_v2  ;;  %v950_v10 = vsel %vm8930_vm7, %v7022_v58, %v949_v0  ;;  %v951_v11 = vrot.slane %v949_v0, 2  ;;  %v954_v12 = vrot.slane %v952_v1, 2  ;;  %v955_v13 = vrot.slane %v8954_v63, 7 }
  0x2c   : > { %v931_v14 = vsel %vm8930_vm7, %v929_v5, %v930_v61  ;;  %v934_v15 = vsel %vm8930_vm7, %v932_v7, %v933_v8  ;;  %v935_v16 = vrot.slane %v933_v8, 2  ;;  %v8973_v17 = vcombine.high %v8909_v45, %v8909_v45 }
  0x2d   : > { %v1235_v18 = vcombine.low %v928_v4, %v931_v14  ;;  %v953_v20 = vsel %vm8930_vm7, %v951_v11, %v952_v1  ;;  %v956_v21 = vsel %vm8930_vm7, %v954_v12, %v955_v13  ;;  %v957_v22 = vrot.slane %v955_v13, 2  ;;  %v7172_v1 = vld [vmem:[%s12139_s3 + $0x28] sm:$0xff] }
  0x2e   : > { %12454 = vst [vmem:[#allocation21_spill] sm:$0xff] %v8973_v17  ;;  %v937_v23 = vsel %vm8930_vm7, %v935_v16, %v936_v53  ;;  %v3718_v24 = vcombine.low %v950_v10, %v953_v20  ;;  %v904_v25 = vcombine.high %v8959_v2, %v8959_v2  ;;  %v938_v26 = vrot.slane %v936_v53, 2  ;;  %v12655_v54 = vld [vmem:[#allocation9_spill] sm:$0xff] }
  0x2f   : > { %v1236_v27 = vcombine.low %v934_v15, %v937_v23  ;;  %v1243_v28 = vrot.slane %v1235_v18, %v8874_v19  ;;  %v959_v29 = vsel %vm8930_vm7, %v957_v22, %v958_v62  ;;  %v939_v30 = vrot.slane %v8973_v17, 7 }
  0x30   : > { %v3719_v31 = vcombine.low %v956_v21, %v959_v29  ;;  %v3726_v32 = vrot.slane %v3718_v24, %v8874_v19  ;;  %v942_v33 = vrot.slane %v8959_v2, 7  ;;  %v945_v34 = vrot.slane %v904_v25, 7 }
  0x31   : > { %v1250_v35 = vrot.slane %v1236_v27, %v8874_v19  ;;  %v940_v36 = vsel %vm8930_vm7, %v938_v26, %v939_v30  ;;  %v941_v38 = vrot.slane %v939_v30, 2  ;;  %v8994_v42 = vcombine.high %v8918_v49, %v8918_v49 }
  0x32   : > { %v3733_v44 = vrot.slane %v3719_v31, %v8874_v19  ;;  %v944_v46 = vrot.slane %v942_v33, 2  ;;  %v8999_v48 = vrot.slane %v8898_v39, %v8874_v19  ;;  %v9003_v52 = vcombine.high %v8942_v57, %v8942_v57 }
  0x33   : > { %12455 = vst [vmem:[#allocation22_spill] sm:$0xff] %v8994_v42  ;;  %v1251_v53 = vcombine.low %v1243_v28, %v1250_v35  ;;  %v943_v58 = vsel %vm8930_vm7, %v941_v38, %v942_v33  ;;  %v960_v60 = vrot.slane %v958_v62, 2  ;;  %v961_v61 = vrot.slane %v8994_v42, 7  ;;  %v903_v62 = vld [vmem:[%s12139_s3] sm:$0xff] }
  0x34   : > { %12456 = vst [vmem:[#allocation23_spill] sm:$0xff] %v8999_v48  ;;  %12457 = vst [vmem:[#allocation24_spill] sm:$0xff] %v9003_v52  ;;  %v3734_v0 = vcombine.low %v3726_v32, %v3733_v44  ;;  %v946_v4 = vsel %vm8930_vm7, %v944_v46, %v945_v34  ;;  %v1252_v5 = vcombine.low %v940_v36, %v943_v58  ;;  %v964_v13 = vrot.slane %v8942_v57, 7 }
  0x35   : > { %v9015_v7 = vcombine.high %v8999_v48, %v8999_v48  ;;  %7527 = vmatmul.mubr.msk.f32.vlgmr.msra.gmra.mrb[0].mxu1 %vm1651_vm8, %v1251_v53  ;;  %v1253_v8 = vcombine.low %v946_v4, %v950_v10  ;;  %v962_v11 = vsel %vm8930_vm7, %v960_v60, %v961_v61  ;;  %v963_v12 = vrot.slane %v961_v61, 2 }
  0x36   : > { %7835 = vmatmul.mubr.msk.f32.vlgmr.msra.gmra.mrb[0].mxu0 %vm1651_vm8, %v3734_v0  ;;  %7529 = vmatprep.mubr.msk.f32.mxu1 %vm8745_vm0, %v12143_v3  ;;  %v1260_v14 = vrot.slane %v1252_v5, %v8874_v19  ;;  %v967_v15 = vrot.slane %v9003_v52, 7  ;;  %v7023_v10 = vrot.slane %v8999_v48, 9  ;;  %v966_v23 = vrot.slane %v964_v13, 2 }
  0x37   : > { %12458 = vst [vmem:[#allocation25_spill] sm:$0xff] %v9015_v7  ;;  %v971_v16 = vrot.slane %v9015_v7, 7  ;;  %7910 = vmatpush3.msra.mxu0 %v7172_v1  ;;  %7837 = vmatprep.mubr.msk.f32.mxu0 %vm8745_vm0, %v12143_v3  ;;  %v1267_v18 = vrot.slane %v1253_v8, %v8874_v19  ;;  %v965_v22 = vsel %vm8930_vm7, %v963_v12, %v964_v13  ;;  %v387_v0 = vmax.f32 %v8896_v37, 0.0 }
  0x38   : > { %v1269_v24 = vcombine.low %v953_v20, %v956_v21  ;;  %7602 = vmatpush3.msra.mxu1 %v903_v62  ;;  %v3735_v26 = vcombine.low %v962_v11, %v965_v22  ;;  %v1270_v27 = vcombine.low %v959_v29, %v962_v11  ;;  %v507_v28 = vcombine.high %v8898_v39, %v8898_v39 }
  0x39   : > { %v972_v25 = vsel %vm8930_vm7, %v7023_v10, %v971_v16  ;;  %v1268_v30 = vcombine.low %v1260_v14, %v1267_v18  ;;  %v968_v31 = vsel %vm8930_vm7, %v966_v23, %v967_v15  ;;  %v524_v33 = vcombine.high %v8900_v40, %v8900_v40  ;;  %7986 = vmatprep.subr.mxu0 %v12143_v3 }
  0x3a   : > { %v1277_v32 = vrot.slane %v1269_v24, %v8874_v19  ;;  %v3736_v20 = vcombine.low %v968_v31, %v972_v25  ;;  %v3743_v21 = vrot.slane %v3735_v26, %v8874_v19  ;;  %v1284_v34 = vrot.slane %v1270_v27, %v8874_v19  ;;  %7678 = vmatprep.subr.mxu1 %v12143_v3 }
  0x3b   : > { %v9049_v29 = vrot.slane %v507_v28, %v8874_v19  ;;  %7530 = vmatmul.mubr.msk.f32.gmra.mrb[2].mxu1 %vm1651_vm8, %v1268_v30  ;;  %v9055_v39 = vrot.slane %v8900_v40, %v8874_v19  ;;  %v9058_v35 = vrot.slane %v524_v33, %v8874_v19  ;;  %v973_v36 = vrot.slane %v971_v16, 2 }
  0x3c   : > { %v1286_v38 = vcombine.low %v965_v22, %v968_v31  ;;  %v3750_v44 = vrot.slane %v3736_v20, %v8874_v19  ;;  %7532 = vmatprep.mubr.msk.f32.mxu1 %vm8745_vm0, %v12143_v3  ;;  %v1285_v46 = vcombine.low %v1277_v32, %v1284_v34  ;;  %v540_v13 = vcombine.high %v387_v0, %v387_v0 }
  0x3d   : > { %12459 = vst [vmem:[#allocation26_spill] sm:$0xff] %v9049_v29  ;;  %12460 = vst [vmem:[#allocation27_spill] sm:$0xff] %v9055_v39  ;;  %v9065_v53 = vcombine.high %v9049_v29, %v9049_v29  ;;  %v974_v58 = vrot.slane %v9049_v29, 7  ;;  %v9070_v40 = vcombine.high %v9055_v39, %v9055_v39  ;;  %v980_v60 = vrot.slane %v9055_v39, 7 }
  0x3e   : > { %v1294_v61 = vrot.slane %v1286_v38, %v8874_v19  ;;  %v3751_v1 = vcombine.low %v3743_v21, %v3750_v44  ;;  %v9086_v15 = vrot.slane %v387_v0, %v8874_v19  ;;  %v9090_v10 = vcombine.high %v9058_v35, %v9058_v35 }
  0x3f   : > { %12461 = vst [vmem:[#allocation28_spill] sm:$0xff] %v9065_v53  ;;  %12462 = vst [vmem:[#allocation29_spill] sm:$0xff] %v9070_v40  ;;  %v975_v4 = vsel %vm8930_vm7, %v973_v36, %v974_v58  ;;  %v976_v5 = vrot.slane %v974_v58, 2  ;;  %v977_v8 = vrot.slane %v9065_v53, 7  ;;  %7533 = vmatmul.mubr.msk.f32.gmra.mrb[4].mxu1 %vm1651_vm8, %v1285_v46  ;;  %v982_v62 = vrot.slane %v980_v60, 2 }
  0x40   : > { %v983_v11 = vrot.slane %v9070_v40, 7  ;;  %v1287_v12 = vcombine.low %v972_v25, %v975_v4  ;;  %7838 = vmatmul.mubr.msk.f32.gmra.mrb[2].mxu0 %vm1651_vm8, %v3751_v1  ;;  %7535 = vmatprep.mubr.msk.f32.mxu1 %vm8745_vm0, %v12143_v3  ;;  %12463 = vst [vmem:[#allocation30_spill] sm:$0xff] %v9086_v15  ;;  %v9100_v23 = vrot.slane %v540_v13, %v8874_v19  ;;  %v986_v27 = vrot.slane %v9058_v35, 7 }
  0x41   : > { %v978_v14 = vsel %vm8930_vm7, %v976_v5, %v977_v8  ;;  %v979_v37 = vrot.slane %v977_v8, 2  ;;  %7840 = vmatprep.mubr.msk.f32.mxu0 %vm8745_vm0, %v12143_v3  ;;  %v9106_v25 = vcombine.high %v9086_v15, %v9086_v15  ;;  %v989_v32 = vrot.slane %v9090_v10, 7 }
  0x42   : > { %v984_v16 = vsel %vm8930_vm7, %v982_v62, %v983_v11  ;;  %v3752_v18 = vcombine.low %v975_v4, %v978_v14  ;;  %v9097_v22 = vrot.slane %v1287_v12, %v8874_v19  ;;  %12465 = vst [vmem:[#allocation32_spill] sm:$0xff] %v9100_v23  ;;  %v985_v26 = vrot.slane %v983_v11, 2 }
  0x43   : > { %v981_v24 = vsel %vm8930_vm7, %v979_v37, %v980_v60  ;;  %12466 = vst [vmem:[#allocation33_spill] sm:$0xff] %v9106_v25  ;;  %v988_v20 = vrot.slane %v986_v27, 2  ;;  %v7024_v21 = vrot.slane %v9086_v15, 9  ;;  %v993_v34 = vrot.slane %v9106_v25, 7 }
  0x44   : > { %12464 = vst [vmem:[#allocation31_spill] sm:$0xff] %v9097_v22  ;;  %v3753_v28 = vcombine.low %v981_v24, %v984_v16  ;;  %v3760_v30 = vrot.slane %v3752_v18, %v8874_v19  ;;  %v1302_v31 = vcombine.low %v1294_v61, %v9097_v22  ;;  %v987_v33 = vsel %vm8930_vm7, %v985_v26, %v986_v27 }
  0x45   : > { %v996_v38 = vrot.slane %v9100_v23, 7  ;;  %v1303_v44 = vcombine.low %v978_v14, %v981_v24  ;;  %v1304_v46 = vcombine.low %v984_v16, %v987_v33  ;;  %v990_v58 = vsel %vm8930_vm7, %v988_v20, %v989_v32 }
  0x46   : > { %v3767_v36 = vrot.slane %v3753_v28, %v8874_v19  ;;  %7536 = vmatmul.mubr.msk.f32.gmra.mrb[6].mxu1 %vm1651_vm8, %v1302_v31  ;;  %v994_v60 = vsel %vm8930_vm7, %v7024_v21, %v993_v34  ;;  %v995_v61 = vrot.slane %v993_v34, 2  ;;  %v388_v0 = vmax.f32 %v8903_v41, 0.0  ;;  %v279_v41 = vld [vmem:[%s8858_s19 + $0x40] sm:$0xff] }
  0x47   : > { %7538 = vmatprep.mubr.msk.f32.mxu1 %vm8745_vm0, %v12143_v3  ;;  %v3769_v4 = vcombine.low %v987_v33, %v990_v58  ;;  %v9127_v5 = vrot.slane %v1303_v44, %v8874_v19  ;;  %v9130_v8 = vrot.slane %v1304_v46, %v8874_v19  ;;  %v9136_v11 = vcombine.high %v9100_v23, %v9100_v23 }
  0x48   : > { %v3768_v1 = vcombine.low %v3760_v30, %v3767_v36  ;;  %v997_v62 = vsel %vm8930_vm7, %v995_v61, %v996_v38  ;;  %v557_v12 = vcombine.high %v388_v0, %v388_v0  ;;  %v9139_v13 = vrot.slane %v388_v0, %v8874_v19 }
  0x49   : > { %12467 = vst [vmem:[#allocation34_spill] sm:$0xff] %v9127_v5  ;;  %12468 = vst [vmem:[#allocation35_spill] sm:$0xff] %v9130_v8  ;;  %v3770_v14 = vcombine.low %v994_v60, %v997_v62  ;;  %v3777_v37 = vrot.slane %v3769_v4, %v8874_v19  ;;  %v1319_v16 = vcombine.low %v9127_v5, %v9130_v8  ;;  %v998_v27 = vrot.slane %v996_v38, 2  ;;  %v280_v4 = vld [vmem:[%s8858_s19 + $0x48] sm:$0xff] }
  0x4a   : > { %12469 = vst [vmem:[#allocation36_spill] sm:$0xff] %v9136_v11  ;;  %12470 = vst [vmem:[#allocation37_spill] sm:$0xff] %v9139_v13  ;;  %7841 = vmatmul.mubr.msk.f32.gmra.mrb[4].mxu0 %vm1651_vm8, %v3768_v1  ;;  %v9151_v24 = vrot.slane %v557_v12, %v8874_v19  ;;  %v9155_v26 = vcombine.high %v9139_v13, %v9139_v13  ;;  %v999_v28 = vrot.slane %v9136_v11, 7  ;;  %v1002_v31 = vrot.slane %v9139_v13, 7 }
  0x4b   : > { %7843 = vmatprep.mubr.msk.f32.mxu0 %vm8745_vm0, %v12143_v3  ;;  %v3784_v30 = vrot.slane %v3770_v14, %v8874_v19  ;;  %7539 = vmatmul.mubr.msk.f32.gmra.mrb[8].mxu1 %vm1651_vm8, %v1319_v16  ;;  %v1320_v32 = vcombine.low %v990_v58, %v994_v60  ;;  %v318_v33 = vmul.f32 %v8852_v6, %v279_v41 }
  0x4c   : > { %12471 = vst [vmem:[#allocation38_spill] sm:$0xff] %v9151_v24  ;;  %12472 = vst [vmem:[#allocation39_spill] sm:$0xff] %v9155_v26  ;;  %v1000_v20 = vsel %vm8930_vm7, %v998_v27, %v999_v28  ;;  %v1001_v21 = vrot.slane %v999_v28, 2  ;;  %v1005_v34 = vrot.slane %v9155_v26, 7  ;;  %v1008_v36 = vrot.slane %v9151_v24, 7  ;;  %7541 = vmatprep.mubr.msk.f32.mxu1 %vm8745_vm0, %v12143_v3 }
  0x4d   : > { %v3785_v38 = vcombine.low %v3777_v37, %v3784_v30  ;;  %v1004_v44 = vrot.slane %v1002_v31, 2  ;;  %v1321_v46 = vcombine.low %v997_v62, %v1000_v20  ;;  %v9169_v61 = vrot.slane %v1320_v32, %v8874_v19  ;;  %v281_v30 = vld [vmem:[%s8858_s19 + $0x50] sm:$0xff] }
  0x4e   : > { %v1003_v58 = vsel %vm8930_vm7, %v1001_v21, %v1002_v31  ;;  %v1007_v60 = vrot.slane %v1005_v34, 2  ;;  %v357_v0 = vadd.f32 %v8863_v9, %v318_v33  ;;  %v9176_v1 = vcombine.high %v9151_v24, %v9151_v24  ;;  %v282_v21 = vld [vmem:[%s8858_s19 + $0x58] sm:$0xff] }
  0x4f   : > { %12473 = vst [vmem:[#allocation40_spill] sm:$0xff] %v9169_v61  ;;  %7844 = vmatmul.mubr.msk.f32.gmra.mrb[6].mxu0 %vm1651_vm8, %v3785_v38  ;;  %v1006_v62 = vsel %vm8930_vm7, %v1004_v44, %v1005_v34  ;;  %v3786_v12 = vcombine.low %v1000_v20, %v1003_v58  ;;  %v9183_v41 = vrot.slane %v1321_v46, %v8874_v19  ;;  %v1010_v14 = vrot.slane %v1008_v36, 2 }
  0x50   : > { %12474 = vst [vmem:[#allocation41_spill] sm:$0xff] %v9176_v1  ;;  %7846 = vmatprep.mubr.msk.f32.mxu0 %vm8745_vm0, %v12143_v3  ;;  %v1009_v37 = vsel %vm8930_vm7, %v1007_v60, %v1008_v36  ;;  %v389_v16 = vmax.f32 %v357_v0, 0.0  ;;  %v1011_v27 = vrot.slane %v9176_v1, 7  ;;  %v1337_v28 = vcombine.low %v1003_v58, %v1006_v62 }
  0x51   : > { %12475 = vst [vmem:[#allocation42_spill] sm:$0xff] %v9183_v41  ;;  %v3787_v31 = vcombine.low %v1006_v62, %v1009_v37  ;;  %v3794_v32 = vrot.slane %v3786_v12, %v8874_v19  ;;  %v1336_v33 = vcombine.low %v9169_v61, %v9183_v41  ;;  %v319_v20 = vmul.f32 %v8852_v6, %v280_v4 }
  0x52   : > { %v573_v34 = vcombine.high %v389_v16, %v389_v16  ;;  %v9197_v38 = vrot.slane %v389_v16, %v8874_v19  ;;  %v1012_v36 = vsel %vm8930_vm7, %v1010_v14, %v1011_v27  ;;  %v9202_v44 = vrot.slane %v1337_v28, %v8874_v19 }
  0x53   : > { %v3801_v46 = vrot.slane %v3787_v31, %v8874_v19  ;;  %7542 = vmatmul.mubr.msk.f32.gmra.mrb[10].mxu1 %vm1651_vm8, %v1336_v33  ;;  %v1338_v58 = vcombine.low %v1009_v37, %v1012_v36  ;;  %v358_v60 = vadd.f32 %v8863_v9, %v319_v20  ;;  %v320_v0 = vmul.f32 %v8852_v6, %v281_v30 }
  0x54   : > { %12476 = vst [vmem:[#allocation43_spill] sm:$0xff] %v9197_v38  ;;  %12477 = vst [vmem:[#allocation44_spill] sm:$0xff] %v9202_v44  ;;  %v9209_v4 = vrot.slane %v573_v34, %v8874_v19  ;;  %v9213_v62 = vcombine.high %v9197_v38, %v9197_v38  ;;  %v7025_v12 = vrot.slane %v9197_v38, 9  ;;  %7544 = vmatprep.mubr.msk.f32.mxu1 %vm8745_vm0, %v12143_v3 }
  0x55   : > { %v321_v14 = vmul.f32 %v8852_v6, %v282_v21  ;;  %v3802_v16 = vcombine.low %v3794_v32, %v3801_v46  ;;  %v9220_v37 = vrot.slane %v1338_v58, %v8874_v19  ;;  %v390_v27 = vmax.f32 %v358_v60, 0.0 }
  0x56   : > { %12478 = vst [vmem:[#allocation45_spill] sm:$0xff] %v9209_v4  ;;  %12479 = vst [vmem:[#allocation46_spill] sm:$0xff] %v9213_v62  ;;  %v359_v28 = vadd.f32 %v8863_v9, %v320_v0  ;;  %v9225_v30 = vcombine.high %v9209_v4, %v9209_v4  ;;  %v1015_v31 = vrot.slane %v9213_v62, 7  ;;  %v1018_v33 = vrot.slane %v9209_v4, 7 }
  0x57   : > { %12480 = vst [vmem:[#allocation47_spill] sm:$0xff] %v9220_v37  ;;  %v360_v20 = vadd.f32 %v8863_v9, %v321_v14  ;;  %7847 = vmatmul.mubr.msk.f32.gmra.mrb[8].mxu0 %vm1651_vm8, %v3802_v16  ;;  %v1353_v32 = vcombine.low %v9202_v44, %v9220_v37  ;;  %v590_v21 = vcombine.high %v390_v27, %v390_v27  ;;  %v12485_v37 = vmov 0.0  }
  0x58   : > { %12481 = vst [vmem:[#allocation48_spill] sm:$0xff] %v9225_v30  ;;  %v9234_v34 = vrot.slane %v390_v27, %v8874_v19  ;;  %v391_v46 = vmax.f32 %v359_v28, 0.0  ;;  %7849 = vmatprep.mubr.msk.f32.mxu0 %vm8745_vm0, %v12143_v3  ;;  %v1016_v58 = vsel %vm8930_vm7, %v7025_v12, %v1015_v31  ;;  %v1017_v60 = vrot.slane %v1015_v31, 2 }
  0x59   : > { %v1020_v0 = vrot.slane %v1018_v33, 2  ;;  %v1021_v14 = vrot.slane %v9225_v30, 7  ;;  %v3803_v18 = vcombine.low %v1012_v36, %v1016_v58  ;;  %7545 = vmatmul.mubr.msk.f32.gmra.mrb[12].mxu1 %vm1651_vm8, %v1353_v32  ;;  %v9243_v16 = vrot.slane %v590_v21, %v8874_v19 }
  0x5a   : > { %12482 = vst [vmem:[#allocation49_spill] sm:$0xff] %v9234_v34  ;;  %v9247_v27 = vcombine.high %v9234_v34, %v9234_v34  ;;  %v1024_v28 = vrot.slane %v9234_v34, 7  ;;  %v1019_v3 = vsel %vm8930_vm7, %v1017_v60, %v1018_v33  ;;  %7547 = vmatprep.mubr.msk.f32.mxu1 %vm8745_vm0, %v12485_v37  ;;  %v392_v36 = vmax.f32 %v360_v20, 0.0 }
  0x5b   : > { %12483 = vst [vmem:[#allocation50_spill] sm:$0xff] %v9243_v16  ;;  %v1022_v12 = vsel %vm8930_vm7, %v1020_v0, %v1021_v14  ;;  %v1023_v31 = vrot.slane %v1021_v14, 2  ;;  %v3811_v21 = vrot.slane %v3803_v18, %v8874_v19  ;;  %v9259_v41 = vcombine.high %v9243_v16, %v9243_v16 }
  0x5c   : > { %12484 = vst [vmem:[#allocation51_spill] sm:$0xff] %v9247_v27  ;;  %v3804_v32 = vcombine.low %v1019_v3, %v1022_v12  ;;  %v1026_v44 = vrot.slane %v1024_v28, 2  ;;  %v1027_v33 = vrot.slane %v9247_v27, 7  ;;  %v1030_v60 = vrot.slane %v9243_v16, 7 }
  0x5d   : > { %v1025_v8 = vsel %vm8930_vm7, %v1023_v31, %v1024_v28  ;;  %v1354_v0 = vcombine.low %v1016_v58, %v1019_v3  ;;  %v1033_v20 = vrot.slane %v9259_v41, 7  ;;  %v606_v5 = vcombine.high %v391_v46, %v391_v46 }
  0x5e   : > { %v3818_v14 = vrot.slane %v3804_v32, %v8874_v19  ;;  %v1355_v61 = vcombine.low %v1022_v12, %v1025_v8  ;;  %v1028_v18 = vsel %vm8930_vm7, %v1026_v44, %v1027_v33  ;;  %v1029_v22 = vrot.slane %v1027_v33, 2 }
  0x5f   : > { %v1032_v1 = vrot.slane %v1030_v60, 2  ;;  %v9270_v52 = vrot.slane %v1354_v0, %v8874_v19  ;;  %v3820_v31 = vcombine.low %v1025_v8, %v1028_v18  ;;  %v9276_v3 = vrot.slane %v391_v46, %v8874_v19 }
  0x60   : > { %v3819_v28 = vcombine.low %v3811_v21, %v3818_v14  ;;  %v9273_v62 = vrot.slane %v1355_v61, %v8874_v19  ;;  %v1031_v58 = vsel %vm8930_vm7, %v1029_v22, %v1030_v60  ;;  %v9283_v12 = vrot.slane %v606_v5, %v8874_v19  ;;  %v283_v22 = vld [vmem:[%s8858_s19 + $0x60] sm:$0xff] }
  0x61   : > { %12486 = vst [vmem:[#allocation52_spill] sm:$0xff] %v9270_v52  ;;  %12488 = vst [vmem:[#allocation54_spill] sm:$0xff] %v9276_v3  ;;  %v1034_v44 = vsel %vm8930_vm7, %v1032_v1, %v1033_v20  ;;  %v623_v32 = vcombine.high %v392_v36, %v392_v36  ;;  %v3828_v8 = vrot.slane %v3820_v31, %v8874_v19  ;;  %v7026_v60 = vrot.slane %v9276_v3, 9 }
  0x62   : > { %12487 = vst [vmem:[#allocation53_spill] sm:$0xff] %v9273_v62  ;;  %12489 = vst [vmem:[#allocation55_spill] sm:$0xff] %v9283_v12  ;;  %7850 = vmatmul.mubr.msk.f32.gmra.mrb[10].mxu0 %vm1651_vm8, %v3819_v28  ;;  %v3821_v21 = vcombine.low %v1031_v58, %v1034_v44  ;;  %v1370_v61 = vcombine.low %v9270_v52, %v9273_v62  ;;  %v9291_v46 = vcombine.high %v9276_v3, %v9276_v3 }
  0x63   : > { %7852 = vmatprep.mubr.msk.f32.mxu0 %vm8745_vm0, %v12485_v37  ;;  %v9298_v5 = vcombine.high %v9283_v12, %v9283_v12  ;;  %v9301_v1 = vrot.slane %v392_v36, %v8874_v19  ;;  %v9304_v33 = vrot.slane %v623_v32, %v8874_v19  ;;  %v1040_v20 = vrot.slane %v9283_v12, 7 }
  0x64   : > { %12490 = vst [vmem:[#allocation56_spill] sm:$0xff] %v9291_v46  ;;  %v3835_v0 = vrot.slane %v3821_v21, %v8874_v19  ;;  %7548 = vmatmul.mubr.msk.f32.gmra.mrb[14].mxu1 %vm1651_vm8, %v1370_v61  ;;  %v1037_v14 = vrot.slane %v9291_v46, 7  ;;  %v1371_v28 = vcombine.low %v1028_v18, %v1031_v58  ;;  %v322_v36 = vmul.f32 %v8852_v6, %v283_v22 }
  0x65   : > { %12491 = vst [vmem:[#allocation57_spill] sm:$0xff] %v9298_v5  ;;  %12492 = vst [vmem:[#allocation58_spill] sm:$0xff] %v9301_v1  ;;  %v1043_v31 = vrot.slane %v9298_v5, 7  ;;  %v1046_v62 = vrot.slane %v9301_v1, 7  ;;  %7550 = vmatprep.mubr.msk.f32.mxu1 %vm8745_vm0, %v12485_v37  ;;  %v9318_v32 = vcombine.high %v9301_v1, %v9301_v1  ;;  %v1042_v3 = vrot.slane %v1040_v20, 2 }
  0x66   : > { %12493 = vst [vmem:[#allocation59_spill] sm:$0xff] %v9304_v33  ;;  %v3836_v21 = vcombine.low %v3828_v8, %v3835_v0  ;;  %v1038_v61 = vsel %vm8930_vm7, %v7026_v60, %v1037_v14  ;;  %v1039_v52 = vrot.slane %v1037_v14, 2  ;;  %v9323_v15 = vrot.slane %v1371_v28, %v8874_v19 }
  0x67   : > { %12494 = vst [vmem:[#allocation60_spill] sm:$0xff] %v9318_v32  ;;  %v1045_v18 = vrot.slane %v1043_v31, 2  ;;  %v1372_v58 = vcombine.low %v1034_v44, %v1038_v61  ;;  %v361_v7 = vadd.f32 %v8863_v9, %v322_v36  ;;  %v1044_v8 = vsel %vm8930_vm7, %v1042_v3, %v1043_v31 }
  0x68   : > { %12495 = vst [vmem:[#allocation61_spill] sm:$0xff] %v9323_v15  ;;  %7853 = vmatmul.mubr.msk.f32.gmra.mrb[12].mxu0 %vm1651_vm8, %v3836_v21  ;;  %v1041_v22 = vsel %vm8930_vm7, %v1039_v52, %v1040_v20  ;;  %v9333_v60 = vcombine.high %v9304_v33, %v9304_v33  ;;  %v1048_v0 = vrot.slane %v1046_v62, 2  ;;  %v1049_v3 = vrot.slane %v9318_v32, 7 }
  0x69   : > { %7855 = vmatprep.mubr.msk.f32.mxu0 %vm8745_vm0, %v12485_v37  ;;  %v1047_v44 = vsel %vm8930_vm7, %v1045_v18, %v1046_v62  ;;  %v3837_v14 = vcombine.low %v1038_v61, %v1041_v22  ;;  %v9340_v28 = vrot.slane %v1372_v58, %v8874_v19  ;;  %v393_v52 = vmax.f32 %v361_v7, 0.0  ;;  %v284_v18 = vld [vmem:[%s8858_s19 + $0x68] sm:$0xff] }
  0x6a   : > { %12496 = vst [vmem:[#allocation62_spill] sm:$0xff] %v9333_v60  ;;  %v3838_v20 = vcombine.low %v1044_v8, %v1047_v44  ;;  %v1052_v31 = vrot.slane %v9304_v33, 7  ;;  %v1055_v36 = vrot.slane %v9333_v60, 7  ;;  %v1388_v61 = vcombine.low %v1041_v22, %v1044_v8  ;;  %v285_v22 = vld [vmem:[%s8858_s19 + $0x70] sm:$0xff]  ;;  %v286_v8 = vld [vmem:[%s8858_s19 + $0x78] sm:$0xff] }
  0x6b   : > { %12497 = vst [vmem:[#allocation63_spill] sm:$0xff] %v9340_v28  ;;  %v3845_v21 = vrot.slane %v3837_v14, %v8874_v19  ;;  %v1387_v2 = vcombine.low %v9323_v15, %v9340_v28  ;;  %v9349_v62 = vrot.slane %v393_v52, %v8874_v19  ;;  %v1050_v58 = vsel %vm8930_vm7, %v1048_v0, %v1049_v3 }
  0x6c   : > { %v3852_v7 = vrot.slane %v3838_v20, %v8874_v19  ;;  %v1051_v47 = vrot.slane %v1049_v3, 2  ;;  %v1054_v45 = vrot.slane %v1052_v31, 2  ;;  %v1389_v15 = vcombine.low %v1047_v44, %v1050_v58 }
  0x6d   : > { %12498 = vst [vmem:[#allocation64_spill] sm:$0xff] %v9349_v62  ;;  %7551 = vmatmul.mubr.msk.f32.gmra.mrb[16].mxu1 %vm1651_vm8, %v1387_v2  ;;  %v9358_v14 = vcombine.high %v9349_v62, %v9349_v62  ;;  %v7027_v28 = vrot.slane %v9349_v62, 9  ;;  %v9362_v60 = vrot.slane %v1388_v61, %v8874_v19  ;;  %v323_v2 = vmul.f32 %v8852_v6, %v284_v18 }
  0x6e   : > { %v3853_v20 = vcombine.low %v3845_v21, %v3852_v7  ;;  %v1053_v0 = vsel %vm8930_vm7, %v1051_v47, %v1052_v31  ;;  %v1056_v3 = vsel %vm8930_vm7, %v1054_v45, %v1055_v36  ;;  %7553 = vmatprep.mubr.msk.f32.mxu1 %vm8745_vm0, %v12485_v37  ;;  %v9375_v61 = vrot.slane %v1389_v15, %v8874_v19  ;;  %v287_v7 = vld [vmem:[%s8858_s19 + $0x80] sm:$0xff] }
  0x6f   : > { %12499 = vst [vmem:[#allocation65_spill] sm:$0xff] %v9358_v14  ;;  %12500 = vst [vmem:[#allocation66_spill] sm:$0xff] %v9362_v60  ;;  %v1059_v44 = vrot.slane %v9358_v14, 7  ;;  %v3854_v17 = vcombine.low %v1050_v58, %v1053_v0  ;;  %v639_v50 = vcombine.high %v393_v52, %v393_v52  ;;  %v362_v47 = vadd.f32 %v8863_v9, %v323_v2 }
  0x70   : > { %12501 = vst [vmem:[#allocation67_spill] sm:$0xff] %v9375_v61  ;;  %7856 = vmatmul.mubr.msk.f32.gmra.mrb[14].mxu0 %vm1651_vm8, %v3853_v20  ;;  %v1405_v31 = vcombine.low %v1053_v0, %v1056_v3  ;;  %v324_v45 = vmul.f32 %v8852_v6, %v285_v22  ;;  %v325_v36 = vmul.f32 %v8852_v6, %v286_v8 }
  0x71   : > { %7858 = vmatprep.mubr.msk.f32.mxu0 %vm8745_vm0, %v12485_v37  ;;  %v1060_v21 = vsel %vm8930_vm7, %v7027_v28, %v1059_v44  ;;  %v3862_v18 = vrot.slane %v3854_v17, %v8874_v19  ;;  %v1404_v15 = vcombine.low %v9362_v60, %v9375_v61  ;;  %v9389_v52 = vrot.slane %v639_v50, %v8874_v19 }
  0x72   : > { %v3855_v58 = vcombine.low %v1056_v3, %v1060_v21  ;;  %v394_v20 = vmax.f32 %v362_v47, 0.0  ;;  %v1061_v22 = vrot.slane %v1059_v44, 2  ;;  %v9393_v8 = vrot.slane %v1405_v31, %v8874_v19 }
  0x73   : > { %12502 = vst [vmem:[#allocation68_spill] sm:$0xff] %v9389_v52  ;;  %7554 = vmatmul.mubr.msk.f32.gmra.mrb[18].mxu1 %vm1651_vm8, %v1404_v15  ;;  %v9398_v28 = vcombine.high %v9389_v52, %v9389_v52  ;;  %v1062_v17 = vrot.slane %v9389_v52, 7  ;;  %v363_v0 = vadd.f32 %v8863_v9, %v324_v45  ;;  %v364_v50 = vadd.f32 %v8863_v9, %v325_v36 }
  0x74   : > { %12503 = vst [vmem:[#allocation69_spill] sm:$0xff] %v9393_v8  ;;  %v3869_v2 = vrot.slane %v3855_v58, %v8874_v19  ;;  %v656_v3 = vcombine.high %v394_v20, %v394_v20  ;;  %v9405_v44 = vrot.slane %v394_v20, %v8874_v19  ;;  %7556 = vmatprep.mubr.msk.f32.mxu1 %vm8745_vm0, %v12485_v37 }
  0x75   : > { %12504 = vst [vmem:[#allocation70_spill] sm:$0xff] %v9398_v28  ;;  %v9410_v47 = vmul.f32 %v8852_v6, %v287_v7  ;;  %v1063_v31 = vsel %vm8930_vm7, %v1061_v22, %v1062_v17  ;;  %v1064_v15 = vrot.slane %v1062_v17, 2  ;;  %v1065_v45 = vrot.slane %v9398_v28, 7 }
  0x76   : > { %12505 = vst [vmem:[#allocation71_spill] sm:$0xff] %v9405_v44  ;;  %v395_v61 = vmax.f32 %v363_v0, 0.0  ;;  %v3870_v36 = vcombine.low %v3862_v18, %v3869_v2  ;;  %v9416_v58 = vrot.slane %v656_v3, %v8874_v19  ;;  %v9420_v20 = vcombine.high %v9405_v44, %v9405_v44 }
  0x77   : > { %v1068_v60 = vrot.slane %v9405_v44, 7  ;;  %v1066_v6 = vsel %vm8930_vm7, %v1064_v15, %v1065_v45  ;;  %v1067_v7 = vrot.slane %v1065_v45, 2  ;;  %v1406_v14 = vcombine.low %v1060_v21, %v1063_v31 }
  0x78   : > { %12506 = vst [vmem:[#allocation72_spill] sm:$0xff] %v9416_v58  ;;  %12507 = vst [vmem:[#allocation73_spill] sm:$0xff] %v9420_v20  ;;  %v672_v22 = vcombine.high %v395_v61, %v395_v61  ;;  %7859 = vmatmul.mubr.msk.f32.gmra.mrb[16].mxu0 %vm1651_vm8, %v3870_v36  ;;  %v1071_v18 = vrot.slane %v9420_v20, 7  ;;  %v3871_v0 = vcombine.low %v1063_v31, %v1066_v6 }
  0x79   : > { %v1070_v17 = vrot.slane %v1068_v60, 2  ;;  %v9428_v2 = vrot.slane %v395_v61, %v8874_v19  ;;  %7861 = vmatprep.mubr.msk.f32.mxu0 %vm8745_vm0, %v12485_v37  ;;  %v1069_v3 = vsel %vm8930_vm7, %v1067_v7, %v1068_v60  ;;  %v9435_v15 = vrot.slane %v1406_v14, %v8874_v19 }
  0x7a   : > { %v9438_v21 = vrot.slane %v672_v22, %v8874_v19  ;;  %v9442_v45 = vcombine.high %v9416_v58, %v9416_v58  ;;  %v3879_v31 = vrot.slane %v3871_v0, %v8874_v19  ;;  %v1073_v60 = vrot.slane %v1071_v18, 2 }
  0x7b   : > { %12508 = vst [vmem:[#allocation74_spill] sm:$0xff] %v9428_v2  ;;  %12509 = vst [vmem:[#allocation75_spill] sm:$0xff] %v9435_v15  ;;  %v1072_v61 = vsel %vm8930_vm7, %v1070_v17, %v1071_v18  ;;  %v9449_v36 = vcombine.high %v9428_v2, %v9428_v2  ;;  %v1421_v14 = vcombine.low %v9393_v8, %v9435_v15  ;;  %v1074_v22 = vrot.slane %v9416_v58, 7 }
  0x7c   : > { %12510 = vst [vmem:[#allocation76_spill] sm:$0xff] %v9438_v21  ;;  %12511 = vst [vmem:[#allocation77_spill] sm:$0xff] %v9442_v45  ;;  %v3872_v7 = vcombine.low %v1069_v3, %v1072_v61  ;;  %v1077_v59 = vrot.slane %v9442_v45, 7  ;;  %v7028_v43 = vrot.slane %v9428_v2, 9  ;;  %v1084_v17 = vrot.slane %v9438_v21, 7 }
  0x7d   : > { %12512 = vst [vmem:[#allocation78_spill] sm:$0xff] %v9449_v36  ;;  %v1081_v51 = vrot.slane %v9449_v36, 7  ;;  %v1422_v0 = vcombine.low %v1066_v6, %v1069_v3  ;;  %7557 = vmatmul.mubr.msk.f32.gmra.mrb[20].mxu1 %vm1651_vm8, %v1421_v14  ;;  %v1075_v18 = vsel %vm8930_vm7, %v1073_v60, %v1074_v22  ;;  %v1076_v20 = vrot.slane %v1074_v22, 2 }
  0x7e   : > { %v3886_v44 = vrot.slane %v3872_v7, %v8874_v19  ;;  %v396_v15 = vmax.f32 %v364_v50, 0.0  ;;  %7559 = vmatprep.mubr.msk.f32.mxu1 %vm8745_vm0, %v12485_v37  ;;  %v1423_v2 = vcombine.low %v1072_v61, %v1075_v18  ;;  %v9473_v60 = vcombine.high %v9438_v21, %v9438_v21 }
  0x7f   : > { %v1082_v8 = vsel %vm8930_vm7, %v7028_v43, %v1081_v51  ;;  %v1083_v58 = vrot.slane %v1081_v51, 2  ;;  %v9467_v45 = vrot.slane %v1422_v0, %v8874_v19  ;;  %v1078_v3 = vsel %vm8930_vm7, %v1076_v20, %v1077_v59 }
  0x80   : > { %v3887_v6 = vcombine.low %v3879_v31, %v3886_v44  ;;  %12514 = vst [vmem:[#allocation80_spill] sm:$0xff] %v9473_v60  ;;  %v689_v50 = vcombine.high %v396_v15, %v396_v15  ;;  %v3888_v51 = vcombine.low %v1075_v18, %v1078_v3  ;;  %v9478_v7 = vrot.slane %v1423_v2, %v8874_v19 }
  0x81   : > { %12513 = vst [vmem:[#allocation79_spill] sm:$0xff] %v9467_v45  ;;  %v1085_v43 = vsel %vm8930_vm7, %v1083_v58, %v1084_v17  ;;  %v9481_v61 = vrot.slane %v396_v15, %v8874_v19  ;;  %v1086_v20 = vrot.slane %v1084_v17, 2  ;;  %v1087_v31 = vrot.slane %v9473_v60, 7 }
  0x82   : > { %12515 = vst [vmem:[#allocation81_spill] sm:$0xff] %v9478_v7  ;;  %7862 = vmatmul.mubr.msk.f32.gmra.mrb[18].mxu0 %vm1651_vm8, %v3887_v6  ;;  %v3889_v44 = vcombine.low %v1082_v8, %v1085_v43  ;;  %v9485_v59 = vrot.slane %v689_v50, %v8874_v19  ;;  %v3896_v58 = vrot.slane %v3888_v51, %v8874_v19 }
  0x83   : > { %12516 = vst [vmem:[#allocation82_spill] sm:$0xff] %v9481_v61  ;;  %7864 = vmatprep.mubr.msk.f32.mxu0 %vm8745_vm0, %v12485_v37  ;;  %v1438_v2 = vcombine.low %v9467_v45, %v9478_v7  ;;  %v9495_v15 = vcombine.high %v9481_v61, %v9481_v61  ;;  %v1090_v14 = vrot.slane %v9481_v61, 7  ;;  %v1088_v17 = vsel %vm8930_vm7, %v1086_v20, %v1087_v31 }
  0x84   : > { %12517 = vst [vmem:[#allocation83_spill] sm:$0xff] %v9485_v59  ;;  %v3903_v22 = vrot.slane %v3889_v44, %v8874_v19  ;;  %v1089_v0 = vrot.slane %v1087_v31, 2  ;;  %v1096_v18 = vrot.slane %v9485_v59, 7  ;;  %v1439_v51 = vcombine.low %v1078_v3, %v1082_v8 }
  0x85   : > { %12518 = vst [vmem:[#allocation84_spill] sm:$0xff] %v9495_v15  ;;  %7560 = vmatmul.mubr.msk.f32.gmra.mrb[22].mxu1 %vm1651_vm8, %v1438_v2  ;;  %v1092_v6 = vrot.slane %v1090_v14, 2  ;;  %v1093_v50 = vrot.slane %v9495_v15, 7  ;;  %v1440_v7 = vcombine.low %v1085_v43, %v1088_v17  ;;  %v365_v44 = vadd.f32 %v8863_v9, %v9410_v47 }
  0x86   : > { %v3904_v45 = vcombine.low %v3896_v58, %v3903_v22  ;;  %v1091_v60 = vsel %vm8930_vm7, %v1089_v0, %v1090_v14  ;;  %7562 = vmatprep.mubr.msk.f32.mxu1 %vm8745_vm0, %v12485_v37  ;;  %v9512_v20 = vcombine.high %v9485_v59, %v9485_v59  ;;  %v9517_v3 = vrot.slane %v1439_v51, %v8874_v19  ;;  %v288_v51 = vld [vmem:[%s8858_s19 + $0x88] sm:$0xff] }
  0x87   : > { %v1094_v31 = vsel %vm8930_vm7, %v1092_v6, %v1093_v50  ;;  %v1095_v2 = vrot.slane %v1093_v50, 2  ;;  %v3905_v8 = vcombine.low %v1088_v17, %v1091_v60  ;;  %v9521_v43 = vrot.slane %v1440_v7, %v8874_v19 }
  0x88   : > { %12519 = vst [vmem:[#allocation85_spill] sm:$0xff] %v9512_v20  ;;  %12520 = vst [vmem:[#allocation86_spill] sm:$0xff] %v9517_v3  ;;  %7865 = vmatmul.mubr.msk.f32.gmra.mrb[20].mxu0 %vm1651_vm8, %v3904_v45  ;;  %v397_v58 = vmax.f32 %v365_v44, 0.0  ;;  %v1098_v9 = vrot.slane %v1096_v18, 2  ;;  %v1099_v47 = vrot.slane %v9512_v20, 7  ;;  %v1456_v17 = vcombine.low %v1091_v60, %v1094_v31 }
  0x89   : > { %12521 = vst [vmem:[#allocation87_spill] sm:$0xff] %v9521_v43  ;;  %7867 = vmatprep.mubr.msk.f32.mxu0 %vm8745_vm0, %v12485_v37  ;;  %v1097_v14 = vsel %vm8930_vm7, %v1095_v2, %v1096_v18  ;;  %v3913_v22 = vrot.slane %v3905_v8, %v8874_v19  ;;  %v1926_v0 = vcombine.low %v8939_v56, %v8935_v55 }
  0x8a   : > { %v3906_v45 = vcombine.low %v1094_v31, %v1097_v14  ;;  %v1455_v7 = vcombine.low %v9517_v3, %v9521_v43  ;;  %v705_v6 = vcombine.high %v397_v58, %v397_v58  ;;  %v9534_v50 = vrot.slane %v397_v58, %v8874_v19 }
  0x8b   : > { %v1100_v44 = vsel %vm8930_vm7, %v1098_v9, %v1099_v47  ;;  %v9540_v18 = vrot.slane %v1456_v17, %v8874_v19  ;;  %v1927_v60 = vcombine.low %v8954_v63, %v8918_v49  ;;  %v1934_v47 = vrot.slane %v1926_v0, %v8874_v19 }
  0x8c   : > { %12522 = vst [vmem:[#allocation88_spill] sm:$0xff] %v9534_v50  ;;  %v3920_v2 = vrot.slane %v3906_v45, %v8874_v19  ;;  %7563 = vmatmul.mubr.msk.f32.gmra.mrb[24].mxu1 %vm1651_vm8, %v1455_v7  ;;  %v9547_v31 = vrot.slane %v705_v6, %v8874_v19  ;;  %v9551_v8 = vcombine.high %v9534_v50, %v9534_v50  ;;  %v7029_v58 = vrot.slane %v9534_v50, 9  ;;  %v9561_v45 = vld [vmem:[%s12137_s1] ss:$0 sm:$0xff] }
  0x8d   : > { %12523 = vst [vmem:[#allocation89_spill] sm:$0xff] %v9540_v18  ;;  %7565 = vmatprep.mubr.msk.f32.mxu1 %vm8745_vm0, %v12485_v37  ;;  %v1457_v9 = vcombine.low %v1097_v14, %v1100_v44  ;;  %v1941_v17 = vrot.slane %v1927_v60, %v8874_v19  ;;  %v327_v7 = vmul.f32 %v9561_v45, %v288_v51  ;;  %v9576_v60 = vld [vmem:[%s12138_s2] ss:$0 sm:$0xff]  ;;  %v289_v51 = vld [vmem:[%s8858_s19 + $0x90] sm:$0xff] }
  0x8e   : > { %12524 = vst [vmem:[#allocation90_spill] sm:$0xff] %v9547_v31  ;;  %12525 = vst [vmem:[#allocation91_spill] sm:$0xff] %v9551_v8  ;;  %v3921_v6 = vcombine.low %v3913_v22, %v3920_v2  ;;  %v9566_v56 = vcombine.high %v9547_v31, %v9547_v31  ;;  %v1103_v43 = vrot.slane %v9551_v8, 7  ;;  %v1106_v14 = vrot.slane %v9547_v31, 7 }
  0x8f   : > { %v9571_v0 = vrot.slane %v1457_v9, %v8874_v19  ;;  %v366_v3 = vadd.f32 %v9576_v60, %v327_v7  ;;  %v1943_v22 = vcombine.low %v8994_v42, %v8942_v57  ;;  %v9590_v63 = vcombine.low %v1934_v47, %v1941_v17 }
  0x90   : > { %12526 = vst [vmem:[#allocation92_spill] sm:$0xff] %v9566_v56  ;;  %7868 = vmatmul.mubr.msk.f32.gmra.mrb[22].mxu0 %vm1651_vm8, %v3921_v6  ;;  %v1104_v2 = vsel %vm8930_vm7, %v7029_v58, %v1103_v43  ;;  %v1105_v20 = vrot.slane %v1103_v43, 2  ;;  %v1108_v49 = vrot.slane %v1106_v14, 2  ;;  %v1109_v9 = vrot.slane %v9566_v56, 7 }
  0x91   : > { %12527 = vst [vmem:[#allocation93_spill] sm:$0xff] %v9571_v0  ;;  %7870 = vmatprep.mubr.msk.f32.mxu0 %vm8745_vm0, %v12485_v37  ;;  %v3922_v55 = vcombine.low %v1100_v44, %v1104_v2  ;;  %v1472_v7 = vcombine.low %v9540_v18, %v9571_v0  ;;  %v398_v42 = vmax.f32 %v366_v3, 0.0  ;;  %v328_v8 = vmul.f32 %v9561_v45, %v289_v51 }
  0x92   : > { %v1107_v6 = vsel %vm8930_vm7, %v1105_v20, %v1106_v14  ;;  %v1110_v58 = vsel %vm8930_vm7, %v1108_v49, %v1109_v9  ;;  %v1111_v43 = vrot.slane %v1109_v9, 2  ;;  %v7173_v49 = vcombine.high %v8942_v57, %v8999_v48 }
  0x93   : > { %v3923_v50 = vcombine.low %v1107_v6, %v1110_v58  ;;  %v3930_v31 = vrot.slane %v3922_v55, %v8874_v19  ;;  %7566 = vmatmul.mubr.msk.f32.gmra.mrb[26].mxu1 %vm1651_vm8, %v1472_v7  ;;  %v722_v44 = vcombine.high %v398_v42, %v398_v42  ;;  %v9600_v47 = vrot.slane %v398_v42, %v8874_v19 }
  0x94   : > { %7568 = vmatprep.mubr.msk.f32.mxu1 %vm8745_vm0, %v12485_v37  ;;  %v1473_v20 = vcombine.low %v1104_v2, %v1107_v6  ;;  %v367_v3 = vadd.f32 %v9576_v60, %v328_v8  ;;  %v1960_v17 = vcombine.low %v9049_v29, %v9065_v53  ;;  %v9622_v9 = vrot.slane %v1943_v22, %v8874_v19 }
  0x95   : > { %12528 = vst [vmem:[#allocation94_spill] sm:$0xff] %v9600_v47  ;;  %v3937_v55 = vrot.slane %v3923_v50, %v8874_v19  ;;  %v9611_v14 = vrot.slane %v722_v44, %v8874_v19  ;;  %v1112_v42 = vrot.slane %v9600_v47, 7  ;;  %v9616_v51 = vcombine.high %v9600_v47, %v9600_v47  ;;  %v290_v50 = vld [vmem:[%s8858_s19 + $0x98] sm:$0xff] }
  0x96   : > { %v9619_v2 = vrot.slane %v1473_v20, %v8874_v19  ;;  %v399_v8 = vmax.f32 %v367_v3, 0.0  ;;  %v1961_v7 = vcombine.low %v9055_v39, %v9070_v40 }
  0x97   : > { %12529 = vst [vmem:[#allocation95_spill] sm:$0xff] %v9616_v51  ;;  %v3938_v6 = vcombine.low %v3930_v31, %v3937_v55  ;;  %v9629_v44 = vsel %vm8930_vm7, %v1111_v43, %v1112_v42  ;;  %v9633_v0 = vcombine.high %v9611_v14, %v9611_v14  ;;  %v1114_v18 = vrot.slane %v1112_v42, 2 }
  0x98   : > { %12530 = vst [vmem:[#allocation96_spill] sm:$0xff] %v9619_v2  ;;  %12531 = vst [vmem:[#allocation97_spill] sm:$0xff] %v9629_v44  ;;  %v1474_v20 = vcombine.low %v1110_v58, %v9629_v44  ;;  %v9637_v22 = vrot.slane %v399_v8, %v8874_v19  ;;  %v1115_v3 = vrot.slane %v9616_v51, 7  ;;  %v1118_v40 = vrot.slane %v9611_v14, 7 }
  0x99   : > { %7871 = vmatmul.mubr.msk.f32.gmra.mrb[24].mxu0 %vm1651_vm8, %v3938_v6  ;;  %v4408_v31 = vrot.slane %v7173_v49, %v8874_v19  ;;  %v1121_v43 = vrot.slane %v9633_v0, 7  ;;  %v9645_v55 = vrot.slane %v1960_v17, %v8874_v19  ;;  %v329_v42 = vmul.f32 %v9561_v45, %v290_v50  ;;  %v7205_v17 = vld [vmem:[%s12139_s3 + $0x30] sm:$0xff] }
  0x9a   : > { %12532 = vst [vmem:[#allocation98_spill] sm:$0xff] %v9637_v22  ;;  %7911 = vmatprep.mubr.msk.f32.mxu0 %vm8745_vm0, %v12485_v37  ;;  %v9651_v58 = vrot.slane %v1474_v20, %v8874_v19  ;;  %v9655_v57 = vcombine.high %v9637_v22, %v9637_v22  ;;  %v9659_v49 = vsel %vm8930_vm7, %v1114_v18, %v1115_v3  ;;  %v1117_v6 = vrot.slane %v1115_v3, 2 }
  0x9b   : > { %12533 = vst [vmem:[#allocation99_spill] sm:$0xff] %v9645_v55  ;;  %12536 = vst [vmem:[#allocation102_spill] sm:$0xff] %v9659_v49  ;;  %v1120_v50 = vrot.slane %v1118_v40, 2  ;;  %v7030_v53 = vrot.slane %v9637_v22, 9  ;;  %v9668_v39 = vrot.slane %v1961_v7, %v8874_v19  ;;  %v368_v48 = vadd.f32 %v9576_v60, %v329_v42 }
  0x9c   : > { %12534 = vst [vmem:[#allocation100_spill] sm:$0xff] %v9651_v58  ;;  %12535 = vst [vmem:[#allocation101_spill] sm:$0xff] %v9655_v57  ;;  %v1489_v29 = vcombine.low %v9619_v2, %v9651_v58  ;;  %v9674_v18 = vsel %vm8930_vm7, %v1117_v6, %v1118_v40  ;;  %v1125_v3 = vrot.slane %v9655_v57, 7  ;;  %v4409_v22 = vcombine.low %v9622_v9, %v4408_v31 }
  0x9d   : > { %12537 = vst [vmem:[#allocation103_spill] sm:$0xff] %v9668_v39  ;;  %12538 = vst [vmem:[#allocation104_spill] sm:$0xff] %v9674_v18  ;;  %7912 = vmatmul.mubr.msk.f32.vlgmr.msra.gmra.mrb[0].mxu0 %vm1651_vm8, %v9590_v63  ;;  %v9683_v7 = vsel %vm8930_vm7, %v1120_v50, %v1121_v43  ;;  %v1490_v20 = vcombine.low %v9659_v49, %v9674_v18  ;;  %v738_v58 = vcombine.high %v399_v8, %v399_v8 }
  0x9e   : > { %12539 = vst [vmem:[#allocation105_spill] sm:$0xff] %v9683_v7  ;;  %7987 = vmatpush3.msra.mxu0 %v7205_v17  ;;  %7914 = vmatprep.mubr.msk.f32.mxu0 %vm8745_vm0, %v12485_v37  ;;  %v9691_v40 = vsel %vm8930_vm7, %v7030_v53, %v1125_v3  ;;  %v400_v31 = vmax.f32 %v368_v48, 0.0  ;;  %v1127_v6 = vrot.slane %v1125_v3, 2  ;;  %v1978_v53 = vcombine.low %v9106_v25, %v9100_v23  ;;  %v291_v25 = vld [vmem:[%s8858_s19 + $0xa0] sm:$0xff] }
  0x9f   : > { %12540 = vst [vmem:[#allocation106_spill] sm:$0xff] %v9691_v40  ;;  %7569 = vmatmul.mubr.msk.f32.gmra.mrb[28].mxu1 %vm1651_vm8, %v1489_v29  ;;  %v1491_v43 = vcombine.low %v9683_v7, %v9691_v40  ;;  %v9699_v8 = vrot.slane %v1490_v20, %v8874_v19  ;;  %v9702_v17 = vrot.slane %v738_v58, %v8874_v19 }
  0xa0   : > { %7571 = vmatprep.mubr.msk.f32.mxu1 %vm8745_vm0, %v12485_v37  ;;  %v9710_v48 = vcombine.low %v9645_v55, %v9668_v39  ;;  %v755_v29 = vcombine.high %v400_v31, %v400_v31  ;;  %v9713_v50 = vrot.slane %v400_v31, %v8874_v19  ;;  %v4410_v20 = vcombine.low %v9058_v35, %v9090_v10 }
  0xa1   : > { %12541 = vst [vmem:[#allocation107_spill] sm:$0xff] %v9699_v8  ;;  %12542 = vst [vmem:[#allocation108_spill] sm:$0xff] %v9702_v17  ;;  %7915 = vmatmul.mubr.msk.f32.gmra.mrb[2].mxu0 %vm1651_vm8, %v4409_v22  ;;  %v9719_v58 = vrot.slane %v1491_v43, %v8874_v19  ;;  %v9723_v3 = vcombine.high %v9702_v17, %v9702_v17  ;;  %v1128_v42 = vrot.slane %v9702_v17, 7  ;;  %8063 = vmatprep.subr.mxu0 %v12485_v37 }
  0xa2   : > { %12543 = vst [vmem:[#allocation109_spill] sm:$0xff] %v9710_v48  ;;  %12544 = vst [vmem:[#allocation110_spill] sm:$0xff] %v9713_v50  ;;  %v9727_v40 = vrot.slane %v1978_v53, %v8874_v19  ;;  %7917 = vmatprep.mubr.msk.f32.mxu0 %vm8745_vm0, %v12485_v37  ;;  %v9734_v10 = vrot.slane %v755_v29, %v8874_v19  ;;  %v9738_v22 = vcombine.high %v9713_v50, %v9713_v50 }
  0xa3   : > { %12545 = vst [vmem:[#allocation111_spill] sm:$0xff] %v9719_v58  ;;  %12546 = vst [vmem:[#allocation112_spill] sm:$0xff] %v9723_v3  ;;  %v1134_v31 = vrot.slane %v9713_v50, 7  ;;  %v4417_v43 = vrot.slane %v4410_v20, %v8874_v19  ;;  %v1506_v53 = vcombine.low %v9699_v8, %v9719_v58  ;;  %v9746_v2 = vsel %vm8930_vm7, %v1127_v6, %v1128_v42 }
  0xa4   : > { %12547 = vst [vmem:[#allocation113_spill] sm:$0xff] %v9727_v40  ;;  %12548 = vst [vmem:[#allocation114_spill] sm:$0xff] %v9734_v10  ;;  %v1130_v7 = vrot.slane %v1128_v42, 2  ;;  %v1131_v18 = vrot.slane %v9723_v3, 7  ;;  %v1137_v49 = vrot.slane %v9738_v22, 7  ;;  %v330_v23 = vmul.f32 %v9561_v45, %v291_v25 }
  0xa5   : > { %12549 = vst [vmem:[#allocation115_spill] sm:$0xff] %v9738_v22  ;;  %12550 = vst [vmem:[#allocation116_spill] sm:$0xff] %v9746_v2  ;;  %v1136_v29 = vrot.slane %v1134_v31, 2  ;;  %v4418_v44 = vcombine.low %v4417_v43, %v9727_v40  ;;  %7572 = vmatmul.mubr.msk.f32.gmra.mrb[30].mxu1 %vm1651_vm8, %v1506_v53  ;;  %7918 = vmatmul.mubr.msk.f32.gmra.mrb[4].mxu0 %vm1651_vm8, %v9710_v48  ;;  %v9761_v20 = vcombine.high %v9734_v10, %v9734_v10  ;;  %v292_v53 = vld [vmem:[%s8858_s19 + $0xa8] sm:$0xff] }
  0xa6   : > { %v9757_v6 = vsel %vm8930_vm7, %v1130_v7, %v1131_v18  ;;  %v1133_v42 = vrot.slane %v1131_v18, 2  ;;  %v1140_v58 = vrot.slane %v9734_v10, 7  ;;  %7574 = vmatprep.mubr.msk.f32.mxu1 %vm8745_vm0, %v12485_v37  ;;  %7920 = vmatprep.mubr.msk.f32.mxu0 %vm8745_vm0, %v12485_v37  ;;  %v369_v18 = vadd.f32 %v9576_v60, %v330_v23 }
  0xa7   : > { %12551 = vst [vmem:[#allocation117_spill] sm:$0xff] %v9757_v6  ;;  %12552 = vst [vmem:[#allocation118_spill] sm:$0xff] %v9761_v20  ;;  %v9770_v25 = vsel %vm8930_vm7, %v1136_v29, %v1137_v49  ;;  %v1507_v7 = vcombine.low %v9746_v2, %v9757_v6  ;;  %v1139_v43 = vrot.slane %v1137_v49, 2  ;;  %v1143_v55 = vrot.slane %v9761_v20, 7 }
  0xa8   : > { %12553 = vst [vmem:[#allocation119_spill] sm:$0xff] %v9770_v25  ;;  %v9778_v8 = vsel %vm8930_vm7, %v1133_v42, %v1134_v31  ;;  %v1142_v39 = vrot.slane %v1140_v58, 2  ;;  %v1994_v40 = vcombine.low %v9136_v11, %v9139_v13  ;;  %v401_v6 = vmax.f32 %v369_v18, 0.0 }
  0xa9   : > { %12554 = vst [vmem:[#allocation120_spill] sm:$0xff] %v9778_v8  ;;  %v1508_v29 = vcombine.low %v9778_v8, %v9770_v25  ;;  %v9786_v48 = vrot.slane %v1507_v7, %v8874_v19  ;;  %v9790_v23 = vsel %vm8930_vm7, %v1139_v43, %v1140_v58  ;;  %7921 = vmatmul.mubr.msk.f32.gmra.mrb[6].mxu0 %vm1651_vm8, %v4418_v44  ;;  %v293_v25 = vld [vmem:[%s8858_s19 + $0xb0] sm:$0xff] }
  0xaa   : > { %12556 = vst [vmem:[#allocation122_spill] sm:$0xff] %v9790_v23  ;;  %v9795_v49 = vsel %vm8930_vm7, %v1142_v39, %v1143_v55  ;;  %v1995_v31 = vcombine.low %v9155_v26, %v9151_v24  ;;  %v9800_v42 = vrot.slane %v1994_v40, %v8874_v19  ;;  %v331_v7 = vmul.f32 %v9561_v45, %v292_v53 }
  0xab   : > { %12555 = vst [vmem:[#allocation121_spill] sm:$0xff] %v9786_v48  ;;  %12557 = vst [vmem:[#allocation123_spill] sm:$0xff] %v9795_v49  ;;  %v9804_v18 = vrot.slane %v1508_v29, %v8874_v19  ;;  %7923 = vmatprep.mubr.msk.f32.mxu0 %vm8745_vm0, %v12485_v37  ;;  %v771_v44 = vcombine.high %v401_v6, %v401_v6  ;;  %v9809_v58 = vrot.slane %v401_v6, %v8874_v19 }
  0xac   : > { %12558 = vst [vmem:[#allocation124_spill] sm:$0xff] %v9800_v42  ;;  %v1524_v39 = vcombine.low %v9790_v23, %v9795_v49  ;;  %v9814_v55 = vrot.slane %v1995_v31, %v8874_v19  ;;  %v370_v40 = vadd.f32 %v9576_v60, %v331_v7  ;;  %v2012_v43 = vcombine.low %v9209_v4, %v9225_v30 }
  0xad   : > { %12559 = vst [vmem:[#allocation125_spill] sm:$0xff] %v9804_v18  ;;  %v7174_v53 = vcombine.high %v9151_v24, %v9197_v38  ;;  %v1523_v29 = vcombine.low %v9786_v48, %v9804_v18  ;;  %v9824_v6 = vrot.slane %v771_v44, %v8874_v19  ;;  %v9828_v49 = vcombine.high %v9809_v58, %v9809_v58 }
  0xae   : > { %12560 = vst [vmem:[#allocation126_spill] sm:$0xff] %v9814_v55  ;;  %v7031_v31 = vrot.slane %v9809_v58, 9  ;;  %v9833_v7 = vrot.slane %v1524_v39, %v8874_v19  ;;  %v9837_v23 = vcombine.low %v9800_v42, %v9814_v55  ;;  %v402_v8 = vmax.f32 %v370_v40, 0.0 }
  0xaf   : > { %12561 = vst [vmem:[#allocation127_spill] sm:$0xff] %v9824_v6  ;;  %12562 = vst [vmem:[#allocation128_spill] sm:$0xff] %v9828_v49  ;;  %v9840_v2 = vrot.slane %v2012_v43, %v8874_v19  ;;  %7575 = vmatmul.mubr.msk.f32.gmra.mrb[32].mxu1 %vm1651_vm8, %v1523_v29  ;;  %v1147_v44 = vrot.slane %v9828_v49, 7  ;;  %v1150_v18 = vrot.slane %v9824_v6, 7  ;;  %v9847_v48 = vcombine.high %v9824_v6, %v9824_v6 }
  0xb0   : > { %12563 = vst [vmem:[#allocation129_spill] sm:$0xff] %v9833_v7  ;;  %12564 = vst [vmem:[#allocation130_spill] sm:$0xff] %v9837_v23  ;;  %v4426_v39 = vrot.slane %v7174_v53, %v8874_v19  ;;  %7577 = vmatprep.mubr.msk.f32.mxu1 %vm8745_vm0, %v12485_v37  ;;  %7924 = vmatmul.mubr.msk.f32.gmra.mrb[8].mxu0 %vm1651_vm8, %v9837_v23  ;;  %v788_v40 = vcombine.high %v402_v8, %v402_v8 }
  0xb1   : > { %12565 = vst [vmem:[#allocation131_spill] sm:$0xff] %v9840_v2  ;;  %12566 = vst [vmem:[#allocation132_spill] sm:$0xff] %v9847_v48  ;;  %v9855_v43 = vrot.slane %v402_v8, %v8874_v19  ;;  %v332_v29 = vmul.f32 %v9561_v45, %v293_v25  ;;  %v9860_v20 = vsel %vm8930_vm7, %v7031_v31, %v1147_v44  ;;  %v1149_v4 = vrot.slane %v1147_v44, 2 }
  0xb2   : > { %12568 = vst [vmem:[#allocation134_spill] sm:$0xff] %v9860_v20  ;;  %7926 = vmatprep.mubr.msk.f32.mxu0 %vm8745_vm0, %v12485_v37  ;;  %v1152_v53 = vrot.slane %v1150_v18, 2  ;;  %v1153_v24 = vrot.slane %v9847_v48, 7  ;;  %v9866_v30 = vrot.slane %v788_v40, %v8874_v19  ;;  %v4427_v13 = vcombine.low %v4426_v39, %v9840_v2  ;;  %v294_v2 = vld [vmem:[%s8858_s19 + $0xb8] sm:$0xff] }
  0xb3   : > { %12567 = vst [vmem:[#allocation133_spill] sm:$0xff] %v9855_v43  ;;  %v9870_v8 = vcombine.high %v9855_v43, %v9855_v43  ;;  %v1156_v25 = vrot.slane %v9855_v43, 7  ;;  %v9876_v31 = vsel %vm8930_vm7, %v1149_v4, %v1150_v18  ;;  %v371_v40 = vadd.f32 %v9576_v60, %v332_v29 }
  0xb4   : > { %12570 = vst [vmem:[#allocation136_spill] sm:$0xff] %v9876_v31  ;;  %v9880_v44 = vsel %vm8930_vm7, %v1152_v53, %v1153_v24  ;;  %v1155_v26 = vrot.slane %v1153_v24, 2  ;;  %v1525_v11 = vcombine.low %v9860_v20, %v9876_v31  ;;  %v1162_v39 = vrot.slane %v9866_v30, 7  ;;  %7927 = vmatmul.mubr.msk.f32.gmra.mrb[10].mxu0 %vm1651_vm8, %v4427_v13 }
  0xb5   : > { %12569 = vst [vmem:[#allocation135_spill] sm:$0xff] %v9870_v8  ;;  %12571 = vst [vmem:[#allocation137_spill] sm:$0xff] %v9880_v44  ;;  %v1158_v49 = vrot.slane %v1156_v25, 2  ;;  %v1159_v55 = vrot.slane %v9870_v8, 7  ;;  %7929 = vmatprep.mubr.msk.f32.mxu0 %vm8745_vm0, %v12485_v37  ;;  %v403_v24 = vmax.f32 %v371_v40, 0.0  ;;  %v9896_v18 = vcombine.high %v9866_v30, %v9866_v30 }
  0xb6   : > { %v9890_v4 = vsel %vm8930_vm7, %v1155_v26, %v1156_v25  ;;  %v2028_v29 = vcombine.low %v9234_v34, %v9247_v27  ;;  %v9901_v53 = vrot.slane %v1525_v11, %v8874_v19  ;;  %v1164_v20 = vrot.slane %v1162_v39, 2 }
  0xb7   : > { %12572 = vst [vmem:[#allocation138_spill] sm:$0xff] %v9890_v4  ;;  %v9905_v13 = vsel %vm8930_vm7, %v1158_v49, %v1159_v55  ;;  %v1161_v26 = vrot.slane %v1159_v55, 2  ;;  %v1541_v25 = vcombine.low %v9880_v44, %v9890_v4  ;;  %v804_v31 = vcombine.high %v403_v24, %v403_v24 }
  0xb8   : > { %12573 = vst [vmem:[#allocation139_spill] sm:$0xff] %v9901_v53  ;;  %12574 = vst [vmem:[#allocation140_spill] sm:$0xff] %v9905_v13  ;;  %v9910_v40 = vrot.slane %v403_v24, %v8874_v19  ;;  %v1165_v42 = vrot.slane %v9896_v18, 7  ;;  %v1540_v11 = vcombine.low %v9833_v7, %v9901_v53  ;;  %v9924_v55 = vrot.slane %v2028_v29, %v8874_v19  ;;  %v296_v53 = vld [vmem:[%s8858_s19 + $0xc8] sm:$0xff] }
  0xb9   : > { %v9918_v27 = vsel %vm8930_vm7, %v1161_v26, %v1162_v39  ;;  %v9921_v49 = vrot.slane %v1541_v25, %v8874_v19  ;;  %v9929_v4 = vrot.slane %v804_v31, %v8874_v19  ;;  %v4428_v26 = vcombine.low %v9243_v16, %v9259_v41 }
  0xba   : > { %12575 = vst [vmem:[#allocation141_spill] sm:$0xff] %v9910_v40  ;;  %12576 = vst [vmem:[#allocation142_spill] sm:$0xff] %v9918_v27  ;;  %v1542_v24 = vcombine.low %v9905_v13, %v9918_v27  ;;  %v9933_v44 = vcombine.high %v9910_v40, %v9910_v40  ;;  %v9937_v39 = vsel %vm8930_vm7, %v1164_v20, %v1165_v42  ;;  %7578 = vmatmul.mubr.msk.f32.gmra.mrb[34].mxu1 %vm1651_vm8, %v1540_v11 }
  0xbb   : > { %12577 = vst [vmem:[#allocation143_spill] sm:$0xff] %v9921_v49  ;;  %12578 = vst [vmem:[#allocation144_spill] sm:$0xff] %v9924_v55  ;;  %v7032_v29 = vrot.slane %v9910_v40, 9  ;;  %v333_v31 = vmul.f32 %v9561_v45, %v294_v2  ;;  %v2045_v25 = vcombine.low %v9291_v46, %v9283_v12  ;;  %7580 = vmatprep.mubr.msk.f32.mxu1 %vm8745_vm0, %v12485_v37  ;;  %v1172_v11 = vrot.slane %v9929_v4, 7 }
  0xbc   : > { %12579 = vst [vmem:[#allocation145_spill] sm:$0xff] %v9929_v4  ;;  %12580 = vst [vmem:[#allocation146_spill] sm:$0xff] %v9933_v44  ;;  %v9949_v27 = vrot.slane %v1542_v24, %v8874_v19  ;;  %v9953_v20 = vcombine.high %v9929_v4, %v9929_v4  ;;  %v1169_v42 = vrot.slane %v9933_v44, 7  ;;  %v4435_v41 = vrot.slane %v4428_v26, %v8874_v19  ;;  %v295_v24 = vld [vmem:[%s8858_s19 + $0xc0] sm:$0xff] }
  0xbd   : > { %12581 = vst [vmem:[#allocation147_spill] sm:$0xff] %v9937_v39  ;;  %v372_v2 = vadd.f32 %v9576_v60, %v333_v31  ;;  %v2046_v13 = vcombine.low %v9298_v5, %v9301_v1  ;;  %v9962_v46 = vrot.slane %v2045_v25, %v8874_v19  ;;  %v1174_v40 = vrot.slane %v1172_v11, 2 }
  0xbe   : > { %12582 = vst [vmem:[#allocation148_spill] sm:$0xff] %v9949_v27  ;;  %12583 = vst [vmem:[#allocation149_spill] sm:$0xff] %v9953_v20  ;;  %v1557_v7 = vcombine.low %v9921_v49, %v9949_v27  ;;  %v9970_v12 = vsel %vm8930_vm7, %v7032_v29, %v1169_v42  ;;  %v1171_v34 = vrot.slane %v1169_v42, 2  ;;  %v1175_v26 = vrot.slane %v9953_v20, 7 }
  0xbf   : > { %12584 = vst [vmem:[#allocation150_spill] sm:$0xff] %v9962_v46  ;;  %12585 = vst [vmem:[#allocation151_spill] sm:$0xff] %v9970_v12  ;;  %v1558_v31 = vcombine.low %v9937_v39, %v9970_v12  ;;  %v4436_v1 = vcombine.low %v9924_v55, %v4435_v41  ;;  %v404_v25 = vmax.f32 %v372_v2, 0.0  ;;  %v9982_v27 = vrot.slane %v2046_v13, %v8874_v19 }
  0xc0   : > { %7581 = vmatmul.mubr.msk.f32.gmra.mrb[36].mxu1 %vm1651_vm8, %v1557_v7  ;;  %v9979_v5 = vsel %vm8930_vm7, %v1171_v34, %v1172_v11  ;;  %v334_v29 = vmul.f32 %v9561_v45, %v295_v24  ;;  %v335_v42 = vmul.f32 %v9561_v45, %v296_v53  ;;  %v9990_v41 = vsel %vm8930_vm7, %v1174_v40, %v1175_v26 }
  0xc1   : > { %12586 = vst [vmem:[#allocation152_spill] sm:$0xff] %v9979_v5  ;;  %12587 = vst [vmem:[#allocation153_spill] sm:$0xff] %v9982_v27  ;;  %7583 = vmatprep.mubr.msk.f32.mxu1 %vm8745_vm0, %v12485_v37  ;;  %v9993_v7 = vrot.slane %v1558_v31, %v8874_v19  ;;  %7930 = vmatmul.mubr.msk.f32.gmra.mrb[12].mxu0 %vm1651_vm8, %v4436_v1  ;;  %v821_v34 = vcombine.high %v404_v25, %v404_v25  ;;  %v1177_v11 = vrot.slane %v1175_v26, 2 }
  0xc2   : > { %12588 = vst [vmem:[#allocation154_spill] sm:$0xff] %v9990_v41  ;;  %v1559_v13 = vcombine.low %v9979_v5, %v9990_v41  ;;  %7932 = vmatprep.mubr.msk.f32.mxu0 %vm8745_vm0, %v12485_v37  ;;  %v10001_v53 = vrot.slane %v404_v25, %v8874_v19  ;;  %v10005_v40 = vcombine.low %v9962_v46, %v9982_v27 }
  0xc3   : > { %12589 = vst [vmem:[#allocation155_spill] sm:$0xff] %v9993_v7  ;;  %v373_v2 = vadd.f32 %v9576_v60, %v334_v29  ;;  %v10009_v24 = vrot.slane %v821_v34, %v8874_v19  ;;  %v374_v1 = vadd.f32 %v9576_v60, %v335_v42  ;;  %v2062_v26 = vcombine.low %v9318_v32, %v9304_v33 }
  0xc4   : > { %12590 = vst [vmem:[#allocation156_spill] sm:$0xff] %v10001_v53  ;;  %12591 = vst [vmem:[#allocation157_spill] sm:$0xff] %v10005_v40  ;;  %v7175_v31 = vcombine.high %v9304_v33, %v9349_v62  ;;  %v10017_v25 = vrot.slane %v1559_v13, %v8874_v19  ;;  %v10021_v41 = vcombine.high %v10001_v53, %v10001_v53  ;;  %v1178_v29 = vrot.slane %v10001_v53, 7 }
  0xc5   : > { %12592 = vst [vmem:[#allocation158_spill] sm:$0xff] %v10009_v24  ;;  %v405_v12 = vmax.f32 %v373_v2, 0.0  ;;  %v10026_v34 = vcombine.high %v10009_v24, %v10009_v24  ;;  %v1184_v42 = vrot.slane %v10009_v24, 7  ;;  %7933 = vmatmul.mubr.msk.f32.gmra.mrb[14].mxu0 %vm1651_vm8, %v10005_v40  ;;  %v406_v5 = vmax.f32 %v374_v1, 0.0 }
  0xc6   : > { %12593 = vst [vmem:[#allocation159_spill] sm:$0xff] %v10017_v25  ;;  %12594 = vst [vmem:[#allocation160_spill] sm:$0xff] %v10021_v41  ;;  %v10032_v13 = vrot.slane %v2062_v26, %v8874_v19  ;;  %v1574_v39 = vcombine.low %v9993_v7, %v10017_v25  ;;  %v10038_v49 = vsel %vm8930_vm7, %v1177_v11, %v1178_v29  ;;  %v1180_v2 = vrot.slane %v1178_v29, 2 }
  0xc7   : > { %12595 = vst [vmem:[#allocation161_spill] sm:$0xff] %v10026_v34  ;;  %12597 = vst [vmem:[#allocation163_spill] sm:$0xff] %v10038_v49  ;;  %v1181_v33 = vrot.slane %v10021_v41, 7  ;;  %7935 = vmatprep.mubr.msk.f32.mxu0 %vm8745_vm0, %v12485_v37  ;;  %v1186_v32 = vrot.slane %v1184_v42, 2  ;;  %v1187_v1 = vrot.slane %v10026_v34, 7  ;;  %v837_v46 = vcombine.high %v405_v12, %v405_v12 }
  0xc8   : > { %12596 = vst [vmem:[#allocation162_spill] sm:$0xff] %v10032_v13  ;;  %v10045_v26 = vrot.slane %v405_v12, %v8874_v19  ;;  %7584 = vmatmul.mubr.msk.f32.gmra.mrb[38].mxu1 %vm1651_vm8, %v1574_v39  ;;  %v854_v25 = vcombine.high %v406_v5, %v406_v5  ;;  %v10053_v7 = vrot.slane %v406_v5, %v8874_v19 }
  0xc9   : > { %v10050_v11 = vsel %vm8930_vm7, %v1180_v2, %v1181_v33  ;;  %v1183_v29 = vrot.slane %v1181_v33, 2  ;;  %7586 = vmatprep.mubr.msk.f32.mxu1 %vm8745_vm0, %v12485_v37  ;;  %v10059_v34 = vsel %vm8930_vm7, %v1186_v32, %v1187_v1  ;;  %v10064_v39 = vrot.slane %v837_v46, %v8874_v19  ;;  %v297_v2 = vld [vmem:[%s8858_s19 + $0xd0] sm:$0xff] }
  0xca   : > { %12598 = vst [vmem:[#allocation164_spill] sm:$0xff] %v10045_v26  ;;  %12599 = vst [vmem:[#allocation165_spill] sm:$0xff] %v10050_v11  ;;  %v1575_v12 = vcombine.low %v10038_v49, %v10050_v11  ;;  %v10068_v33 = vcombine.high %v10045_v26, %v10045_v26  ;;  %v10076_v40 = vrot.slane %v854_v25, %v8874_v19  ;;  %v7033_v32 = vrot.slane %v10045_v26, 9 }
  0xcb   : > { %12600 = vst [vmem:[#allocation166_spill] sm:$0xff] %v10053_v7  ;;  %12601 = vst [vmem:[#allocation167_spill] sm:$0xff] %v10059_v34  ;;  %v10073_v5 = vsel %vm8930_vm7, %v1183_v29, %v1184_v42  ;;  %v1200_v1 = vrot.slane %v10053_v7, 7  ;;  %v10087_v49 = vcombine.high %v10064_v39, %v10064_v39  ;;  %v1194_v29 = vrot.slane %v10064_v39, 7 }
  0xcc   : > { %12602 = vst [vmem:[#allocation168_spill] sm:$0xff] %v10064_v39  ;;  %12603 = vst [vmem:[#allocation169_spill] sm:$0xff] %v10068_v33  ;;  %v1576_v46 = vcombine.low %v10073_v5, %v10059_v34  ;;  %v10083_v11 = vrot.slane %v1575_v12, %v8874_v19  ;;  %v1191_v42 = vrot.slane %v10068_v33, 7  ;;  %v4444_v25 = vrot.slane %v7175_v31, %v8874_v19 }
  0xcd   : > { %12604 = vst [vmem:[#allocation170_spill] sm:$0xff] %v10073_v5  ;;  %12605 = vst [vmem:[#allocation171_spill] sm:$0xff] %v10076_v40  ;;  %v336_v62 = vmul.f32 %v9561_v45, %v297_v2  ;;  %v10095_v55 = vcombine.high %v10053_v7, %v10053_v7  ;;  %v1197_v33 = vrot.slane %v10087_v49, 7  ;;  %v1196_v23 = vrot.slane %v1194_v29, 2 }
  0xce   : > { %12606 = vst [vmem:[#allocation172_spill] sm:$0xff] %v10083_v11  ;;  %12607 = vst [vmem:[#allocation173_spill] sm:$0xff] %v10087_v49  ;;  %v10098_v34 = vrot.slane %v1576_v46, %v8874_v19  ;;  %v10102_v12 = vsel %vm8930_vm7, %v7033_v32, %v1191_v42  ;;  %v1193_v5 = vrot.slane %v1191_v42, 2  ;;  %v4445_v16 = vcombine.low %v10032_v13, %v4444_v25 }
  0xcf   : > { %12608 = vst [vmem:[#allocation174_spill] sm:$0xff] %v10095_v55  ;;  %12610 = vst [vmem:[#allocation176_spill] sm:$0xff] %v10102_v12  ;;  %v375_v31 = vadd.f32 %v9576_v60, %v336_v62  ;;  %v10109_v2 = vcombine.high %v10076_v40, %v10076_v40  ;;  %v1199_v42 = vrot.slane %v1197_v33, 2  ;;  %v1202_v27 = vrot.slane %v1200_v1, 2 }
  0xd0   : > { %12609 = vst [vmem:[#allocation175_spill] sm:$0xff] %v10098_v34  ;;  %v1591_v46 = vcombine.low %v10083_v11, %v10098_v34  ;;  %v10115_v32 = vsel %vm8930_vm7, %v1193_v5, %v1194_v29  ;;  %v10119_v38 = vsel %vm8930_vm7, %v1196_v23, %v1197_v33  ;;  %7936 = vmatmul.mubr.msk.f32.gmra.mrb[16].mxu0 %vm1651_vm8, %v4445_v16  ;;  %v1203_v13 = vrot.slane %v10095_v55, 7  ;;  %v298_v16 = vld [vmem:[%s8858_s19 + $0xd8] sm:$0xff]  ;;  %v12617_v34 = vld [vmem:[#allocation73_spill] sm:$0xff] }
  0xd1   : > { %12611 = vst [vmem:[#allocation177_spill] sm:$0xff] %v10115_v32  ;;  %12612 = vst [vmem:[#allocation178_spill] sm:$0xff] %v10119_v38  ;;  %v1592_v62 = vcombine.low %v10102_v12, %v10115_v32  ;;  %v407_v25 = vmax.f32 %v375_v31, 0.0  ;;  %v10128_v5 = vsel %vm8930_vm7, %v1199_v42, %v1200_v1  ;;  %7938 = vmatprep.mubr.msk.f32.mxu0 %vm8745_vm0, %v12485_v37  ;;  %v1206_v23 = vrot.slane %v10076_v40, 7  ;;  %v12618_v11 = vld [vmem:[#allocation71_spill] sm:$0xff] }
  0xd2   : > { %7587 = vmatmul.mubr.msk.f32.gmra.mrb[40].mxu1 %vm1651_vm8, %v1591_v46  ;;  %12613 = vst [vmem:[#allocation179_spill] sm:$0xff] %v10128_v5  ;;  %v1209_v33 = vrot.slane %v10109_v2, 7  ;;  %v2079_v29 = vcombine.low %v9389_v52, %v9398_v28  ;;  %v1593_v31 = vcombine.low %v10119_v38, %v10128_v5  ;;  %v10149_v42 = vsel %vm8930_vm7, %v1202_v27, %v1203_v13 }
  0xd3   : > { %7589 = vmatprep.mubr.msk.f32.mxu1 %vm8745_vm0, %v12485_v37  ;;  %v10142_v1 = vrot.slane %v1592_v62, %v8874_v19  ;;  %v10145_v46 = vrot.slane %v407_v25, %v8874_v19  ;;  %12616 = vst [vmem:[#allocation182_spill] sm:$0xff] %v10149_v42  ;;  %v1205_v32 = vrot.slane %v1203_v13, 2  ;;  %v1208_v12 = vrot.slane %v1206_v23, 2 }
  0xd4   : > { %v2080_v28 = vcombine.low %v12618_v11, %v12617_v34  ;;  %v10154_v52 = vrot.slane %v2079_v29, %v8874_v19  ;;  %v10157_v5 = vrot.slane %v1593_v31, %v8874_v19  ;;  %v337_v27 = vmul.f32 %v9561_v45, %v298_v16 }
  0xd5   : > { %12614 = vst [vmem:[#allocation180_spill] sm:$0xff] %v10142_v1  ;;  %12615 = vst [vmem:[#allocation181_spill] sm:$0xff] %v10145_v46  ;;  %v10161_v62 = vcombine.high %v10145_v46, %v10145_v46  ;;  %v7034_v38 = vrot.slane %v10145_v46, 9  ;;  %v10167_v13 = vsel %vm8930_vm7, %v1205_v32, %v1206_v23  ;;  %v10171_v34 = vsel %vm8930_vm7, %v1208_v12, %v1209_v33  ;;  %v12628_v23 = vld [vmem:[#allocation72_spill] sm:$0xff] }
  0xd6   : > { %12619 = vst [vmem:[#allocation183_spill] sm:$0xff] %v10154_v52  ;;  %12620 = vst [vmem:[#allocation184_spill] sm:$0xff] %v10157_v5  ;;  %v10174_v29 = vrot.slane %v2080_v28, %v8874_v19  ;;  %v870_v31 = vcombine.high %v407_v25, %v407_v25  ;;  %v1608_v11 = vcombine.low %v10142_v1, %v10157_v5  ;;  %v12627_v25 = vld [vmem:[#allocation77_spill] sm:$0xff] }
  0xd7   : > { %12621 = vst [vmem:[#allocation185_spill] sm:$0xff] %v10161_v62  ;;  %12622 = vst [vmem:[#allocation186_spill] sm:$0xff] %v10167_v13  ;;  %v1213_v40 = vrot.slane %v10161_v62, 7  ;;  %v1609_v16 = vcombine.low %v10149_v42, %v10167_v13  ;;  %v376_v46 = vadd.f32 %v9576_v60, %v337_v27  ;;  %v2097_v28 = vcombine.low %v9449_v36, %v9438_v21 }
  0xd8   : > { %12623 = vst [vmem:[#allocation187_spill] sm:$0xff] %v10171_v34  ;;  %12624 = vst [vmem:[#allocation188_spill] sm:$0xff] %v10174_v29  ;;  %v10184_v32 = vcombine.low %v10154_v52, %v10174_v29  ;;  %v10187_v12 = vrot.slane %v870_v31, %v8874_v19  ;;  %v4446_v33 = vcombine.low %v12628_v23, %v12627_v25  ;;  %7590 = vmatmul.mubr.msk.f32.gmra.mrb[42].mxu1 %vm1651_vm8, %v1608_v11 }
  0xd9   : > { %v10196_v13 = vsel %vm8930_vm7, %v7034_v38, %v1213_v40  ;;  %v10199_v27 = vrot.slane %v1609_v16, %v8874_v19  ;;  %v408_v42 = vmax.f32 %v376_v46, 0.0  ;;  %v1215_v5 = vrot.slane %v1213_v40, 2  ;;  %7592 = vmatprep.mubr.msk.f32.mxu1 %vm8745_vm0, %v12485_v37 }
  0xda   : > { %12625 = vst [vmem:[#allocation189_spill] sm:$0xff] %v10184_v32  ;;  %12626 = vst [vmem:[#allocation190_spill] sm:$0xff] %v10187_v12  ;;  %v1610_v31 = vcombine.low %v10171_v34, %v10196_v13  ;;  %7939 = vmatmul.mubr.msk.f32.gmra.mrb[18].mxu0 %vm1651_vm8, %v10184_v32  ;;  %v10209_v11 = vcombine.high %v10187_v12, %v10187_v12  ;;  %v1216_v38 = vrot.slane %v10187_v12, 7 }
  0xdb   : > { %12629 = vst [vmem:[#allocation77_spill] sm:$0xff] %v10196_v13  ;;  %12630 = vst [vmem:[#allocation191_spill] sm:$0xff] %v10199_v27  ;;  %v10213_v16 = vrot.slane %v2097_v28, %v8874_v19  ;;  %7941 = vmatprep.mubr.msk.f32.mxu0 %vm8745_vm0, %v12485_v37  ;;  %v887_v40 = vcombine.high %v408_v42, %v408_v42  ;;  %v10218_v46 = vrot.slane %v408_v42, %v8874_v19  ;;  %v12634_v13 = vld [vmem:[#allocation80_spill] sm:$0xff] }
  0xdc   : > { %12631 = vst [vmem:[#allocation192_spill] sm:$0xff] %v10209_v11  ;;  %v4453_v25 = vrot.slane %v4446_v33, %v8874_v19  ;;  %v2113_v34 = vcombine.low %v12634_v13, %v9481_v61  ;;  %v10224_v36 = vrot.slane %v1610_v31, %v8874_v19  ;;  %v10228_v1 = vsel %vm8930_vm7, %v1215_v5, %v1216_v38 }
  0xdd   : > { %12632 = vst [vmem:[#allocation193_spill] sm:$0xff] %v10213_v16  ;;  %12633 = vst [vmem:[#allocation194_spill] sm:$0xff] %v10218_v46  ;;  %v1218_v28 = vrot.slane %v1216_v38, 2  ;;  %v1219_v21 = vrot.slane %v10209_v11, 7  ;;  %v10232_v29 = vrot.slane %v887_v40, %v8874_v19  ;;  %v10236_v42 = vcombine.high %v10218_v46, %v10218_v46 }
  0xde   : > { %12635 = vst [vmem:[#allocation195_spill] sm:$0xff] %v10224_v36  ;;  %12636 = vst [vmem:[#allocation196_spill] sm:$0xff] %v10228_v1  ;;  %v1222_v33 = vrot.slane %v10218_v46, 7  ;;  %v4454_v61 = vcombine.low %v4453_v25, %v10213_v16  ;;  %v1625_v31 = vcombine.low %v10199_v27, %v10224_v36  ;;  %v2114_v40 = vcombine.low %v9495_v15, %v9485_v59  ;;  %v12645_v27 = vld [vmem:[#allocation13_spill] sm:$0xff]  ;;  %v12646_v15 = vld [vmem:[#allocation8_spill] sm:$0xff] }
  0xdf   : > { %12637 = vst [vmem:[#allocation197_spill] sm:$0xff] %v10232_v29  ;;  %12638 = vst [vmem:[#allocation198_spill] sm:$0xff] %v10236_v42  ;;  %v10244_v5 = vsel %vm8930_vm7, %v1218_v28, %v1219_v21  ;;  %v1221_v38 = vrot.slane %v1219_v21, 2  ;;  %v1225_v52 = vrot.slane %v10236_v42, 7  ;;  %v10254_v25 = vcombine.high %v10232_v29, %v10232_v29  ;;  %v12649_v16 = vld [vmem:[#allocation12_spill] sm:$0xff] }
  0xe0   : > { %12639 = vst [vmem:[#allocation199_spill] sm:$0xff] %v10244_v5  ;;  %v1224_v13 = vrot.slane %v1222_v33, 2  ;;  %v1626_v32 = vcombine.low %v10228_v1, %v10244_v5  ;;  %7942 = vmatmul.mubr.msk.f32.gmra.mrb[20].mxu0 %vm1651_vm8, %v4454_v61  ;;  %7593 = vmatmul.mubr.msk.f32.gmra.mrb[44].mxu1 %vm1651_vm8, %v1625_v31  ;;  %v1228_v28 = vrot.slane %v10232_v29, 7  ;;  %v10265_v36 = vrot.slane %v2113_v34, %v8874_v19  ;;  %v12651_v29 = vld [vmem:[#allocation88_spill] sm:$0xff] }
  0xe1   : > { %12640 = vst [vmem:[#allocation200_spill] sm:$0xff] %v10254_v25  ;;  %v10259_v21 = vsel %vm8930_vm7, %v1221_v38, %v1222_v33  ;;  %7944 = vmatprep.mubr.msk.f32.mxu0 %vm8745_vm0, %v12485_v37  ;;  %v10268_v61 = vrot.slane %v2114_v40, %v8874_v19  ;;  %7595 = vmatprep.mubr.msk.f32.mxu1 %vm8745_vm0, %v12485_v37  ;;  %v1227_v38 = vrot.slane %v1225_v52, 2  ;;  %v1231_v5 = vrot.slane %v10254_v25, 7  ;;  %v12650_v25 = vld [vmem:[#allocation90_spill] sm:$0xff] }
  0xe2   : > { %12641 = vst [vmem:[#allocation201_spill] sm:$0xff] %v10259_v21  ;;  %v10274_v31 = vsel %vm8930_vm7, %v1224_v13, %v1225_v52  ;;  %v10277_v33 = vrot.slane %v1626_v32, %v8874_v19  ;;  %v1230_v1 = vrot.slane %v1228_v28, 2  ;;  %v1892_v23 = vcombine.low %v12646_v15, %v12645_v27  ;;  %v12648_v32 = vld [vmem:[#allocation18_spill] sm:$0xff] }
  0xe3   : > { %12642 = vst [vmem:[#allocation202_spill] sm:$0xff] %v10268_v61  ;;  %12643 = vst [vmem:[#allocation203_spill] sm:$0xff] %v10274_v31  ;;  %v1627_v34 = vcombine.low %v10259_v21, %v10274_v31  ;;  %v10284_v40 = vcombine.low %v10265_v36, %v10268_v61  ;;  %v10290_v13 = vsel %vm8930_vm7, %v1227_v38, %v1228_v28 }
  0xe4   : > { %12644 = vst [vmem:[#allocation204_spill] sm:$0xff] %v10277_v33  ;;  %12647 = vst [vmem:[#allocation13_spill] sm:$0xff] %v10290_v13  ;;  %v1893_v52 = vcombine.low %v12649_v16, %v12648_v32  ;;  %v2131_v42 = vcombine.low %v12650_v25, %v9566_v56  ;;  %v7176_v31 = vcombine.high %v9485_v59, %v12651_v29  ;;  %v12656_v59 = vld [vmem:[#allocation10_spill] sm:$0xff] }
  0xe5   : > { %v10299_v21 = vrot.slane %v1627_v34, %v8874_v19  ;;  %v10303_v61 = vsel %vm8930_vm7, %v1230_v1, %v1231_v5  ;;  %7945 = vmatmul.mubr.msk.f32.gmra.mrb[22].mxu0 %vm1651_vm8, %v10284_v40  ;;  %v1900_v1 = vrot.slane %v1892_v23, %v8874_v19  ;;  %v12654_v5 = vld [vmem:[#allocation21_spill] sm:$0xff]  ;;  %v2147_v25 = vcombine.low %v9600_v47, %v9616_v51 }
  0xe6   : > { %12653 = vst [vmem:[#allocation12_spill] sm:$0xff] %v10303_v61  ;;  %v1643_v15 = vcombine.low %v10290_v13, %v10303_v61  ;;  %7947 = vmatprep.mubr.msk.f32.mxu0 %vm8745_vm0, %v12485_v37  ;;  %v10312_v28 = vrot.slane %v2131_v42, %v8874_v19  ;;  %v4462_v38 = vrot.slane %v7176_v31, %v8874_v19  ;;  %v12657_v42 = vld [vmem:[#allocation20_spill] sm:$0xff] }
  0xe7   : > { %12652 = vst [vmem:[#allocation8_spill] sm:$0xff] %v10299_v21  ;;  %v1642_v34 = vcombine.low %v10277_v33, %v10299_v21  ;;  %v1909_v56 = vcombine.low %v12655_v54, %v12654_v5  ;;  %v1907_v61 = vrot.slane %v1893_v52, %v8874_v19  ;;  %v1910_v32 = vcombine.low %v12657_v42, %v12656_v59 }
  0xe8   : > { %v4463_v13 = vcombine.low %v4462_v38, %v10312_v28  ;;  %v4464_v31 = vcombine.low %v9611_v14, %v9633_v0  ;;  %v10330_v23 = vrot.slane %v1643_v15, %v8874_v19  ;;  %v10333_v21 = vrot.slane %v2147_v25, %v8874_v19 }
  0xe9   : > { %7596 = vmatmul.mubr.msk.f32.gmra.mrb[46].mxu1 %vm1651_vm8, %v1642_v34  ;;  %v2164_v33 = vcombine.low %v9655_v57, %v9702_v17  ;;  %v2165_v52 = vcombine.low %v9723_v3, %v9713_v50  ;;  %v2181_v38 = vcombine.low %v9738_v22, %v9734_v10  ;;  %v7177_v34 = vcombine.high %v9734_v10, %v9809_v58  ;;  %v12676_v50 = vld [vmem:[#allocation198_spill] sm:$0xff]  ;;  %v12677_v22 = vld [vmem:[#allocation193_spill] sm:$0xff]  ;;  %v12681_v17 = vld [vmem:[#allocation131_spill] sm:$0xff] }
  0xea   : > { %12658 = vst [vmem:[#allocation21_spill] sm:$0xff] %v10330_v23  ;;  %7598 = vmatprep.mubr.msk.f32.mxu1 %vm8745_vm0, %v12485_v37  ;;  %7948 = vmatmul.mubr.msk.f32.gmra.mrb[24].mxu0 %vm1651_vm8, %v4463_v13  ;;  %v4471_v0 = vrot.slane %v4464_v31, %v8874_v19  ;;  %v1908_v13 = vcombine.low %v1900_v1, %v1907_v61 }
  0xeb   : > { %7950 = vmatprep.mubr.msk.f32.mxu0 %vm8745_vm0, %v12485_v37  ;;  %v10346_v15 = vrot.slane %v2164_v33, %v8874_v19  ;;  %v10349_v25 = vrot.slane %v2165_v52, %v8874_v19  ;;  %v1917_v31 = vrot.slane %v1909_v56, %v8874_v19  ;;  %v1924_v33 = vrot.slane %v1910_v32, %v8874_v19 }
  0xec   : > { %v4472_v57 = vcombine.low %v10333_v21, %v4471_v0  ;;  %v2198_v52 = vcombine.low %v9824_v6, %v9847_v48  ;;  %v7086_v0 = vld [vmem:[%s12139_s3 + $0x10] sm:$0xff]  ;;  %v10375_v61 = vrot.slane %v2181_v38, %v8874_v19  ;;  %v2199_v32 = vcombine.low %v9855_v43, %v9870_v8  ;;  %v12660_v48 = vld [vmem:[#allocation23_spill] sm:$0xff] }
  0xed   : > { %7599 = vmatmul.mubr.msk.f32.gmra.mrb[48].mxu1 %vm1651_vm8, %v10330_v23  ;;  %v10372_v56 = vcombine.low %v10346_v15, %v10349_v25  ;;  %v1925_v1 = vcombine.low %v1917_v31, %v1924_v33  ;;  %v12659_v23 = vld [vmem:[#allocation25_spill] sm:$0xff]  ;;  %v4482_v31 = vcombine.low %v9866_v30, %v9896_v18  ;;  %v299_v33 = vld [vmem:[%s8858_s19 + $0xe0] sm:$0xff]  ;;  %v12672_v8 = vld [vmem:[#allocation54_spill] sm:$0xff] }
  0xee   : > { %7603 = vmatprep.mubr.msk.f32.mxu1 %vm8745_vm0, %v12485_v37  ;;  %7951 = vmatmul.mubr.msk.f32.gmra.mrb[26].mxu0 %vm1651_vm8, %v4472_v57  ;;  %v4480_v57 = vrot.slane %v7177_v34, %v8874_v19  ;;  %v1944_v6 = vcombine.low %v12660_v48, %v12659_v23  ;;  %v10386_v10 = vrot.slane %v2198_v52, %v8874_v19  ;;  %v12661_v48 = vld [vmem:[#allocation30_spill] sm:$0xff]  ;;  %v12675_v43 = vld [vmem:[#allocation197_spill] sm:$0xff] }
  0xef   : > { %7953 = vmatprep.mubr.msk.f32.mxu0 %vm8745_vm0, %v12485_v37  ;;  %v10392_v34 = vrot.slane %v2199_v32, %v8874_v19  ;;  %v300_v32 = vld [vmem:[%s8858_s19 + $0xe8] sm:$0xff] }
  0xf0   : > { %v4481_v38 = vcombine.low %v10375_v61, %v4480_v57  ;;  %v10403_v52 = vrot.slane %v1944_v6, %v8874_v19  ;;  %v2233_v57 = vcombine.low %v10021_v41, %v10009_v24  ;;  %v4489_v6 = vrot.slane %v4482_v31, %v8874_v19 }
  0xf1   : > { %7604 = vmatmul.mubr.msk.f32.vlgmr.msra.gmra.mrb[0].mxu1 %vm1651_vm8, %v1908_v13  ;;  %v2216_v13 = vcombine.low %v9933_v44, %v9929_v4  ;;  %v10415_v18 = vcombine.low %v10386_v10, %v10392_v34  ;;  %v338_v44 = vmul.f32 %v9561_v45, %v299_v33 }
  0xf2   : > { %7606 = vmatprep.mubr.msk.f32.mxu1 %vm8745_vm0, %v12485_v37  ;;  %7679 = vmatpush3.msra.mxu1 %v7086_v0  ;;  %v2232_v0 = vcombine.low %v9953_v20, %v10001_v53  ;;  %v1977_v53 = vcombine.low %v9058_v35, %v12661_v48  ;;  %v10438_v33 = vrot.slane %v2233_v57, %v8874_v19  ;;  %v12669_v20 = vld [vmem:[#allocation153_spill] sm:$0xff] }
  0xf3   : > { %7954 = vmatmul.mubr.msk.f32.gmra.mrb[28].mxu0 %vm1651_vm8, %v10372_v56  ;;  %v377_v41 = vadd.f32 %v9576_v60, %v338_v44  ;;  %7755 = vmatprep.subr.mxu1 %v12485_v37  ;;  %v2266_v57 = vcombine.low %v10053_v7, %v10095_v55  ;;  %v12664_v55 = vld [vmem:[#allocation43_spill] sm:$0xff] }
  0xf4   : > { %7956 = vmatprep.mubr.msk.f32.mxu0 %vm8745_vm0, %v12485_v37  ;;  %v10435_v31 = vrot.slane %v2232_v0, %v8874_v19  ;;  %v10453_v0 = vrot.slane %v1977_v53, %v8874_v19 }
  0xf5   : > { %7607 = vmatmul.mubr.msk.f32.gmra.mrb[2].mxu1 %vm1651_vm8, %v1925_v1  ;;  %v10418_v1 = vrot.slane %v2216_v13, %v8874_v19  ;;  %v339_v13 = vmul.f32 %v9561_v45, %v300_v32  ;;  %v7178_v45 = vcombine.high %v10009_v24, %v10045_v26  ;;  %v409_v44 = vmax.f32 %v377_v41, 0.0 }
  0xf6   : > { %7609 = vmatprep.mubr.msk.f32.mxu1 %vm8745_vm0, %v12485_v37  ;;  %v10467_v41 = vcombine.low %v10435_v31, %v10438_v33  ;;  %v10479_v24 = vrot.slane %v2266_v57, %v8874_v19 }
  0xf7   : > { %7957 = vmatmul.mubr.msk.f32.gmra.mrb[30].mxu0 %vm1651_vm8, %v4481_v38  ;;  %v1959_v38 = vcombine.low %v9622_v9, %v10403_v52  ;;  %v4490_v9 = vcombine.low %v4489_v6, %v10418_v1  ;;  %v378_v32 = vadd.f32 %v9576_v60, %v339_v13  ;;  %v12662_v6 = vld [vmem:[#allocation171_spill] sm:$0xff]  ;;  %v4498_v53 = vrot.slane %v7178_v45, %v8874_v19 }
  0xf8   : > { %7959 = vmatprep.mubr.msk.f32.mxu0 %vm8745_vm0, %v12485_v37  ;;  %v3233_v13 = vcombine.high %v409_v44, %v409_v44  ;;  %v2283_v45 = vcombine.low %v10161_v62, %v10187_v12 }
  0xf9   : > { %7610 = vmatmul.mubr.msk.f32.gmra.mrb[4].mxu1 %vm1651_vm8, %v9590_v63  ;;  %v2250_v63 = vcombine.low %v10064_v39, %v10087_v49  ;;  %v4500_v49 = vcombine.low %v12662_v6, %v10109_v2  ;;  %v12663_v2 = vld [vmem:[#allocation46_spill] sm:$0xff]  ;;  %v12665_v39 = vld [vmem:[#allocation109_spill] sm:$0xff] }
  0xfa   : > { %7612 = vmatprep.mubr.msk.f32.mxu1 %vm8745_vm0, %v12485_v37  ;;  %v2011_v7 = vcombine.low %v12664_v55, %v12663_v2  ;;  %v10489_v55 = vrot.slane %v409_v44, %v8874_v19  ;;  %v10497_v57 = vrot.slane %v3233_v13, %v8874_v19 }
  0xfb   : > { %7960 = vmatmul.mubr.msk.f32.gmra.mrb[32].mxu0 %vm1651_vm8, %v10415_v18  ;;  %v10462_v60 = vrot.slane %v2250_v63, %v8874_v19  ;;  %v12666_v63 = vld [vmem:[#allocation113_spill] sm:$0xff]  ;;  %v4507_v4 = vrot.slane %v4500_v49, %v8874_v19 }
  0xfc   : > { %7962 = vmatprep.mubr.msk.f32.mxu0 %vm8745_vm0, %v12485_v37  ;;  %12667 = vst [vmem:[#allocation9_spill] sm:$0xff] %v10489_v55  ;;  %12670 = vst [vmem:[#allocation10_spill] sm:$0xff] %v10497_v57  ;;  %v10506_v44 = vrot.slane %v2011_v7, %v8874_v19  ;;  %v7179_v7 = vcombine.high %v12675_v43, %v10489_v55 }
  0xfd   : > { %7613 = vmatmul.mubr.msk.f32.gmra.mrb[6].mxu1 %vm1651_vm8, %v1959_v38  ;;  %v410_v38 = vmax.f32 %v378_v32, 0.0  ;;  %v2284_v32 = vcombine.low %v10209_v11, %v10218_v46  ;;  %v4499_v49 = vcombine.low %v4498_v53, %v10462_v60  ;;  %v12673_v46 = vld [vmem:[#allocation50_spill] sm:$0xff]  ;;  %v4508_v11 = vcombine.low %v10479_v24, %v4507_v4 }
  0xfe   : > { %7615 = vmatprep.mubr.msk.f32.mxu1 %vm8745_vm0, %v12485_v37  ;;  %v2029_v12 = vcombine.low %v12673_v46, %v12672_v8  ;;  %v10512_v53 = vrot.slane %v2283_v45, %v8874_v19  ;;  %v10528_v4 = vcombine.high %v10497_v57, %v10497_v57  ;;  %v4516_v51 = vrot.slane %v7179_v7, %v8874_v19  ;;  %v12684_v7 = vld [vmem:[#allocation65_spill] sm:$0xff] }
  0xff   : > { %7963 = vmatmul.mubr.msk.f32.gmra.mrb[34].mxu0 %vm1651_vm8, %v4490_v9  ;;  %v1993_v9 = vcombine.low %v10453_v0, %v12666_v63  ;;  %v10500_v62 = vrot.slane %v410_v38, %v8874_v19  ;;  %v10517_v13 = vrot.slane %v2284_v32, %v8874_v19  ;;  %v3250_v45 = vcombine.high %v410_v38, %v410_v38 }
 0x100   : > { %7965 = vmatprep.mubr.msk.f32.mxu0 %vm8745_vm0, %v12485_v37  ;;  %12678 = vst [vmem:[#allocation30_spill] sm:$0xff] %v10528_v4  ;;  %v10543_v3 = vrot.slane %v2029_v12, %v8874_v19  ;;  %v4518_v38 = vcombine.low %v10497_v57, %v10528_v4  ;;  %v12689_v4 = vld [vmem:[#allocation72_spill] sm:$0xff] }
 0x101   : > { %7616 = vmatmul.mubr.msk.f32.gmra.mrb[8].mxu1 %vm1651_vm8, %v12665_v39  ;;  %v12668_v39 = vld [vmem:[#allocation162_spill] sm:$0xff]  ;;  %12671 = vst [vmem:[#allocation20_spill] sm:$0xff] %v10500_v62  ;;  %12674 = vst [vmem:[#allocation25_spill] sm:$0xff] %v10517_v13  ;;  %v10532_v32 = vcombine.high %v10500_v62, %v10500_v62  ;;  %v10559_v12 = vrot.slane %v3250_v45, %v8874_v19 }
 0x102   : > { %7618 = vmatprep.mubr.msk.f32.mxu1 %vm8745_vm0, %v12485_v37 }
 0x103   : > { %7966 = vmatmul.mubr.msk.f32.gmra.mrb[36].mxu0 %vm1651_vm8, %v10467_v41  ;;  %12679 = vst [vmem:[#allocation171_spill] sm:$0xff] %v10532_v32  ;;  %12682 = vst [vmem:[#allocation46_spill] sm:$0xff] %v10559_v12  ;;  %v4519_v47 = vcombine.low %v10500_v62, %v10532_v32  ;;  %v10578_v32 = vrot.slane %v4518_v38, %v8874_v19  ;;  %v12688_v38 = vld [vmem:[#allocation74_spill] sm:$0xff] }
 0x104   : > { %7968 = vmatprep.mubr.msk.f32.mxu0 %vm8745_vm0, %v12485_v37  ;;  %v2096_v57 = vcombine.low %v12689_v4, %v12688_v38 }
 0x105   : > { %7619 = vmatmul.mubr.msk.f32.gmra.mrb[10].mxu1 %vm1651_vm8, %v1993_v9  ;;  %v2300_v9 = vcombine.low %v12676_v50, %v12675_v43  ;;  %v12680_v43 = vld [vmem:[#allocation130_spill] sm:$0xff]  ;;  %v10581_v62 = vrot.slane %v4519_v47, %v8874_v19 }
 0x106   : > { %7621 = vmatprep.mubr.msk.f32.mxu1 %vm8745_vm0, %v12485_v37 }
 0x107   : > { %7969 = vmatmul.mubr.msk.f32.gmra.mrb[38].mxu0 %vm1651_vm8, %v4499_v49  ;;  %v2027_v49 = vcombine.low %v10506_v44, %v12681_v17  ;;  %v10550_v50 = vrot.slane %v2300_v9, %v8874_v19  ;;  %v4534_v47 = vcombine.low %v10578_v32, %v10581_v62 }
 0x108   : > { %7971 = vmatprep.mubr.msk.f32.mxu0 %vm8745_vm0, %v12485_v37 }
 0x109   : > { %7622 = vmatmul.mubr.msk.f32.gmra.mrb[12].mxu1 %vm1651_vm8, %v12680_v43  ;;  %v10556_v43 = vcombine.low %v10512_v53, %v10517_v13  ;;  %v12685_v13 = vld [vmem:[#allocation64_spill] sm:$0xff]  ;;  %v4517_v45 = vcombine.low %v10550_v50, %v4516_v51 }
 0x10a   : > { %7624 = vmatprep.mubr.msk.f32.mxu1 %vm8745_vm0, %v12485_v37  ;;  %v2063_v8 = vcombine.low %v12685_v13, %v12684_v7 }
 0x10b   : > { %7972 = vmatmul.mubr.msk.f32.gmra.mrb[40].mxu0 %vm1651_vm8, %v4508_v11  ;;  %v12683_v11 = vld [vmem:[#allocation144_spill] sm:$0xff] }
 0x10c   : > { %7974 = vmatprep.mubr.msk.f32.mxu0 %vm8745_vm0, %v12485_v37  ;;  %v2044_v9 = vcombine.low %v12683_v11, %v10543_v3  ;;  %v10593_v51 = vrot.slane %v2063_v8, %v8874_v19 }
 0x10d   : > { %7625 = vmatmul.mubr.msk.f32.gmra.mrb[14].mxu1 %vm1651_vm8, %v2027_v49  ;;  %v10585_v49 = vcombine.high %v10559_v12, %v10559_v12 }
 0x10e   : > { %7627 = vmatprep.mubr.msk.f32.mxu1 %vm8745_vm0, %v12485_v37  ;;  %v2078_v8 = vcombine.low %v12668_v39, %v10593_v51 }
 0x10f   : > { %7975 = vmatmul.mubr.msk.f32.gmra.mrb[42].mxu0 %vm1651_vm8, %v10556_v43  ;;  %12686 = vst [vmem:[#allocation109_spill] sm:$0xff] %v10585_v49  ;;  %v4535_v13 = vcombine.low %v10559_v12, %v10585_v49  ;;  %v12690_v49 = vld [vmem:[#allocation99_spill] sm:$0xff] }
 0x110   : > { %7977 = vmatprep.mubr.msk.f32.mxu0 %vm8745_vm0, %v12485_v37  ;;  %v4825_v38 = vcombine.low %v10403_v52, %v12690_v49  ;;  %v12693_v52 = vld [vmem:[#allocation103_spill] sm:$0xff] }
 0x111   : > { %7628 = vmatmul.mubr.msk.f32.gmra.mrb[16].mxu1 %vm1651_vm8, %v2044_v9  ;;  %v12687_v9 = vld [vmem:[#allocation157_spill] sm:$0xff]  ;;  %v4826_v49 = vcombine.low %v12693_v52, %v10453_v0  ;;  %v12695_v0 = vld [vmem:[#allocation124_spill] sm:$0xff] }
 0x112   : > { %7630 = vmatprep.mubr.msk.f32.mxu1 %vm8745_vm0, %v12485_v37  ;;  %v12697_v52 = vld [vmem:[#allocation128_spill] sm:$0xff] }
 0x113   : > { %7978 = vmatmul.mubr.msk.f32.gmra.mrb[44].mxu0 %vm1651_vm8, %v4517_v45  ;;  %v4542_v45 = vrot.slane %v4535_v13, %v8874_v19  ;;  %v12691_v13 = vld [vmem:[#allocation189_spill] sm:$0xff] }
 0x114   : > { %7980 = vmatprep.mubr.msk.f32.mxu0 %vm8745_vm0, %v12485_v37 }
 0x115   : > { %7631 = vmatmul.mubr.msk.f32.gmra.mrb[18].mxu1 %vm1651_vm8, %v12687_v9  ;;  %v10620_v9 = vrot.slane %v2096_v57, %v8874_v19  ;;  %v7232_v57 = vld [vmem:[%s12139_s3 + $0x38] sm:$0xff] }
 0x116   : > { %7633 = vmatprep.mubr.msk.f32.mxu1 %vm8745_vm0, %v12485_v37 }
 0x117   : > { %7981 = vmatmul.mubr.msk.f32.gmra.mrb[46].mxu0 %vm1651_vm8, %v4534_v47  ;;  %v2112_v47 = vcombine.low %v10620_v9, %v12677_v22 }
 0x118   : > { %7983 = vmatprep.mubr.msk.f32.mxu0 %vm8745_vm0, %v12485_v37 }
 0x119   : > { %7634 = vmatmul.mubr.msk.f32.gmra.mrb[20].mxu1 %vm1651_vm8, %v2078_v8  ;;  %v12692_v8 = vld [vmem:[#allocation91_spill] sm:$0xff] }
 0x11a   : > { %7636 = vmatprep.mubr.msk.f32.mxu1 %vm8745_vm0, %v12485_v37  ;;  %v2130_v4 = vcombine.low %v12651_v29, %v12692_v8 }
 0x11b   : > { %7984 = vmatmul.mubr.msk.f32.gmra.mrb[48].mxu0 %vm1651_vm8, %v4542_v45 }
 0x11c   : > { %7988 = vmatprep.mubr.msk.f32.mxu0 %vm8745_vm0, %v12485_v37  ;;  %v10647_v45 = vrot.slane %v2130_v4, %v8874_v19 }
 0x11d   : > { %7637 = vmatmul.mubr.msk.f32.gmra.mrb[22].mxu1 %vm1651_vm8, %v12691_v13  ;;  %v12694_v13 = vld [vmem:[#allocation98_spill] sm:$0xff] }
 0x11e   : > { %7639 = vmatprep.mubr.msk.f32.mxu1 %vm8745_vm0, %v12485_v37  ;;  %v2148_v29 = vcombine.low %v9611_v14, %v12694_v13  ;;  %v2146_v4 = vcombine.low %v10647_v45, %v10312_v28 }
 0x11f   : > { %7989 = vmatmul.mubr.msk.f32.vlgmr.msra.gmra.mrb[0].mxu0 %vm1651_vm8, %v4825_v38  ;;  %v4827_v38 = vcombine.low %v12666_v63, %v12695_v0  ;;  %v12698_v0 = vld [vmem:[#allocation150_spill] sm:$0xff] }
 0x120   : > { %8064 = vmatpush3.msra.mxu0 %v7232_v57  ;;  %7991 = vmatprep.mubr.msk.f32.mxu0 %vm8745_vm0, %v12485_v37  ;;  %v12696_v57 = vld [vmem:[#allocation126_spill] sm:$0xff] }
 0x121   : > { %7640 = vmatmul.mubr.msk.f32.gmra.mrb[24].mxu1 %vm1651_vm8, %v2112_v47  ;;  %8140 = vmatprep.subr.mxu0 %v12485_v37  ;;  %v10664_v47 = vrot.slane %v2148_v29, %v8874_v19  ;;  %v4828_v63 = vcombine.low %v12696_v57, %v10506_v44  ;;  %v2182_v29 = vcombine.low %v9809_v58, %v12697_v52  ;;  %v12701_v57 = vld [vmem:[#allocation183_spill] sm:$0xff] }
 0x122   : > { %7642 = vmatprep.mubr.msk.f32.mxu1 %vm8745_vm0, %v12485_v37 }
 0x123   : > { %7992 = vmatmul.mubr.msk.f32.gmra.mrb[2].mxu0 %vm1651_vm8, %v4826_v49  ;;  %v4829_v49 = vcombine.low %v12681_v17, %v12683_v11  ;;  %v10687_v44 = vrot.slane %v2182_v29, %v8874_v19  ;;  %v12699_v11 = vld [vmem:[#allocation141_spill] sm:$0xff] }
 0x124   : > { %7994 = vmatprep.mubr.msk.f32.mxu0 %vm8745_vm0, %v12485_v37 }
 0x125   : > { %7643 = vmatmul.mubr.msk.f32.gmra.mrb[26].mxu1 %vm1651_vm8, %v10284_v40  ;;  %v2163_v40 = vcombine.low %v10333_v21, %v10664_v47  ;;  %v2197_v17 = vcombine.low %v10375_v61, %v10687_v44 }
 0x126   : > { %7645 = vmatprep.mubr.msk.f32.mxu1 %vm8745_vm0, %v12485_v37 }
 0x127   : > { %7995 = vmatmul.mubr.msk.f32.gmra.mrb[4].mxu0 %vm1651_vm8, %v4827_v38  ;;  %v4830_v38 = vcombine.low %v10543_v3, %v12698_v0  ;;  %v12704_v0 = vld [vmem:[#allocation28_spill] sm:$0xff] }
 0x128   : > { %7997 = vmatprep.mubr.msk.f32.mxu0 %vm8745_vm0, %v12485_v37 }
 0x129   : > { %7646 = vmatmul.mubr.msk.f32.gmra.mrb[28].mxu1 %vm1651_vm8, %v2146_v4  ;;  %v2215_v4 = vcombine.low %v9866_v30, %v12699_v11 }
 0x12a   : > { %7648 = vmatprep.mubr.msk.f32.mxu1 %vm8745_vm0, %v12485_v37 }
 0x12b   : > { %7998 = vmatmul.mubr.msk.f32.gmra.mrb[6].mxu0 %vm1651_vm8, %v4828_v63  ;;  %v10709_v3 = vrot.slane %v2215_v4, %v8874_v19  ;;  %v4832_v63 = vcombine.low %v10593_v51, %v12701_v57  ;;  %v12706_v51 = vld [vmem:[#allocation188_spill] sm:$0xff]  ;;  %v12707_v57 = vld [vmem:[#allocation181_spill] sm:$0xff] }
 0x12c   : > { %8000 = vmatprep.mubr.msk.f32.mxu0 %vm8745_vm0, %v12485_v37 }
 0x12d   : > { %7649 = vmatmul.mubr.msk.f32.gmra.mrb[30].mxu1 %vm1651_vm8, %v2163_v40  ;;  %v12702_v40 = vld [vmem:[#allocation26_spill] sm:$0xff] }
 0x12e   : > { %7651 = vmatprep.mubr.msk.f32.mxu1 %vm8745_vm0, %v12485_v37  ;;  %v2602_v29 = vcombine.low %v12659_v23, %v12702_v40  ;;  %v4833_v23 = vcombine.low %v12706_v51, %v10620_v9  ;;  %v12708_v40 = vld [vmem:[#allocation36_spill] sm:$0xff] }
 0x12f   : > { %8001 = vmatmul.mubr.msk.f32.gmra.mrb[8].mxu0 %vm1651_vm8, %v4829_v49  ;;  %v12703_v49 = vld [vmem:[#allocation27_spill] sm:$0xff] }
 0x130   : > { %8003 = vmatprep.mubr.msk.f32.mxu0 %vm8745_vm0, %v12485_v37  ;;  %v10739_v4 = vrot.slane %v2602_v29, %v8874_v19  ;;  %v12709_v29 = vld [vmem:[#allocation32_spill] sm:$0xff] }
 0x131   : > { %7652 = vmatmul.mubr.msk.f32.gmra.mrb[32].mxu1 %vm1651_vm8, %v10372_v56  ;;  %v12700_v56 = vcombine.low %v12669_v20, %v12668_v39  ;;  %v2231_v20 = vcombine.low %v10709_v3, %v10418_v1  ;;  %v12705_v39 = vld [vmem:[#allocation169_spill] sm:$0xff] }
 0x132   : > { %7654 = vmatprep.mubr.msk.f32.mxu1 %vm8745_vm0, %v12485_v37 }
 0x133   : > { %8004 = vmatmul.mubr.msk.f32.gmra.mrb[10].mxu0 %vm1651_vm8, %v4830_v38  ;;  %v2618_v38 = vcombine.low %v12704_v0, %v12703_v49  ;;  %v2636_v49 = vcombine.low %v12709_v29, %v12708_v40  ;;  %v12710_v0 = vld [vmem:[#allocation39_spill] sm:$0xff]  ;;  %v12713_v40 = vld [vmem:[#allocation202_spill] sm:$0xff] }
 0x134   : > { %8006 = vmatprep.mubr.msk.f32.mxu0 %vm8745_vm0, %v12485_v37  ;;  %v4835_v29 = vcombine.low %v12713_v40, %v10647_v45  ;;  %v12715_v45 = vld [vmem:[#allocation48_spill] sm:$0xff] }
 0x135   : > { %7655 = vmatmul.mubr.msk.f32.gmra.mrb[34].mxu1 %vm1651_vm8, %v2197_v17  ;;  %v2249_v17 = vcombine.low %v10045_v26, %v12705_v39  ;;  %v12794_v26 = vld [vmem:[#allocation102_spill] sm:$0xff] }
 0x136   : > { %7657 = vmatprep.mubr.msk.f32.mxu1 %vm8745_vm0, %v12485_v37 }
 0x137   : > { %8007 = vmatmul.mubr.msk.f32.gmra.mrb[12].mxu0 %vm1651_vm8, %v12700_v56  ;;  %v10746_v56 = vrot.slane %v2249_v17, %v8874_v19 }
 0x138   : > { %8009 = vmatprep.mubr.msk.f32.mxu0 %vm8745_vm0, %v12485_v37 }
 0x139   : > { %7658 = vmatmul.mubr.msk.f32.gmra.mrb[36].mxu1 %vm1651_vm8, %v10415_v18  ;;  %v10742_v18 = vrot.slane %v2618_v38, %v8874_v19  ;;  %v12711_v38 = vld [vmem:[#allocation37_spill] sm:$0xff]  ;;  %v2265_v17 = vcombine.low %v10746_v56, %v10462_v60 }
 0x13a   : > { %7660 = vmatprep.mubr.msk.f32.mxu1 %vm8745_vm0, %v12485_v37 }
 0x13b   : > { %8010 = vmatmul.mubr.msk.f32.gmra.mrb[14].mxu0 %vm1651_vm8, %v4832_v63  ;;  %v2267_v63 = vcombine.low %v12662_v6, %v12707_v57  ;;  %v10754_v9 = vcombine.low %v10739_v4, %v10742_v18 }
 0x13c   : > { %8012 = vmatprep.mubr.msk.f32.mxu0 %vm8745_vm0, %v12485_v37 }
 0x13d   : > { %7661 = vmatmul.mubr.msk.f32.gmra.mrb[38].mxu1 %vm1651_vm8, %v2231_v20  ;;  %v2652_v20 = vcombine.low %v12711_v38, %v12710_v0  ;;  %v10768_v51 = vrot.slane %v2267_v63, %v8874_v19  ;;  %v12716_v38 = vld [vmem:[#allocation51_spill] sm:$0xff] }
 0x13e   : > { %7663 = vmatprep.mubr.msk.f32.mxu1 %vm8745_vm0, %v12485_v37 }
 0x13f   : > { %8013 = vmatmul.mubr.msk.f32.gmra.mrb[16].mxu0 %vm1651_vm8, %v4833_v23  ;;  %v12712_v23 = vcombine.low %v12677_v22, %v10265_v36  ;;  %v10784_v63 = vrot.slane %v2652_v20, %v8874_v19  ;;  %v2282_v0 = vcombine.low %v10479_v24, %v10768_v51  ;;  %v12714_v22 = vld [vmem:[#allocation49_spill] sm:$0xff]  ;;  %v2686_v20 = vcombine.low %v12716_v38, %v12673_v46  ;;  %v12721_v38 = vld [vmem:[#allocation22_spill] sm:$0xff] }
 0x140   : > { %8015 = vmatprep.mubr.msk.f32.mxu0 %vm8745_vm0, %v12485_v37 }
 0x141   : > { %7664 = vmatmul.mubr.msk.f32.gmra.mrb[40].mxu1 %vm1651_vm8, %v10467_v41  ;;  %v10781_v41 = vrot.slane %v2636_v49, %v8874_v19  ;;  %v2670_v49 = vcombine.low %v12715_v45, %v12714_v22  ;;  %v4837_v22 = vcombine.low %v10664_v47, %v10346_v15  ;;  %v12720_v47 = vld [vmem:[#allocation15_spill] sm:$0xff] }
 0x142   : > { %7666 = vmatprep.mubr.msk.f32.mxu1 %vm8745_vm0, %v12485_v37 }
 0x143   : > { %8016 = vmatmul.mubr.msk.f32.gmra.mrb[18].mxu0 %vm1651_vm8, %v12712_v23  ;;  %v10793_v36 = vcombine.low %v10781_v41, %v10784_v63  ;;  %v12717_v23 = vld [vmem:[#allocation18_spill] sm:$0xff] }
 0x144   : > { %8018 = vmatprep.mubr.msk.f32.mxu0 %vm8745_vm0, %v12485_v37  ;;  %v2551_v40 = vcombine.low %v12717_v23, %v12655_v54  ;;  %v7119_v23 = vld [vmem:[%s12139_s3 + $0x18] sm:$0xff] }
 0x145   : > { %7667 = vmatmul.mubr.msk.f32.gmra.mrb[42].mxu1 %vm1651_vm8, %v2265_v17  ;;  %v2550_v17 = vcombine.low %v12645_v27, %v12649_v16  ;;  %v10821_v27 = vrot.slane %v2686_v20, %v8874_v19  ;;  %v12722_v20 = vld [vmem:[#allocation11_spill] sm:$0xff] }
 0x146   : > { %7669 = vmatprep.mubr.msk.f32.mxu1 %vm8745_vm0, %v12485_v37  ;;  %v2565_v16 = vrot.slane %v2551_v40, %v8874_v19  ;;  %v12723_v40 = vcombine.low %v10349_v25, %v10375_v61 }
 0x147   : > { %8019 = vmatmul.mubr.msk.f32.gmra.mrb[20].mxu0 %vm1651_vm8, %v4835_v29  ;;  %v12718_v29 = vcombine.low %v10312_v28, %v10333_v21  ;;  %v2558_v54 = vrot.slane %v2550_v17, %v8874_v19  ;;  %v2567_v21 = vcombine.low %v12654_v5, %v12657_v42  ;;  %v7087_v28 = vcombine.high %v12657_v42, %v12656_v59 }
 0x148   : > { %8021 = vmatprep.mubr.msk.f32.mxu0 %vm8745_vm0, %v12485_v37  ;;  %v2585_v17 = vcombine.low %v12722_v20, %v12721_v38  ;;  %v12729_v20 = vld [vmem:[#allocation29_spill] sm:$0xff] }
 0x149   : > { %7670 = vmatmul.mubr.msk.f32.gmra.mrb[44].mxu1 %vm1651_vm8, %v2282_v0  ;;  %v10818_v0 = vrot.slane %v2670_v49, %v8874_v19  ;;  %v2566_v5 = vcombine.low %v2558_v54, %v2565_v16  ;;  %v2575_v42 = vrot.slane %v2567_v21, %v8874_v19  ;;  %v2582_v49 = vrot.slane %v7087_v28, %v8874_v19  ;;  %v301_v16 = vld [vmem:[%s8858_s19 + $0xf0] sm:$0xff]  ;;  %v12725_v21 = vld [vmem:[#allocation71_spill] sm:$0xff] }
 0x14a   : > { %7672 = vmatprep.mubr.msk.f32.mxu1 %vm8745_vm0, %v12485_v37  ;;  %v12726_v28 = vld [vmem:[#allocation70_spill] sm:$0xff]  ;;  %v10871_v61 = vrot.slane %v2585_v17, %v8874_v19  ;;  %v2619_v17 = vcombine.low %v12729_v20, %v9058_v35  ;;  %v12735_v20 = vcombine.low %v10462_v60, %v10479_v24 }
 0x14b   : > { %8022 = vmatmul.mubr.msk.f32.gmra.mrb[22].mxu0 %vm1651_vm8, %v12718_v29  ;;  %v10835_v15 = vcombine.low %v10818_v0, %v10821_v27  ;;  %v4839_v29 = vcombine.low %v10687_v44, %v10386_v10  ;;  %v12727_v10 = vld [vmem:[#allocation24_spill] sm:$0xff]  ;;  %v12728_v44 = vld [vmem:[#allocation17_spill] sm:$0xff] }
 0x14c   : > { %8024 = vmatprep.mubr.msk.f32.mxu0 %vm8745_vm0, %v12485_v37  ;;  %v2601_v38 = vcombine.low %v12728_v44, %v12727_v10 }
 0x14d   : > { %7673 = vmatmul.mubr.msk.f32.gmra.mrb[46].mxu1 %vm1651_vm8, %v10556_v43  ;;  %v12719_v43 = vld [vmem:[#allocation19_spill] sm:$0xff] }
 0x14e   : > { %7675 = vmatprep.mubr.msk.f32.mxu1 %vm8745_vm0, %v12485_v37  ;;  %v2584_v45 = vcombine.low %v12720_v47, %v12719_v43  ;;  %v2737_v43 = vcombine.low %v12726_v28, %v12725_v21  ;;  %v2583_v47 = vcombine.low %v2575_v42, %v2582_v49  ;;  %v7088_v21 = vcombine.high %v9058_v35, %v12661_v48 }
 0x14f   : > { %8025 = vmatmul.mubr.msk.f32.gmra.mrb[24].mxu0 %vm1651_vm8, %v4837_v22  ;;  %v12724_v22 = vld [vmem:[#allocation68_spill] sm:$0xff]  ;;  %v12730_v28 = vcombine.low %v10418_v1, %v10435_v31  ;;  %v12732_v1 = vld [vmem:[#allocation38_spill] sm:$0xff] }
 0x150   : > { %8027 = vmatprep.mubr.msk.f32.mxu0 %vm8745_vm0, %v12485_v37  ;;  %v2721_v54 = vcombine.low %v12684_v7, %v12724_v22  ;;  %v10868_v25 = vrot.slane %v2584_v45, %v8874_v19  ;;  %v4840_v7 = vcombine.low %v10392_v34, %v10709_v3  ;;  %v8644_v45 = vld [vmem:[%s12137_s1] ss:$0 sm:$0xff]  ;;  %v10890_v49 = vrot.slane %v2737_v43, %v8874_v19  ;;  %v302_v22 = vld [vmem:[%s8858_s19 + $0xf8] sm:$0xff] }
 0x151   : > { %7676 = vmatmul.mubr.msk.f32.gmra.mrb[48].mxu1 %vm1651_vm8, %v10550_v50  ;;  %v2609_v3 = vrot.slane %v2601_v38, %v8874_v19  ;;  %v4842_v43 = vcombine.low %v10438_v33, %v10746_v56  ;;  %v341_v10 = vmul.f32 %v8644_v45, %v302_v22  ;;  %v12731_v38 = vld [vmem:[#allocation41_spill] sm:$0xff]  ;;  %v10940_v33 = vcombine.high %v10489_v55, %v10489_v55 }
 0x152   : > { %7680 = vmatprep.mubr.msk.f32.mxu1 %vm8745_vm0, %v12485_v37  ;;  %v10887_v42 = vrot.slane %v2721_v54, %v8874_v19  ;;  %v2600_v34 = vcombine.low %v10868_v25, %v10871_v61  ;;  %v2653_v31 = vcombine.low %v12732_v1, %v12731_v38  ;;  %v12744_v38 = vld [vmem:[#allocation60_spill] sm:$0xff] }
 0x153   : > { %8028 = vmatmul.mubr.msk.f32.gmra.mrb[26].mxu0 %vm1651_vm8, %v12723_v40  ;;  %v8645_v40 = vld [vmem:[%s12138_s2] ss:$0 sm:$0xff]  ;;  %v2617_v54 = vcombine.low %v2609_v3, %v10739_v4  ;;  %v10932_v4 = vrot.slane %v7088_v21, %v8874_v19  ;;  %12733 = vst [vmem:[#allocation113_spill] sm:$0xff] %v10940_v33  ;;  %v4846_v3 = vcombine.low %v10489_v55, %v10940_v33 }
 0x154   : > { %8030 = vmatprep.mubr.msk.f32.mxu0 %vm8745_vm0, %v12485_v37  ;;  %v380_v56 = vadd.f32 %v8645_v40, %v341_v10  ;;  %v12743_v10 = vld [vmem:[#allocation55_spill] sm:$0xff] }
 0x155   : > { %7681 = vmatmul.mubr.msk.f32.vlgmr.msra.gmra.mrb[0].mxu1 %vm1651_vm8, %v2566_v5  ;;  %v340_v5 = vmul.f32 %v8644_v45, %v301_v16  ;;  %v10914_v16 = vrot.slane %v2619_v17, %v8874_v19  ;;  %v10949_v45 = vrot.slane %v2653_v31, %v8874_v19  ;;  %v12745_v31 = vld [vmem:[#allocation58_spill] sm:$0xff] }
 0x156   : > { %7683 = vmatprep.mubr.msk.f32.mxu1 %vm8745_vm0, %v12485_v37  ;;  %7756 = vmatpush3.msra.mxu1 %v7119_v23  ;;  %v10902_v23 = vcombine.low %v10887_v42, %v10890_v49 }
 0x157   : > { %8031 = vmatmul.mubr.msk.f32.gmra.mrb[28].mxu0 %vm1651_vm8, %v4839_v29  ;;  %8217 = vmatprep.subr.mxu1 %v12485_v37  ;;  %v379_v29 = vadd.f32 %v8645_v40, %v340_v5  ;;  %v2634_v35 = vcombine.low %v10742_v18, %v10914_v16  ;;  %v2651_v18 = vcombine.low %v10932_v4, %v10781_v41  ;;  %v12734_v5 = vld [vmem:[#allocation45_spill] sm:$0xff]  ;;  %v412_v40 = vmax.f32 %v380_v56, 0.0 }
 0x158   : > { %8033 = vmatprep.mubr.msk.f32.mxu0 %vm8745_vm0, %v12485_v37  ;;  %v4844_v41 = vcombine.low %v10768_v51, %v10512_v53  ;;  %v2668_v24 = vcombine.low %v10784_v63, %v10949_v45  ;;  %v12738_v51 = vld [vmem:[#allocation25_spill] sm:$0xff]  ;;  %v2704_v56 = vcombine.low %v12745_v31, %v12744_v38 }
 0x159   : > { %7684 = vmatmul.mubr.msk.f32.gmra.mrb[2].mxu1 %vm1651_vm8, %v2583_v47  ;;  %v411_v47 = vmax.f32 %v379_v29, 0.0  ;;  %v12737_v29 = vld [vmem:[#allocation54_spill] sm:$0xff]  ;;  %v4845_v22 = vcombine.low %v12738_v51, %v10550_v50 }
 0x15a   : > { %7686 = vmatprep.mubr.msk.f32.mxu1 %vm8745_vm0, %v12485_v37  ;;  %v7089_v53 = vcombine.high %v12673_v46, %v12737_v29 }
 0x15b   : > { %8034 = vmatmul.mubr.msk.f32.gmra.mrb[30].mxu0 %vm1651_vm8, %v4840_v7  ;;  %v4790_v7 = vcombine.high %v411_v47, %v411_v47  ;;  %v10964_v17 = vrot.slane %v411_v47, %v8874_v19  ;;  %v12742_v47 = vld [vmem:[#allocation57_spill] sm:$0xff] }
 0x15c   : > { %8036 = vmatprep.mubr.msk.f32.mxu0 %vm8745_vm0, %v12485_v37 }
 0x15d   : > { %7687 = vmatmul.mubr.msk.f32.gmra.mrb[4].mxu1 %vm1651_vm8, %v2600_v34  ;;  %v2669_v34 = vcombine.low %v12663_v2, %v12734_v5  ;;  %v10967_v2 = vrot.slane %v4790_v7, %v8874_v19  ;;  %v4855_v21 = vcombine.low %v10559_v12, %v10964_v17  ;;  %v10989_v63 = vcombine.high %v10964_v17, %v10964_v17 }
 0x15e   : > { %7689 = vmatprep.mubr.msk.f32.mxu1 %vm8745_vm0, %v12485_v37  ;;  %v4807_v7 = vcombine.high %v412_v40, %v412_v40 }
 0x15f   : > { %8037 = vmatmul.mubr.msk.f32.gmra.mrb[32].mxu0 %vm1651_vm8, %v12730_v28  ;;  %12736 = vst [vmem:[#allocation162_spill] sm:$0xff] %v10967_v2  ;;  %v10975_v60 = vrot.slane %v2669_v34, %v8874_v19  ;;  %v10993_v46 = vcombine.high %v10967_v2, %v10967_v2  ;;  %v10996_v28 = vrot.slane %v412_v40, %v8874_v19  ;;  %v12747_v40 = vld [vmem:[#allocation59_spill] sm:$0xff] }
 0x160   : > { %8039 = vmatprep.mubr.msk.f32.mxu0 %vm8745_vm0, %v12485_v37  ;;  %v4862_v5 = vrot.slane %v4855_v21, %v8874_v19 }
 0x161   : > { %7690 = vmatmul.mubr.msk.f32.gmra.mrb[6].mxu1 %vm1651_vm8, %v2617_v54  ;;  %v4853_v54 = vrot.slane %v4846_v3, %v8874_v19  ;;  %12739 = vst [vmem:[#allocation153_spill] sm:$0xff] %v10993_v46  ;;  %12740 = vst [vmem:[#allocation50_spill] sm:$0xff] %v10996_v28  ;;  %v2685_v50 = vcombine.low %v10975_v60, %v10818_v0  ;;  %v4864_v0 = vcombine.low %v10989_v63, %v10967_v2 }
 0x162   : > { %7692 = vmatprep.mubr.msk.f32.mxu1 %vm8745_vm0, %v12485_v37  ;;  %v4865_v34 = vcombine.low %v10993_v46, %v10996_v28  ;;  %v4863_v51 = vcombine.low %v10581_v62, %v4862_v5  ;;  %v12749_v62 = vld [vmem:[#allocation72_spill] sm:$0xff] }
 0x163   : > { %8040 = vmatmul.mubr.msk.f32.gmra.mrb[34].mxu0 %vm1651_vm8, %v4842_v43  ;;  %v11004_v43 = vrot.slane %v7089_v53, %v8874_v19  ;;  %v11035_v53 = vrot.slane %v4807_v7, %v8874_v19  ;;  %v12751_v7 = vld [vmem:[#allocation74_spill] sm:$0xff]  ;;  %v12752_v5 = vld [vmem:[#allocation80_spill] sm:$0xff] }
 0x164   : > { %8042 = vmatprep.mubr.msk.f32.mxu0 %vm8745_vm0, %v12485_v37 }
 0x165   : > { %7693 = vmatmul.mubr.msk.f32.gmra.mrb[8].mxu1 %vm1651_vm8, %v2634_v35  ;;  %12741 = vst [vmem:[#allocation193_spill] sm:$0xff] %v11004_v43  ;;  %v2703_v35 = vcombine.low %v12743_v10, %v12742_v47  ;;  %v2702_v3 = vcombine.low %v10821_v27, %v11004_v43  ;;  %v4872_v27 = vrot.slane %v4864_v0, %v8874_v19  ;;  %v12750_v47 = vld [vmem:[#allocation73_spill] sm:$0xff]  ;;  %v12753_v0 = vld [vmem:[#allocation76_spill] sm:$0xff] }
 0x166   : > { %7695 = vmatprep.mubr.msk.f32.mxu1 %vm8745_vm0, %v12485_v37  ;;  %v2738_v10 = vcombine.low %v12750_v47, %v12749_v62 }
 0x167   : > { %8043 = vmatmul.mubr.msk.f32.gmra.mrb[36].mxu0 %vm1651_vm8, %v12735_v20  ;;  %v11025_v20 = vrot.slane %v2703_v35, %v8874_v19 }
 0x168   : > { %8045 = vmatprep.mubr.msk.f32.mxu0 %vm8745_vm0, %v12485_v37 }
 0x169   : > { %7696 = vmatmul.mubr.msk.f32.gmra.mrb[10].mxu1 %vm1651_vm8, %v2651_v18  ;;  %v4854_v18 = vcombine.low %v4853_v54, %v10578_v32  ;;  %v11028_v32 = vrot.slane %v2704_v56, %v8874_v19  ;;  %v11043_v54 = vcombine.high %v10996_v28, %v10996_v28  ;;  %v11066_v56 = vrot.slane %v2738_v10, %v8874_v19 }
 0x16a   : > { %7698 = vmatprep.mubr.msk.f32.mxu1 %vm8745_vm0, %v12485_v37 }
 0x16b   : > { %8046 = vmatmul.mubr.msk.f32.gmra.mrb[38].mxu0 %vm1651_vm8, %v4844_v41  ;;  %v12746_v41 = vld [vmem:[#allocation62_spill] sm:$0xff]  ;;  %v2719_v21 = vcombine.low %v11025_v20, %v11028_v32  ;;  %v4881_v38 = vcombine.low %v11043_v54, %v11035_v53 }
 0x16c   : > { %8048 = vmatprep.mubr.msk.f32.mxu0 %vm8745_vm0, %v12485_v37 }
 0x16d   : > { %7699 = vmatmul.mubr.msk.f32.gmra.mrb[12].mxu1 %vm1651_vm8, %v2668_v24  ;;  %v2720_v24 = vcombine.low %v12747_v40, %v12746_v41  ;;  %v12755_v41 = vld [vmem:[#allocation82_spill] sm:$0xff] }
 0x16e   : > { %7701 = vmatprep.mubr.msk.f32.mxu1 %vm8745_vm0, %v12485_v37 }
 0x16f   : > { %8049 = vmatmul.mubr.msk.f32.gmra.mrb[40].mxu0 %vm1651_vm8, %v4845_v22  ;;  %v4879_v22 = vrot.slane %v4865_v34, %v8874_v19  ;;  %v2755_v34 = vcombine.low %v12753_v0, %v12752_v5  ;;  %v12761_v5 = vld [vmem:[#allocation94_spill] sm:$0xff]  ;;  %v12762_v0 = vld [vmem:[#allocation92_spill] sm:$0xff] }
 0x170   : > { %8051 = vmatprep.mubr.msk.f32.mxu0 %vm8745_vm0, %v12485_v37 }
 0x171   : > { %7702 = vmatmul.mubr.msk.f32.gmra.mrb[14].mxu1 %vm1651_vm8, %v2685_v50  ;;  %v11051_v50 = vrot.slane %v2720_v24, %v8874_v19  ;;  %v4880_v35 = vcombine.low %v4872_v27, %v4879_v22  ;;  %v12757_v27 = vld [vmem:[#allocation83_spill] sm:$0xff]  ;;  %v11089_v47 = vrot.slane %v2755_v34, %v8874_v19  ;;  %v2789_v34 = vcombine.low %v12762_v0, %v12761_v5 }
 0x172   : > { %7704 = vmatprep.mubr.msk.f32.mxu1 %vm8745_vm0, %v12485_v37  ;;  %v12768_v5 = vld [vmem:[#allocation95_spill] sm:$0xff] }
 0x173   : > { %8052 = vmatmul.mubr.msk.f32.gmra.mrb[42].mxu0 %vm1651_vm8, %v4854_v18  ;;  %12748 = vst [vmem:[#allocation130_spill] sm:$0xff] %v11051_v50  ;;  %v2736_v31 = vcombine.low %v11051_v50, %v10887_v42  ;;  %v7090_v18 = vcombine.high %v12749_v62, %v12751_v7  ;;  %v12754_v42 = vld [vmem:[#allocation84_spill] sm:$0xff]  ;;  %v2805_v0 = vcombine.low %v12768_v5, %v9611_v14  ;;  %v12775_v5 = vld [vmem:[#allocation110_spill] sm:$0xff]  ;;  %v12792_v50 = vld [vmem:[#allocation145_spill] sm:$0xff] }
 0x174   : > { %8054 = vmatprep.mubr.msk.f32.mxu0 %vm8745_vm0, %v12485_v37  ;;  %v2771_v24 = vcombine.low %v12755_v41, %v12754_v42  ;;  %v12764_v42 = vld [vmem:[#allocation34_spill] sm:$0xff] }
 0x175   : > { %7705 = vmatmul.mubr.msk.f32.gmra.mrb[16].mxu1 %vm1651_vm8, %v2702_v3  ;;  %v4888_v3 = vrot.slane %v4881_v38, %v8874_v19  ;;  %v11086_v62 = vrot.slane %v7090_v18, %v8874_v19  ;;  %v7258_v38 = vld [vmem:[%s12139_s3 + $0x40] sm:$0xff] }
 0x176   : > { %7707 = vmatprep.mubr.msk.f32.mxu1 %vm8745_vm0, %v12485_v37  ;;  %v11097_v10 = vrot.slane %v2771_v24, %v8874_v19  ;;  %v12766_v24 = vld [vmem:[#allocation40_spill] sm:$0xff] }
 0x177   : > { %8055 = vmatmul.mubr.msk.f32.gmra.mrb[44].mxu0 %vm1651_vm8, %v4863_v51  ;;  %v12756_v51 = vld [vmem:[#allocation85_spill] sm:$0xff]  ;;  %12758 = vst [vmem:[#allocation131_spill] sm:$0xff] %v11086_v62 }
 0x178   : > { %8057 = vmatprep.mubr.msk.f32.mxu0 %vm8745_vm0, %v12485_v37  ;;  %v2772_v22 = vcombine.low %v12757_v27, %v12756_v51  ;;  %v12767_v51 = vld [vmem:[#allocation35_spill] sm:$0xff] }
 0x179   : > { %7708 = vmatmul.mubr.msk.f32.gmra.mrb[18].mxu1 %vm1651_vm8, %v2719_v21  ;;  %v2753_v21 = vcombine.low %v10890_v49, %v11066_v56  ;;  %v2770_v49 = vcombine.low %v11086_v62, %v11089_v47 }
 0x17a   : > { %7710 = vmatprep.mubr.msk.f32.mxu1 %vm8745_vm0, %v12485_v37 }
 0x17b   : > { %8058 = vmatmul.mubr.msk.f32.gmra.mrb[46].mxu0 %vm1651_vm8, %v4880_v35  ;;  %v11100_v35 = vrot.slane %v2772_v22, %v8874_v19  ;;  %v5180_v22 = vcombine.low %v12767_v51, %v12766_v24 }
 0x17c   : > { %8060 = vmatprep.mubr.msk.f32.mxu0 %vm8745_vm0, %v12485_v37 }
 0x17d   : > { %7711 = vmatmul.mubr.msk.f32.gmra.mrb[20].mxu1 %vm1651_vm8, %v2736_v31  ;;  %12759 = vst [vmem:[#allocation144_spill] sm:$0xff] %v11100_v35  ;;  %v12760_v31 = vld [vmem:[#allocation90_spill] sm:$0xff] }
 0x17e   : > { %7713 = vmatprep.mubr.msk.f32.mxu1 %vm8745_vm0, %v12485_v37  ;;  %v2788_v18 = vcombine.low %v12692_v8, %v12760_v31  ;;  %v11129_v31 = vrot.slane %v2789_v34, %v8874_v19  ;;  %v12772_v34 = vld [vmem:[#allocation108_spill] sm:$0xff] }
 0x17f   : > { %8061 = vmatmul.mubr.msk.f32.gmra.mrb[48].mxu0 %vm1651_vm8, %v4888_v3  ;;  %v12763_v3 = vld [vmem:[#allocation31_spill] sm:$0xff] }
 0x180   : > { %8065 = vmatprep.mubr.msk.f32.mxu0 %vm8745_vm0, %v12485_v37  ;;  %v12765_v41 = vcombine.low %v12763_v3, %v12764_v42  ;;  %v11126_v8 = vrot.slane %v2788_v18, %v8874_v19  ;;  %v7091_v3 = vcombine.high %v9611_v14, %v12694_v13  ;;  %v12770_v42 = vld [vmem:[#allocation42_spill] sm:$0xff]  ;;  %v12771_v18 = vld [vmem:[#allocation112_spill] sm:$0xff]  ;;  %v11148_v14 = vrot.slane %v2805_v0, %v8874_v19 }
 0x181   : > { %7714 = vmatmul.mubr.msk.f32.gmra.mrb[22].mxu1 %vm1651_vm8, %v2753_v21  ;;  %v2787_v21 = vcombine.low %v11097_v10, %v11100_v35  ;;  %v12781_v35 = vld [vmem:[#allocation127_spill] sm:$0xff] }
 0x182   : > { %7716 = vmatprep.mubr.msk.f32.mxu1 %vm8745_vm0, %v12485_v37  ;;  %v2804_v24 = vcombine.low %v11126_v8, %v11129_v31  ;;  %v11151_v51 = vrot.slane %v7091_v3, %v8874_v19 }
 0x183   : > { %8066 = vmatmul.mubr.msk.f32.vlgmr.msra.gmra.mrb[0].mxu0 %vm1651_vm8, %v12765_v41  ;;  %v2822_v41 = vcombine.low %v12772_v34, %v12771_v18  ;;  %v12777_v18 = vld [vmem:[#allocation47_spill] sm:$0xff] }
 0x184   : > { %8141 = vmatpush3.msra.mxu0 %v7258_v38  ;;  %8068 = vmatprep.mubr.msk.f32.mxu0 %vm8745_vm0, %v12485_v37  ;;  %v12769_v38 = vld [vmem:[#allocation44_spill] sm:$0xff]  ;;  %12773 = vst [vmem:[#allocation65_spill] sm:$0xff] %v11151_v51  ;;  %v2821_v3 = vcombine.low %v11148_v14, %v11151_v51  ;;  %v12784_v51 = vld [vmem:[#allocation133_spill] sm:$0xff] }
 0x185   : > { %7717 = vmatmul.mubr.msk.f32.gmra.mrb[24].mxu1 %vm1651_vm8, %v2770_v49  ;;  %v5181_v49 = vcombine.low %v12770_v42, %v12769_v38  ;;  %v12776_v42 = vld [vmem:[#allocation52_spill] sm:$0xff]  ;;  %v11163_v0 = vrot.slane %v2822_v41, %v8874_v19  ;;  %v12782_v41 = vld [vmem:[#allocation61_spill] sm:$0xff] }
 0x186   : > { %7719 = vmatprep.mubr.msk.f32.mxu1 %vm8745_vm0, %v12485_v37 }
 0x187   : > { %8069 = vmatmul.mubr.msk.f32.gmra.mrb[2].mxu0 %vm1651_vm8, %v5180_v22  ;;  %v12774_v22 = vld [vmem:[#allocation115_spill] sm:$0xff] }
 0x188   : > { %8071 = vmatprep.mubr.msk.f32.mxu0 %vm8745_vm0, %v12485_v37  ;;  %v2823_v38 = vcombine.low %v12775_v5, %v12774_v22  ;;  %v12779_v22 = vld [vmem:[#allocation118_spill] sm:$0xff] }
 0x189   : > { %7720 = vmatmul.mubr.msk.f32.gmra.mrb[26].mxu1 %vm1651_vm8, %v2787_v21  ;;  %v5182_v21 = vcombine.low %v12777_v18, %v12776_v42  ;;  %v12780_v5 = vld [vmem:[#allocation114_spill] sm:$0xff]  ;;  %v2840_v42 = vcombine.low %v12697_v52, %v12781_v35  ;;  %v12783_v18 = vld [vmem:[#allocation53_spill] sm:$0xff] }
 0x18a   : > { %7722 = vmatprep.mubr.msk.f32.mxu1 %vm8745_vm0, %v12485_v37  ;;  %v11169_v34 = vrot.slane %v2823_v38, %v8874_v19  ;;  %v12785_v38 = vld [vmem:[#allocation132_spill] sm:$0xff] }
 0x18b   : > { %8072 = vmatmul.mubr.msk.f32.gmra.mrb[4].mxu0 %vm1651_vm8, %v5181_v49  ;;  %v2839_v49 = vcombine.low %v12780_v5, %v12779_v22  ;;  %v2856_v62 = vcombine.low %v12785_v38, %v12784_v51  ;;  %v11191_v35 = vrot.slane %v2840_v42, %v8874_v19  ;;  %v12788_v51 = vld [vmem:[#allocation66_spill] sm:$0xff] }
 0x18c   : > { %8074 = vmatprep.mubr.msk.f32.mxu0 %vm8745_vm0, %v12485_v37  ;;  %12778 = vst [vmem:[#allocation157_spill] sm:$0xff] %v11169_v34  ;;  %v2838_v22 = vcombine.low %v11163_v0, %v11169_v34 }
 0x18d   : > { %7723 = vmatmul.mubr.msk.f32.gmra.mrb[28].mxu1 %vm1651_vm8, %v2804_v24  ;;  %v5183_v24 = vcombine.low %v12783_v18, %v12782_v41  ;;  %v11188_v52 = vrot.slane %v2839_v49, %v8874_v19  ;;  %v12789_v18 = vld [vmem:[#allocation63_spill] sm:$0xff]  ;;  %v7092_v49 = vcombine.high %v9866_v30, %v12699_v11  ;;  %v11208_v38 = vrot.slane %v2856_v62, %v8874_v19  ;;  %v12801_v62 = vld [vmem:[#allocation69_spill] sm:$0xff] }
 0x18e   : > { %7725 = vmatprep.mubr.msk.f32.mxu1 %vm8745_vm0, %v12485_v37 }
 0x18f   : > { %8075 = vmatmul.mubr.msk.f32.gmra.mrb[6].mxu0 %vm1651_vm8, %v5182_v21  ;;  %12786 = vst [vmem:[#allocation99_spill] sm:$0xff] %v11188_v52  ;;  %v12787_v21 = vld [vmem:[#allocation135_spill] sm:$0xff]  ;;  %v2855_v42 = vcombine.low %v11188_v52, %v11191_v35 }
 0x190   : > { %8077 = vmatprep.mubr.msk.f32.mxu0 %vm8745_vm0, %v12485_v37  ;;  %v2857_v41 = vcombine.low %v12787_v21, %v9866_v30  ;;  %v12797_v30 = vld [vmem:[#allocation104_spill] sm:$0xff] }
 0x191   : > { %7726 = vmatmul.mubr.msk.f32.gmra.mrb[30].mxu1 %vm1651_vm8, %v2821_v3  ;;  %v5184_v3 = vcombine.low %v12789_v18, %v12788_v51  ;;  %v12793_v18 = vld [vmem:[#allocation97_spill] sm:$0xff] }
 0x192   : > { %7728 = vmatprep.mubr.msk.f32.mxu1 %vm8745_vm0, %v12485_v37  ;;  %v11211_v21 = vrot.slane %v2857_v41, %v8874_v19  ;;  %v12795_v43 = vcombine.low %v12793_v18, %v12794_v26  ;;  %v12802_v41 = vld [vmem:[#allocation67_spill] sm:$0xff]  ;;  %v11235_v26 = vrot.slane %v7092_v49, %v8874_v19  ;;  %v12805_v18 = vld [vmem:[#allocation156_spill] sm:$0xff] }
 0x193   : > { %8078 = vmatmul.mubr.msk.f32.gmra.mrb[8].mxu0 %vm1651_vm8, %v5183_v24  ;;  %v12791_v24 = vld [vmem:[#allocation149_spill] sm:$0xff] }
 0x194   : > { %8080 = vmatprep.mubr.msk.f32.mxu0 %vm8745_vm0, %v12485_v37  ;;  %12790 = vst [vmem:[#allocation189_spill] sm:$0xff] %v11211_v21  ;;  %v2874_v51 = vcombine.low %v12792_v50, %v12791_v24  ;;  %v11219_v34 = vrot.slane %v12795_v43, %v8874_v19  ;;  %v5185_v50 = vcombine.low %v12802_v41, %v12801_v62  ;;  %12803 = vst [vmem:[#allocation98_spill] sm:$0xff] %v11235_v26  ;;  %v12804_v24 = vld [vmem:[#allocation160_spill] sm:$0xff]  ;;  %v12809_v41 = vld [vmem:[#allocation75_spill] sm:$0xff] }
 0x195   : > { %7729 = vmatmul.mubr.msk.f32.gmra.mrb[32].mxu1 %vm1651_vm8, %v2838_v22  ;;  %v12798_v22 = vld [vmem:[#allocation105_spill] sm:$0xff] }
 0x196   : > { %12796 = vst [vmem:[#allocation91_spill] sm:$0xff] %v11219_v34  ;;  %v12799_v11 = vcombine.low %v12797_v30, %v12798_v22  ;;  %7731 = vmatprep.mubr.msk.f32.mxu1 %vm8745_vm0, %v12485_v37  ;;  %v11241_v43 = vrot.slane %v2874_v51, %v8874_v19  ;;  %v12806_v30 = vld [vmem:[#allocation161_spill] sm:$0xff]  ;;  %v12807_v22 = vld [vmem:[#allocation158_spill] sm:$0xff]  ;;  %v12810_v51 = vld [vmem:[#allocation168_spill] sm:$0xff] }
 0x197   : > { %8081 = vmatmul.mubr.msk.f32.gmra.mrb[10].mxu0 %vm1651_vm8, %v5184_v3  ;;  %v2890_v3 = vcombine.low %v12805_v18, %v12804_v24  ;;  %v2891_v62 = vcombine.low %v12807_v22, %v12806_v30  ;;  %v2907_v24 = vcombine.low %v12705_v39, %v12810_v51  ;;  %v12814_v39 = vld [vmem:[#allocation86_spill] sm:$0xff] }
 0x198   : > { %v11225_v52 = vrot.slane %v12799_v11, %v8874_v19  ;;  %8083 = vmatprep.mubr.msk.f32.mxu0 %vm8745_vm0, %v12485_v37  ;;  %v2872_v11 = vcombine.low %v11208_v38, %v11211_v21  ;;  %v2889_v18 = vcombine.low %v11235_v26, %v11241_v43  ;;  %v12817_v51 = vld [vmem:[#allocation174_spill] sm:$0xff] }
 0x199   : > { %7732 = vmatmul.mubr.msk.f32.gmra.mrb[34].mxu1 %vm1651_vm8, %v2855_v42  ;;  %v12808_v42 = vld [vmem:[#allocation79_spill] sm:$0xff]  ;;  %v11262_v30 = vrot.slane %v2890_v3, %v8874_v19  ;;  %v11265_v49 = vrot.slane %v2891_v62, %v8874_v19  ;;  %v11277_v3 = vrot.slane %v2907_v24, %v8874_v19  ;;  %v12818_v24 = vld [vmem:[#allocation89_spill] sm:$0xff]  ;;  %v12824_v34 = vld [vmem:[#allocation194_spill] sm:$0xff] }
 0x19a   : > { %12800 = vst [vmem:[#allocation103_spill] sm:$0xff] %v11225_v52  ;;  %7734 = vmatprep.mubr.msk.f32.mxu1 %vm8745_vm0, %v12485_v37  ;;  %v5186_v21 = vcombine.low %v12809_v41, %v12808_v42  ;;  %v12813_v52 = vld [vmem:[#allocation173_spill] sm:$0xff] }
 0x19b   : > { %8084 = vmatmul.mubr.msk.f32.gmra.mrb[12].mxu0 %vm1651_vm8, %v5185_v50  ;;  %12811 = vst [vmem:[#allocation124_spill] sm:$0xff] %v11265_v49  ;;  %v12812_v50 = vld [vmem:[#allocation166_spill] sm:$0xff]  ;;  %v12815_v41 = vld [vmem:[#allocation81_spill] sm:$0xff]  ;;  %v2906_v62 = vcombine.low %v11262_v30, %v11265_v49 }
 0x19c   : > { %8086 = vmatprep.mubr.msk.f32.mxu0 %vm8745_vm0, %v12485_v37  ;;  %v2908_v42 = vcombine.low %v12813_v52, %v12812_v50  ;;  %v7093_v50 = vcombine.high %v12662_v6, %v12707_v57 }
 0x19d   : > { %7735 = vmatmul.mubr.msk.f32.gmra.mrb[36].mxu1 %vm1651_vm8, %v2872_v11  ;;  %v5187_v11 = vcombine.low %v12815_v41, %v12814_v39  ;;  %v12819_v39 = vld [vmem:[#allocation87_spill] sm:$0xff]  ;;  %v12820_v41 = vld [vmem:[#allocation192_spill] sm:$0xff] }
 0x19e   : > { %7737 = vmatprep.mubr.msk.f32.mxu1 %vm8745_vm0, %v12485_v37  ;;  %v11283_v52 = vrot.slane %v2908_v42, %v8874_v19  ;;  %v12821_v42 = vld [vmem:[#allocation190_spill] sm:$0xff]  ;;  %v11305_v26 = vrot.slane %v7093_v50, %v8874_v19 }
 0x19f   : > { %8087 = vmatmul.mubr.msk.f32.gmra.mrb[14].mxu0 %vm1651_vm8, %v5186_v21  ;;  %v2924_v21 = vcombine.low %v12817_v51, %v12662_v6  ;;  %v2941_v49 = vcombine.low %v12821_v42, %v12820_v41  ;;  %v12826_v41 = vld [vmem:[#allocation93_spill] sm:$0xff]  ;;  %v12830_v42 = vld [vmem:[#allocation100_spill] sm:$0xff] }
 0x1a0   : > { %8089 = vmatprep.mubr.msk.f32.mxu0 %vm8745_vm0, %v12485_v37  ;;  %12816 = vst [vmem:[#allocation126_spill] sm:$0xff] %v11283_v52  ;;  %v2923_v51 = vcombine.low %v11277_v3, %v11283_v52  ;;  %12822 = vst [vmem:[#allocation128_spill] sm:$0xff] %v11305_v26 }
 0x1a1   : > { %7738 = vmatmul.mubr.msk.f32.gmra.mrb[38].mxu1 %vm1651_vm8, %v2889_v18  ;;  %v5188_v18 = vcombine.low %v12819_v39, %v12818_v24  ;;  %v11302_v6 = vrot.slane %v2924_v21, %v8874_v19  ;;  %v12825_v39 = vld [vmem:[#allocation96_spill] sm:$0xff]  ;;  %v11320_v50 = vrot.slane %v2941_v49, %v8874_v19 }
 0x1a2   : > { %7740 = vmatprep.mubr.msk.f32.mxu1 %vm8745_vm0, %v12485_v37 }
 0x1a3   : > { %8090 = vmatmul.mubr.msk.f32.gmra.mrb[16].mxu0 %vm1651_vm8, %v5187_v11  ;;  %v12823_v11 = vld [vmem:[#allocation198_spill] sm:$0xff]  ;;  %v2940_v21 = vcombine.low %v11302_v6, %v11305_v26  ;;  %12827 = vst [vmem:[#allocation150_spill] sm:$0xff] %v11320_v50 }
 0x1a4   : > { %8092 = vmatprep.mubr.msk.f32.mxu0 %vm8745_vm0, %v12485_v37  ;;  %v2942_v24 = vcombine.low %v12824_v34, %v12823_v11 }
 0x1a5   : > { %7741 = vmatmul.mubr.msk.f32.gmra.mrb[40].mxu1 %vm1651_vm8, %v2906_v62  ;;  %v5189_v62 = vcombine.low %v12826_v41, %v12825_v39  ;;  %v12833_v41 = vld [vmem:[#allocation197_spill] sm:$0xff] }
 0x1a6   : > { %7743 = vmatprep.mubr.msk.f32.mxu1 %vm8745_vm0, %v12485_v37  ;;  %v11323_v34 = vrot.slane %v2942_v24, %v8874_v19  ;;  %v12832_v24 = vld [vmem:[#allocation200_spill] sm:$0xff] }
 0x1a7   : > { %8093 = vmatmul.mubr.msk.f32.gmra.mrb[18].mxu0 %vm1651_vm8, %v5188_v18  ;;  %v12829_v18 = vld [vmem:[#allocation107_spill] sm:$0xff]  ;;  %v2958_v26 = vcombine.low %v12833_v41, %v12832_v24  ;;  %v3711_v41 = vrot.slane %v10559_v12, 7 }
 0x1a8   : > { %8095 = vmatprep.mubr.msk.f32.mxu0 %vm8745_vm0, %v12485_v37  ;;  %12828 = vst [vmem:[#allocation183_spill] sm:$0xff] %v11323_v34  ;;  %v5190_v11 = vcombine.low %v12830_v42, %v12829_v18  ;;  %v2957_v49 = vcombine.low %v11320_v50, %v11323_v34  ;;  %v12835_v18 = vld [vmem:[#allocation111_spill] sm:$0xff] }
 0x1a9   : > { %7744 = vmatmul.mubr.msk.f32.gmra.mrb[42].mxu1 %vm1651_vm8, %v2923_v51  ;;  %v12831_v51 = vld [vmem:[#allocation16_spill] sm:$0xff]  ;;  %v12853_v50 = vld [vmem:[#allocation171_spill] sm:$0xff] }
 0x1aa   : > { %7746 = vmatprep.mubr.msk.f32.mxu1 %vm8745_vm0, %v12485_v37  ;;  %v3268_v39 = vcombine.low %v12656_v59, %v12831_v51  ;;  %v12837_v51 = vld [vmem:[#allocation23_spill] sm:$0xff] }
 0x1ab   : > { %8096 = vmatmul.mubr.msk.f32.gmra.mrb[20].mxu0 %vm1651_vm8, %v5189_v62  ;;  %v12834_v62 = vld [vmem:[#allocation121_spill] sm:$0xff]  ;;  %v3277_v24 = vcombine.low %v12728_v44, %v12837_v51  ;;  %v12840_v44 = vld [vmem:[#allocation143_spill] sm:$0xff] }
 0x1ac   : > { %8098 = vmatprep.mubr.msk.f32.mxu0 %vm8745_vm0, %v12485_v37  ;;  %v5191_v42 = vcombine.low %v12835_v18, %v12834_v62  ;;  %v3275_v59 = vrot.slane %v3268_v39, %v8874_v19  ;;  %v12839_v62 = vld [vmem:[#allocation125_spill] sm:$0xff] }
 0x1ad   : > { %7747 = vmatmul.mubr.msk.f32.gmra.mrb[44].mxu1 %vm1651_vm8, %v2940_v21  ;;  %v11349_v21 = vrot.slane %v2958_v26, %v8874_v19  ;;  %v3284_v26 = vrot.slane %v3277_v24, %v8874_v19  ;;  %v8646_v24 = vld [vmem:[%s12139_s3 + $0x20] sm:$0xff] }
 0x1ae   : > { %7749 = vmatprep.mubr.msk.f32.mxu1 %vm8745_vm0, %v12485_v37  ;;  %v3276_v39 = vcombine.low %v3275_v59, %v10868_v25  ;;  %v12842_v59 = vld [vmem:[#allocation33_spill] sm:$0xff] }
 0x1af   : > { %8099 = vmatmul.mubr.msk.f32.gmra.mrb[22].mxu0 %vm1651_vm8, %v5190_v11  ;;  %12836 = vst [vmem:[#allocation26_spill] sm:$0xff] %v11349_v21  ;;  %v12838_v11 = vld [vmem:[#allocation129_spill] sm:$0xff]  ;;  %v3285_v25 = vcombine.low %v10871_v61, %v3284_v26  ;;  %v3287_v51 = vcombine.low %v12661_v48, %v12842_v59  ;;  %v3696_v61 = vrot.slane %v10940_v33, 7  ;;  %v12848_v59 = vld [vmem:[#allocation30_spill] sm:$0xff]  ;;  %v12852_v33 = vld [vmem:[#allocation20_spill] sm:$0xff] }
 0x1b0   : > { %8101 = vmatprep.mubr.msk.f32.mxu0 %vm8745_vm0, %v12485_v37  ;;  %v5192_v18 = vcombine.low %v12839_v62, %v12838_v11  ;;  %v12843_v11 = vld [vmem:[#allocation155_spill] sm:$0xff]  ;;  %v12844_v62 = vld [vmem:[#allocation148_spill] sm:$0xff] }
 0x1b1   : > { %7750 = vmatmul.mubr.msk.f32.gmra.mrb[46].mxu1 %vm1651_vm8, %v2957_v49  ;;  %v12841_v49 = vld [vmem:[#allocation139_spill] sm:$0xff]  ;;  %v3294_v48 = vrot.slane %v3287_v51, %v8874_v19 }
 0x1b2   : > { %7752 = vmatprep.mubr.msk.f32.mxu1 %vm8745_vm0, %v12485_v37  ;;  %v12849_v51 = vld [vmem:[#allocation43_spill] sm:$0xff] }
 0x1b3   : > { %8102 = vmatmul.mubr.msk.f32.gmra.mrb[24].mxu0 %vm1651_vm8, %v5191_v42  ;;  %v5193_v42 = vcombine.low %v12841_v49, %v12840_v44  ;;  %v12846_v44 = vld [vmem:[#allocation172_spill] sm:$0xff]  ;;  %v12847_v49 = vld [vmem:[#allocation159_spill] sm:$0xff] }
 0x1b4   : > { %8104 = vmatprep.mubr.msk.f32.mxu0 %vm8745_vm0, %v12485_v37 }
 0x1b5   : > { %7753 = vmatmul.mubr.msk.f32.gmra.mrb[48].mxu1 %vm1651_vm8, %v11349_v21 }
 0x1b6   : > { %7757 = vmatprep.mubr.msk.f32.mxu1 %vm8745_vm0, %v12485_v37 }
 0x1b7   : > { %8105 = vmatmul.mubr.msk.f32.gmra.mrb[26].mxu0 %vm1651_vm8, %v5192_v18  ;;  %v5194_v18 = vcombine.low %v12844_v62, %v12843_v11  ;;  %v3297_v11 = vcombine.low %v12732_v1, %v12849_v51  ;;  %v12850_v62 = vld [vmem:[#allocation180_spill] sm:$0xff]  ;;  %v12854_v1 = vld [vmem:[#allocation109_spill] sm:$0xff] }
 0x1b8   : > { %8107 = vmatprep.mubr.msk.f32.mxu0 %vm8745_vm0, %v12485_v37  ;;  %v3714_v51 = vrot.slane %v12854_v1, 7  ;;  %v3713_v1 = vrot.slane %v3711_v41, 2 }
 0x1b9   : > { %7758 = vmatmul.mubr.msk.f32.vlgmr.msra.gmra.mrb[0].mxu1 %vm1651_vm8, %v3276_v39  ;;  %v12845_v39 = vld [vmem:[#allocation10_spill] sm:$0xff] }
 0x1ba   : > { %7760 = vmatprep.mubr.msk.f32.mxu1 %vm8745_vm0, %v12485_v37  ;;  %8218 = vmatpush3.msra.mxu1 %v8646_v24  ;;  %v3699_v26 = vrot.slane %v12845_v39, 7  ;;  %v3702_v24 = vrot.slane %v12848_v59, 7  ;;  %v3705_v39 = vrot.slane %v12852_v33, 7 }
 0x1bb   : > { %8108 = vmatmul.mubr.msk.f32.gmra.mrb[28].mxu0 %vm1651_vm8, %v5193_v42  ;;  %v5195_v42 = vcombine.low %v12847_v49, %v12846_v44  ;;  %v7145_v44 = vrot.slane %v10489_v55, 9  ;;  %v3698_v49 = vrot.slane %v3696_v61, 2  ;;  %v12855_v55 = vld [vmem:[#allocation191_spill] sm:$0xff] }
 0x1bc   : > { %8110 = vmatprep.mubr.msk.f32.mxu0 %vm8745_vm0, %v12485_v37  ;;  %v3701_v34 = vrot.slane %v3699_v26, 2  ;;  %v3704_v59 = vrot.slane %v3702_v24, 2 }
 0x1bd   : > { %7761 = vmatmul.mubr.msk.f32.gmra.mrb[2].mxu1 %vm1651_vm8, %v3285_v25  ;;  %v3295_v25 = vcombine.low %v10914_v16, %v3294_v48  ;;  %v3708_v48 = vrot.slane %v12853_v50, 7  ;;  %v11423_v12 = vsel %vm8930_vm7, %v7145_v44, %v3696_v61  ;;  %v11427_v33 = vsel %vm8930_vm7, %v3698_v49, %v3699_v26  ;;  %v12862_v49 = vld [vmem:[#allocation195_spill] sm:$0xff] }
 0x1be   : > { %7763 = vmatprep.mubr.msk.f32.mxu1 %vm8745_vm0, %v12485_v37  ;;  %12858 = vst [vmem:[#allocation27_spill] sm:$0xff] %v11427_v33  ;;  %v7231_v61 = vrot.slane %v10964_v17, 9  ;;  %v5160_v26 = vrot.slane %v10967_v2, 7  ;;  %v5163_v44 = vrot.slane %v10993_v46, 7  ;;  %v5200_v2 = vcombine.low %v11423_v12, %v11427_v33 }
 0x1bf   : > { %8111 = vmatmul.mubr.msk.f32.gmra.mrb[30].mxu0 %vm1651_vm8, %v5194_v18  ;;  %v12851_v18 = vld [vmem:[#allocation175_spill] sm:$0xff] }
 0x1c0   : > { %8113 = vmatprep.mubr.msk.f32.mxu0 %vm8745_vm0, %v12485_v37  ;;  %v5196_v21 = vcombine.low %v12851_v18, %v12850_v62  ;;  %v5157_v62 = vrot.slane %v10989_v63, 7  ;;  %v3304_v18 = vrot.slane %v3297_v11, %v8874_v19  ;;  %v11431_v63 = vsel %vm8930_vm7, %v3701_v34, %v3702_v24  ;;  %v12861_v24 = vld [vmem:[#allocation204_spill] sm:$0xff] }
 0x1c1   : > { %7764 = vmatmul.mubr.msk.f32.gmra.mrb[4].mxu1 %vm1651_vm8, %v10754_v9  ;;  %v3710_v11 = vrot.slane %v3708_v48, 2  ;;  %v5166_v34 = vrot.slane %v10996_v28, 7 }
 0x1c2   : > { %7766 = vmatprep.mubr.msk.f32.mxu1 %vm8745_vm0, %v12485_v37 }
 0x1c3   : > { %8114 = vmatmul.mubr.msk.f32.gmra.mrb[32].mxu0 %vm1651_vm8, %v5195_v42  ;;  %v12856_v42 = vld [vmem:[#allocation184_spill] sm:$0xff] }
 0x1c4   : > { %8116 = vmatprep.mubr.msk.f32.mxu0 %vm8745_vm0, %v12485_v37  ;;  %v5197_v52 = vcombine.low %v12856_v42, %v12855_v55  ;;  %v11436_v55 = vsel %vm8930_vm7, %v3704_v59, %v3705_v39  ;;  %v5198_v42 = vcombine.low %v12862_v49, %v12861_v24  ;;  %v5159_v24 = vrot.slane %v5157_v62, 2 }
 0x1c5   : > { %7767 = vmatmul.mubr.msk.f32.gmra.mrb[6].mxu1 %vm1651_vm8, %v3295_v25  ;;  %v3707_v25 = vrot.slane %v3705_v39, 2  ;;  %12859 = vst [vmem:[#allocation28_spill] sm:$0xff] %v11436_v55  ;;  %v12860_v39 = vld [vmem:[#allocation56_spill] sm:$0xff]  ;;  %v5201_v28 = vcombine.low %v11431_v63, %v11436_v55  ;;  %v5162_v49 = vrot.slane %v5160_v26, 2  ;;  %v5208_v55 = vrot.slane %v5200_v2, %v8874_v19 }
 0x1c6   : > { %7769 = vmatprep.mubr.msk.f32.mxu1 %vm8745_vm0, %v12485_v37  ;;  %v3307_v59 = vcombine.low %v12737_v29, %v12860_v39  ;;  %v11464_v29 = vsel %vm8930_vm7, %v3710_v11, %v3711_v41  ;;  %v5158_v39 = vsel %vm8930_vm7, %v7231_v61, %v5157_v62  ;;  %v12863_v11 = vld [vmem:[#allocation64_spill] sm:$0xff] }
 0x1c7   : > { %8117 = vmatmul.mubr.msk.f32.gmra.mrb[34].mxu0 %vm1651_vm8, %v5196_v21  ;;  %v3305_v21 = vcombine.low %v3304_v18, %v10975_v60  ;;  %v11459_v46 = vsel %vm8930_vm7, %v3707_v25, %v3708_v48  ;;  %v11468_v18 = vsel %vm8930_vm7, %v3713_v1, %v3714_v51  ;;  %v5165_v48 = vrot.slane %v5163_v44, 2  ;;  %v12864_v1 = vld [vmem:[#allocation21_spill] sm:$0xff]  ;;  %v12865_v62 = vld [vmem:[#allocation8_spill] sm:$0xff] }
 0x1c8   : > { %8119 = vmatprep.mubr.msk.f32.mxu0 %vm8745_vm0, %v12485_v37  ;;  %v5168_v25 = vrot.slane %v5166_v34, 2  ;;  %v3314_v41 = vrot.slane %v3307_v59, %v8874_v19  ;;  %v3316_v51 = vcombine.low %v12747_v40, %v12863_v11  ;;  %v5199_v61 = vcombine.low %v12865_v62, %v12864_v1 }
 0x1c9   : > { %7770 = vmatmul.mubr.msk.f32.gmra.mrb[8].mxu1 %vm1651_vm8, %v10793_v36  ;;  %v5215_v33 = vrot.slane %v5201_v28, %v8874_v19  ;;  %v5218_v59 = vcombine.low %v11468_v18, %v5158_v39  ;;  %v5161_v40 = vsel %vm8930_vm7, %v5159_v24, %v5160_v26  ;;  %v11493_v11 = vcombine.high %v11035_v53, %v11035_v53 }
 0x1ca   : > { %7772 = vmatprep.mubr.msk.f32.mxu1 %vm8745_vm0, %v12485_v37  ;;  %v5164_v2 = vsel %vm8930_vm7, %v5162_v49, %v5163_v44  ;;  %v5167_v28 = vsel %vm8930_vm7, %v5165_v48, %v5166_v34  ;;  %v5172_v39 = vrot.slane %v11035_v53, 7  ;;  %v3315_v26 = vcombine.low %v3314_v41, %v11025_v20 }
 0x1cb   : > { %8120 = vmatmul.mubr.msk.f32.gmra.mrb[36].mxu0 %vm1651_vm8, %v5197_v52  ;;  %v5169_v52 = vrot.slane %v11043_v54, 7  ;;  %v3323_v24 = vrot.slane %v3316_v51, %v8874_v19  ;;  %v5216_v1 = vcombine.low %v5208_v55, %v5215_v33  ;;  %v5232_v34 = vrot.slane %v5218_v59, %v8874_v19  ;;  %v12866_v33 = vld [vmem:[#allocation78_spill] sm:$0xff] }
 0x1cc   : > { %8122 = vmatprep.mubr.msk.f32.mxu0 %vm8745_vm0, %v12485_v37  ;;  %v5234_v49 = vcombine.low %v5161_v40, %v5164_v2  ;;  %v5174_v62 = vrot.slane %v5172_v39, 2  ;;  %v5175_v41 = vrot.slane %v11493_v11, 7  ;;  %v3326_v55 = vcombine.low %v12751_v7, %v12866_v33 }
 0x1cd   : > { %7773 = vmatmul.mubr.msk.f32.gmra.mrb[10].mxu1 %vm1651_vm8, %v3305_v21  ;;  %v5217_v21 = vcombine.low %v11459_v46, %v11464_v29  ;;  %v3324_v51 = vcombine.low %v11028_v32, %v3323_v24  ;;  %v11552_v24 = vcombine.low %v11089_v47, %v11097_v10  ;;  %v5526_v47 = vcombine.low %v10914_v16, %v10932_v4  ;;  %v12869_v4 = vld [vmem:[#allocation157_spill] sm:$0xff] }
 0x1ce   : > { %7775 = vmatprep.mubr.msk.f32.mxu1 %vm8745_vm0, %v12485_v37  ;;  %v5176_v40 = vsel %vm8930_vm7, %v5174_v62, %v5175_v41  ;;  %v3333_v7 = vrot.slane %v3326_v55, %v8874_v19  ;;  %v11576_v10 = vcombine.low %v11129_v31, %v11148_v14  ;;  %v12870_v14 = vld [vmem:[#allocation146_spill] sm:$0xff]  ;;  %v12873_v62 = vld [vmem:[#allocation189_spill] sm:$0xff] }
 0x1cf   : > { %8123 = vmatmul.mubr.msk.f32.gmra.mrb[38].mxu0 %vm1651_vm8, %v5198_v42  ;;  %v5170_v42 = vsel %vm8930_vm7, %v5168_v25, %v5169_v52  ;;  %v5225_v44 = vrot.slane %v5217_v21, %v8874_v19  ;;  %v5171_v25 = vrot.slane %v5169_v52, 2  ;;  %v5242_v21 = vrot.slane %v5234_v49, %v8874_v19 }
 0x1d0   : > { %8125 = vmatprep.mubr.msk.f32.mxu0 %vm8745_vm0, %v12485_v37  ;;  %v5235_v48 = vcombine.low %v5167_v28, %v5170_v42  ;;  %v3334_v50 = vcombine.low %v11066_v56, %v3333_v7  ;;  %v12867_v42 = vld [vmem:[#allocation88_spill] sm:$0xff]  ;;  %v3355_v49 = vcombine.low %v12780_v5, %v9809_v58  ;;  %v5527_v58 = vcombine.low %v10949_v45, %v10975_v60  ;;  %v12871_v5 = vld [vmem:[#allocation141_spill] sm:$0xff]  ;;  %v12882_v7 = vld [vmem:[#allocation10_spill] sm:$0xff] }
 0x1d1   : > { %7776 = vmatmul.mubr.msk.f32.gmra.mrb[12].mxu1 %vm1651_vm8, %v10835_v15  ;;  %v5173_v59 = vsel %vm8930_vm7, %v5171_v25, %v5172_v39  ;;  %v3336_v39 = vcombine.low %v12757_v27, %v12867_v42  ;;  %v12872_v60 = vld [vmem:[#allocation193_spill] sm:$0xff]  ;;  %v12885_v42 = vld [vmem:[#allocation30_spill] sm:$0xff] }
 0x1d2   : > { %7778 = vmatprep.mubr.msk.f32.mxu1 %vm8745_vm0, %v12485_v37  ;;  %v5249_v52 = vrot.slane %v5235_v48, %v8874_v19  ;;  %v5251_v28 = vcombine.low %v5173_v59, %v5176_v40  ;;  %v3362_v16 = vrot.slane %v3355_v49, %v8874_v19  ;;  %v3365_v48 = vcombine.low %v12871_v5, %v12870_v14  ;;  %v12880_v59 = vld [vmem:[#allocation197_spill] sm:$0xff]  ;;  %v12892_v14 = vld [vmem:[#allocation106_spill] sm:$0xff] }
 0x1d3   : > { %8126 = vmatmul.mubr.msk.f32.gmra.mrb[40].mxu0 %vm1651_vm8, %v5199_v61  ;;  %v5233_v61 = vcombine.low %v5225_v44, %v5232_v34  ;;  %v12868_v44 = vld [vmem:[#allocation101_spill] sm:$0xff]  ;;  %v5528_v25 = vcombine.low %v12872_v60, %v11025_v20  ;;  %v11636_v20 = vcombine.low %v11241_v43, %v11262_v30  ;;  %v12877_v43 = vld [vmem:[#allocation131_spill] sm:$0xff] }
 0x1d4   : > { %8128 = vmatprep.mubr.msk.f32.mxu0 %vm8745_vm0, %v12485_v37  ;;  %v5250_v2 = vcombine.low %v5242_v21, %v5249_v52  ;;  %v3346_v34 = vcombine.low %v12694_v13, %v12868_v44  ;;  %v3363_v31 = vcombine.low %v12869_v4, %v3362_v16  ;;  %v3372_v45 = vrot.slane %v3365_v48, %v8874_v19  ;;  %v12879_v52 = vld [vmem:[#allocation9_spill] sm:$0xff]  ;;  %v12893_v48 = vld [vmem:[#allocation120_spill] sm:$0xff] }
 0x1d5   : > { %7779 = vmatmul.mubr.msk.f32.gmra.mrb[14].mxu1 %vm1651_vm8, %v3315_v26  ;;  %v5258_v26 = vrot.slane %v5251_v28, %v8874_v19  ;;  %v5530_v30 = vcombine.low %v11066_v56, %v12877_v43  ;;  %v3394_v40 = vcombine.low %v12880_v59, %v12879_v52  ;;  %v12901_v43 = vld [vmem:[#allocation103_spill] sm:$0xff]  ;;  %v12904_v52 = vld [vmem:[#allocation136_spill] sm:$0xff] }
 0x1d6   : > { %7781 = vmatprep.mubr.msk.f32.mxu1 %vm8745_vm0, %v12485_v37  ;;  %v3353_v13 = vrot.slane %v3346_v34, %v8874_v19 }
 0x1d7   : > { %8129 = vmatmul.mubr.msk.f32.gmra.mrb[42].mxu0 %vm1651_vm8, %v5216_v1  ;;  %v3343_v1 = vrot.slane %v3336_v39, %v8874_v19 }
 0x1d8   : > { %8131 = vmatprep.mubr.msk.f32.mxu0 %vm8745_vm0, %v12485_v37 }
 0x1d9   : > { %7782 = vmatmul.mubr.msk.f32.gmra.mrb[16].mxu1 %vm1651_vm8, %v3324_v51  ;;  %v3344_v27 = vcombine.low %v3343_v1, %v11126_v8 }
 0x1da   : > { %7784 = vmatprep.mubr.msk.f32.mxu1 %vm8745_vm0, %v12485_v37 }
 0x1db   : > { %8132 = vmatmul.mubr.msk.f32.gmra.mrb[44].mxu0 %vm1651_vm8, %v5233_v61  ;;  %v12878_v61 = vld [vmem:[#allocation126_spill] sm:$0xff] }
 0x1dc   : > { %8134 = vmatprep.mubr.msk.f32.mxu0 %vm8745_vm0, %v12485_v37  ;;  %v11660_v21 = vcombine.low %v12878_v61, %v11302_v6  ;;  %v3401_v6 = vrot.slane %v3394_v40, %v8874_v19  ;;  %v12905_v40 = vld [vmem:[#allocation140_spill] sm:$0xff] }
 0x1dd   : > { %7785 = vmatmul.mubr.msk.f32.gmra.mrb[18].mxu1 %vm1651_vm8, %v10902_v23 }
 0x1de   : > { %7787 = vmatprep.mubr.msk.f32.mxu1 %vm8745_vm0, %v12485_v37 }
 0x1df   : > { %8135 = vmatmul.mubr.msk.f32.gmra.mrb[46].mxu0 %vm1651_vm8, %v5250_v2  ;;  %v12883_v2 = vld [vmem:[#allocation113_spill] sm:$0xff] }
 0x1e0   : > { %8137 = vmatprep.mubr.msk.f32.mxu0 %vm8745_vm0, %v12485_v37  ;;  %v3403_v28 = vcombine.low %v12883_v2, %v12882_v7  ;;  %v12907_v7 = vld [vmem:[#allocation98_spill] sm:$0xff] }
 0x1e1   : > { %7788 = vmatmul.mubr.msk.f32.gmra.mrb[20].mxu1 %vm1651_vm8, %v3334_v50  ;;  %v12884_v50 = vld [vmem:[#allocation20_spill] sm:$0xff]  ;;  %v5534_v2 = vcombine.low %v12873_v62, %v12907_v7 }
 0x1e2   : > { %7790 = vmatprep.mubr.msk.f32.mxu1 %vm8745_vm0, %v12485_v37  ;;  %v3404_v39 = vcombine.low %v12885_v42, %v12884_v50  ;;  %v3411_v34 = vrot.slane %v3403_v28, %v8874_v19 }
 0x1e3   : > { %8138 = vmatmul.mubr.msk.f32.gmra.mrb[48].mxu0 %vm1651_vm8, %v5258_v26  ;;  %v12886_v26 = vld [vmem:[#allocation144_spill] sm:$0xff] }
 0x1e4   : > { %8142 = vmatprep.mubr.msk.f32.mxu0 %vm8745_vm0, %v12485_v37  ;;  %v5531_v1 = vcombine.low %v12886_v26, %v11126_v8  ;;  %v12909_v26 = vld [vmem:[#allocation142_spill] sm:$0xff] }
 0x1e5   : > { %7791 = vmatmul.mubr.msk.f32.gmra.mrb[22].mxu1 %vm1651_vm8, %v11552_v24 }
 0x1e6   : > { %7793 = vmatprep.mubr.msk.f32.mxu1 %vm8745_vm0, %v12485_v37 }
 0x1e7   : > { %8143 = vmatmul.mubr.msk.f32.vlgmr.msra.gmra.mrb[0].mxu0 %vm1651_vm8, %v10754_v9  ;;  %v3354_v9 = vcombine.low %v3353_v13, %v11163_v0  ;;  %v12889_v13 = vld [vmem:[#allocation171_spill] sm:$0xff] }
 0x1e8   : > { %8145 = vmatprep.mubr.msk.f32.mxu0 %vm8745_vm0, %v12485_v37 }
 0x1e9   : > { %7794 = vmatmul.mubr.msk.f32.gmra.mrb[24].mxu1 %vm1651_vm8, %v3344_v27  ;;  %v12887_v27 = vld [vmem:[#allocation183_spill] sm:$0xff] }
 0x1ea   : > { %7796 = vmatprep.mubr.msk.f32.mxu1 %vm8745_vm0, %v12485_v37  ;;  %v3402_v44 = vcombine.low %v12887_v27, %v3401_v6 }
 0x1eb   : > { %8146 = vmatmul.mubr.msk.f32.gmra.mrb[2].mxu0 %vm1651_vm8, %v5526_v47  ;;  %v3418_v47 = vrot.slane %v3404_v39, %v8874_v19  ;;  %v12908_v39 = vld [vmem:[#allocation147_spill] sm:$0xff] }
 0x1ec   : > { %8148 = vmatprep.mubr.msk.f32.mxu0 %vm8745_vm0, %v12485_v37 }
 0x1ed   : > { %7797 = vmatmul.mubr.msk.f32.gmra.mrb[26].mxu1 %vm1651_vm8, %v11576_v10  ;;  %v11696_v8 = vcombine.low %v3411_v34, %v3418_v47  ;;  %v12911_v34 = vld [vmem:[#allocation151_spill] sm:$0xff] }
 0x1ee   : > { %7799 = vmatprep.mubr.msk.f32.mxu1 %vm8745_vm0, %v12485_v37 }
 0x1ef   : > { %8149 = vmatmul.mubr.msk.f32.gmra.mrb[4].mxu0 %vm1651_vm8, %v10793_v36  ;;  %v11610_v36 = vcombine.low %v11191_v35, %v11208_v38  ;;  %v3373_v35 = vcombine.low %v12873_v62, %v3372_v45  ;;  %v12874_v38 = vld [vmem:[#allocation164_spill] sm:$0xff]  ;;  %v12894_v45 = vld [vmem:[#allocation117_spill] sm:$0xff]  ;;  %v12913_v62 = vld [vmem:[#allocation154_spill] sm:$0xff] }
 0x1f0   : > { %8151 = vmatprep.mubr.msk.f32.mxu0 %vm8745_vm0, %v12485_v37  ;;  %v3375_v41 = vcombine.low %v12807_v22, %v12874_v38  ;;  %v12876_v22 = vld [vmem:[#allocation185_spill] sm:$0xff]  ;;  %v3957_v60 = vcombine.low %v12894_v45, %v12893_v48  ;;  %v12916_v48 = vld [vmem:[#allocation124_spill] sm:$0xff] }
 0x1f1   : > { %7800 = vmatmul.mubr.msk.f32.gmra.mrb[28].mxu1 %vm1651_vm8, %v3354_v9  ;;  %v3385_v55 = vcombine.low %v12707_v57, %v12876_v22  ;;  %v12890_v9 = vld [vmem:[#allocation65_spill] sm:$0xff]  ;;  %v5535_v45 = vcombine.low %v12916_v48, %v11277_v3  ;;  %v12938_v48 = vld [vmem:[#allocation28_spill] sm:$0xff] }
 0x1f2   : > { %7802 = vmatprep.mubr.msk.f32.mxu1 %vm8745_vm0, %v12485_v37  ;;  %v3382_v33 = vrot.slane %v3375_v41, %v8874_v19  ;;  %v5532_v16 = vcombine.low %v12890_v9, %v11163_v0  ;;  %v12895_v0 = vld [vmem:[#allocation99_spill] sm:$0xff]  ;;  %v12898_v41 = vld [vmem:[#allocation134_spill] sm:$0xff]  ;;  %v12915_v9 = vld [vmem:[#allocation165_spill] sm:$0xff] }
 0x1f3   : > { %8152 = vmatmul.mubr.msk.f32.gmra.mrb[6].mxu0 %vm1651_vm8, %v5527_v58  ;;  %v3392_v57 = vrot.slane %v3385_v55, %v8874_v19  ;;  %v12900_v55 = vld [vmem:[#allocation91_spill] sm:$0xff] }
 0x1f4   : > { %8154 = vmatprep.mubr.msk.f32.mxu0 %vm8745_vm0, %v12485_v37 }
 0x1f5   : > { %7803 = vmatmul.mubr.msk.f32.gmra.mrb[30].mxu1 %vm1651_vm8, %v3363_v31  ;;  %v12891_v31 = vld [vmem:[#allocation116_spill] sm:$0xff] }
 0x1f6   : > { %7805 = vmatprep.mubr.msk.f32.mxu1 %vm8745_vm0, %v12485_v37  ;;  %v3956_v5 = vcombine.low %v12892_v14, %v12891_v31 }
 0x1f7   : > { %8155 = vmatmul.mubr.msk.f32.gmra.mrb[8].mxu0 %vm1651_vm8, %v10835_v15  ;;  %v12875_v15 = vld [vmem:[#allocation130_spill] sm:$0xff] }
 0x1f8   : > { %8157 = vmatprep.mubr.msk.f32.mxu0 %vm8745_vm0, %v12485_v37  ;;  %v5529_v51 = vcombine.low %v11028_v32, %v12875_v15  ;;  %v3383_v32 = vcombine.low %v3382_v33, %v11277_v3  ;;  %v12899_v15 = vld [vmem:[#allocation123_spill] sm:$0xff]  ;;  %v3964_v33 = vrot.slane %v3956_v5, %v8874_v19 }
 0x1f9   : > { %7806 = vmatmul.mubr.msk.f32.gmra.mrb[32].mxu1 %vm1651_vm8, %v11610_v36 }
 0x1fa   : > { %7808 = vmatprep.mubr.msk.f32.mxu1 %vm8745_vm0, %v12485_v37 }
 0x1fb   : > { %8158 = vmatmul.mubr.msk.f32.gmra.mrb[10].mxu0 %vm1651_vm8, %v5528_v25  ;;  %v12896_v25 = vld [vmem:[#allocation122_spill] sm:$0xff] }
 0x1fc   : > { %8160 = vmatprep.mubr.msk.f32.mxu0 %vm8745_vm0, %v12485_v37 }
 0x1fd   : > { %7809 = vmatmul.mubr.msk.f32.gmra.mrb[34].mxu1 %vm1651_vm8, %v3373_v35  ;;  %v12897_v35 = vld [vmem:[#allocation119_spill] sm:$0xff] }
 0x1fe   : > { %7811 = vmatprep.mubr.msk.f32.mxu1 %vm8745_vm0, %v12485_v37  ;;  %v3973_v38 = vcombine.low %v12897_v35, %v12896_v25  ;;  %v12917_v25 = vld [vmem:[#allocation176_spill] sm:$0xff]  ;;  %v12918_v35 = vld [vmem:[#allocation167_spill] sm:$0xff] }
 0x1ff   : > { %8161 = vmatmul.mubr.msk.f32.gmra.mrb[12].mxu0 %vm1651_vm8, %v5529_v51  ;;  %v3974_v51 = vcombine.low %v12899_v15, %v12898_v41  ;;  %v12919_v41 = vld [vmem:[#allocation178_spill] sm:$0xff]  ;;  %v12920_v15 = vld [vmem:[#allocation177_spill] sm:$0xff] }
 0x200   : > { %8163 = vmatprep.mubr.msk.f32.mxu0 %vm8745_vm0, %v12485_v37 }
 0x201   : > { %7812 = vmatmul.mubr.msk.f32.gmra.mrb[36].mxu1 %vm1651_vm8, %v11636_v20  ;;  %v3988_v22 = vrot.slane %v3974_v51, %v8874_v19  ;;  %v4042_v51 = vcombine.low %v12920_v15, %v12919_v41 }
 0x202   : > { %7814 = vmatprep.mubr.msk.f32.mxu1 %vm8745_vm0, %v12485_v37 }
 0x203   : > { %8164 = vmatmul.mubr.msk.f32.gmra.mrb[14].mxu0 %vm1651_vm8, %v10902_v23  ;;  %v12881_v23 = vld [vmem:[#allocation150_spill] sm:$0xff] }
 0x204   : > { %8166 = vmatprep.mubr.msk.f32.mxu0 %vm8745_vm0, %v12485_v37  ;;  %v3393_v56 = vcombine.low %v3392_v57, %v12881_v23  ;;  %v12903_v57 = vld [vmem:[#allocation137_spill] sm:$0xff] }
 0x205   : > { %7815 = vmatmul.mubr.msk.f32.gmra.mrb[38].mxu1 %vm1651_vm8, %v3383_v32  ;;  %v3971_v32 = vrot.slane %v3957_v60, %v8874_v19  ;;  %v3990_v59 = vcombine.low %v12904_v52, %v12903_v57  ;;  %v12926_v52 = vld [vmem:[#allocation196_spill] sm:$0xff] }
 0x206   : > { %7817 = vmatprep.mubr.msk.f32.mxu1 %vm8745_vm0, %v12485_v37 }
 0x207   : > { %8167 = vmatmul.mubr.msk.f32.gmra.mrb[16].mxu0 %vm1651_vm8, %v5530_v30  ;;  %v12902_v30 = vcombine.low %v12900_v55, %v12901_v43  ;;  %v3972_v61 = vcombine.low %v3964_v33, %v3971_v32  ;;  %v3998_v50 = vrot.slane %v3990_v59, %v8874_v19  ;;  %v4056_v33 = vrot.slane %v4042_v51, %v8874_v19  ;;  %v12921_v32 = vld [vmem:[#allocation182_spill] sm:$0xff]  ;;  %v12923_v55 = vld [vmem:[#allocation187_spill] sm:$0xff]  ;;  %v12927_v59 = vld [vmem:[#allocation77_spill] sm:$0xff] }
 0x208   : > { %8169 = vmatprep.mubr.msk.f32.mxu0 %vm8745_vm0, %v12485_v37  ;;  %v12924_v43 = vld [vmem:[#allocation186_spill] sm:$0xff] }
 0x209   : > { %7818 = vmatmul.mubr.msk.f32.gmra.mrb[40].mxu1 %vm1651_vm8, %v11660_v21 }
 0x20a   : > { %7820 = vmatprep.mubr.msk.f32.mxu1 %vm8745_vm0, %v12485_v37 }
 0x20b   : > { %8170 = vmatmul.mubr.msk.f32.gmra.mrb[18].mxu0 %vm1651_vm8, %v11552_v24  ;;  %v12888_v24 = vld [vmem:[#allocation46_spill] sm:$0xff] }
 0x20c   : > { %8172 = vmatprep.mubr.msk.f32.mxu0 %vm8745_vm0, %v12485_v37  ;;  %v3420_v49 = vcombine.low %v12889_v13, %v12888_v24 }
 0x20d   : > { %7821 = vmatmul.mubr.msk.f32.gmra.mrb[42].mxu1 %vm1651_vm8, %v3393_v56  ;;  %v12906_v56 = vld [vmem:[#allocation138_spill] sm:$0xff] }
 0x20e   : > { %7823 = vmatprep.mubr.msk.f32.mxu1 %vm8745_vm0, %v12485_v37  ;;  %v11711_v58 = vrot.slane %v3420_v49, %v8874_v19  ;;  %v3991_v6 = vcombine.low %v12906_v56, %v12905_v40  ;;  %v12914_v49 = vld [vmem:[#allocation170_spill] sm:$0xff]  ;;  %v4075_v40 = vcombine.low %v12927_v59, %v12926_v52  ;;  %v12928_v56 = vld [vmem:[#allocation201_spill] sm:$0xff] }
 0x20f   : > { %8173 = vmatmul.mubr.msk.f32.gmra.mrb[20].mxu0 %vm1651_vm8, %v5531_v1  ;;  %v4007_v1 = vcombine.low %v12909_v26, %v12908_v39 }
 0x210   : > { %8175 = vmatprep.mubr.msk.f32.mxu0 %vm8745_vm0, %v12485_v37  ;;  %v4005_v42 = vrot.slane %v3991_v6, %v8874_v19  ;;  %v12929_v6 = vld [vmem:[#allocation199_spill] sm:$0xff]  ;;  %v4083_v39 = vrot.slane %v4075_v40, %v8874_v19 }
 0x211   : > { %7824 = vmatmul.mubr.msk.f32.gmra.mrb[44].mxu1 %vm1651_vm8, %v3402_v44  ;;  %v12910_v44 = vld [vmem:[#allocation152_spill] sm:$0xff]  ;;  %v4015_v14 = vrot.slane %v4007_v1, %v8874_v19  ;;  %v4076_v7 = vcombine.low %v12929_v6, %v12928_v56 }
 0x212   : > { %7826 = vmatprep.mubr.msk.f32.mxu1 %vm8745_vm0, %v12485_v37  ;;  %v4008_v47 = vcombine.low %v12911_v34, %v12910_v44  ;;  %v4006_v31 = vcombine.low %v3998_v50, %v4005_v42  ;;  %v7259_v42 = vcombine.high %v12888_v24, %v10964_v17  ;;  %v12931_v44 = vld [vmem:[#allocation13_spill] sm:$0xff]  ;;  %v12932_v34 = vld [vmem:[#allocation203_spill] sm:$0xff]  ;;  %v12935_v24 = vld [vmem:[#allocation162_spill] sm:$0xff] }
 0x213   : > { %8176 = vmatmul.mubr.msk.f32.gmra.mrb[22].mxu0 %vm1651_vm8, %v11576_v10  ;;  %v5533_v10 = vcombine.low %v12869_v4, %v12895_v0  ;;  %v3981_v4 = vrot.slane %v3973_v38, %v8874_v19  ;;  %v4041_v38 = vcombine.low %v12918_v35, %v12917_v25  ;;  %v4090_v26 = vrot.slane %v4076_v7, %v8874_v19 }
 0x214   : > { %8178 = vmatprep.mubr.msk.f32.mxu0 %vm8745_vm0, %v12485_v37  ;;  %v4022_v5 = vrot.slane %v4008_v47, %v8874_v19  ;;  %v4092_v47 = vcombine.low %v12932_v34, %v12931_v44  ;;  %v5545_v17 = vrot.slane %v7259_v42, %v8874_v19  ;;  %v4126_v35 = vcombine.low %v11464_v29, %v11468_v18 }
 0x215   : > { %7827 = vmatmul.mubr.msk.f32.gmra.mrb[46].mxu1 %vm1651_vm8, %v11696_v8  ;;  %v3989_v28 = vcombine.low %v3981_v4, %v3988_v22  ;;  %v12922_v4 = vld [vmem:[#allocation179_spill] sm:$0xff] }
 0x216   : > { %7829 = vmatprep.mubr.msk.f32.mxu1 %vm8745_vm0, %v12485_v37  ;;  %v4058_v22 = vcombine.low %v12922_v4, %v12921_v32 }
 0x217   : > { %8179 = vmatmul.mubr.msk.f32.gmra.mrb[24].mxu0 %vm1651_vm8, %v5532_v16  ;;  %v4025_v16 = vcombine.low %v12915_v9, %v12914_v49  ;;  %v12936_v49 = vld [vmem:[#allocation50_spill] sm:$0xff] }
 0x218   : > { %8181 = vmatprep.mubr.msk.f32.mxu0 %vm8745_vm0, %v12485_v37  ;;  %v5548_v9 = vcombine.low %v12936_v49, %v11043_v54  ;;  %v5546_v54 = vcombine.low %v11711_v58, %v5545_v17 }
 0x219   : > { %7830 = vmatmul.mubr.msk.f32.gmra.mrb[48].mxu1 %vm1651_vm8, %v11711_v58  ;;  %v4039_v0 = vrot.slane %v4025_v16, %v8874_v19  ;;  %v4091_v16 = vcombine.low %v4083_v39, %v4090_v26  ;;  %v5564_v58 = vcombine.low %v11035_v53, %v11493_v11  ;;  %v4133_v53 = vrot.slane %v4126_v35, %v8874_v19 }
 0x21a   : > { %7873 = vmatprep.mubr.msk.f32.mxu1 %vm8745_vm0, %v12485_v37 }
 0x21b   : > { %8182 = vmatmul.mubr.msk.f32.gmra.mrb[26].mxu0 %vm1651_vm8, %v5533_v10  ;;  %v4023_v10 = vcombine.low %v4015_v14, %v4022_v5  ;;  %v12937_v14 = vld [vmem:[#allocation27_spill] sm:$0xff] }
 0x21c   : > { %8184 = vmatprep.mubr.msk.f32.mxu0 %vm8745_vm0, %v12485_v37  ;;  %v4109_v5 = vcombine.low %v12937_v14, %v11431_v63 }
 0x21d   : > { %7874 = vmatmul.mubr.msk.f32.vlgmr.msra.gmra.mrb[26].mxu1 %vm1651_vm8, %v12902_v30  ;;  %v4059_v30 = vcombine.low %v12924_v43, %v12923_v55 }
 0x21e   : > { %7876 = vmatprep.mubr.msk.f32.mxu1 %vm8745_vm0, %v12485_v37 }
 0x21f   : > { %8185 = vmatmul.mubr.msk.f32.gmra.mrb[28].mxu0 %vm1651_vm8, %v11610_v36  ;;  %v12912_v36 = vld [vmem:[#allocation163_spill] sm:$0xff]  ;;  %v4073_v50 = vrot.slane %v4059_v30, %v8874_v19 }
 0x220   : > { %8187 = vmatprep.mubr.msk.f32.mxu0 %vm8745_vm0, %v12485_v37  ;;  %v4024_v13 = vcombine.low %v12913_v62, %v12912_v36  ;;  %v12933_v36 = vld [vmem:[#allocation12_spill] sm:$0xff] }
 0x221   : > { %7877 = vmatmul.mubr.msk.f32.gmra.mrb[28].mxu1 %vm1651_vm8, %v3972_v61  ;;  %v12925_v61 = vld [vmem:[#allocation128_spill] sm:$0xff]  ;;  %v4093_v62 = vcombine.low %v12933_v36, %v11423_v12  ;;  %v4100_v12 = vrot.slane %v4092_v47, %v8874_v19 }
 0x222   : > { %7879 = vmatprep.mubr.msk.f32.mxu1 %vm8745_vm0, %v12485_v37  ;;  %v4032_v60 = vrot.slane %v4024_v13, %v8874_v19  ;;  %v5536_v57 = vcombine.low %v12925_v61, %v12881_v23 }
 0x223   : > { %8188 = vmatmul.mubr.msk.f32.gmra.mrb[30].mxu0 %vm1651_vm8, %v5534_v2 }
 0x224   : > { %8190 = vmatprep.mubr.msk.f32.mxu0 %vm8745_vm0, %v12485_v37  ;;  %v4040_v3 = vcombine.low %v4032_v60, %v4039_v0  ;;  %v5562_v0 = vrot.slane %v5548_v9, %v8874_v19 }
 0x225   : > { %7880 = vmatmul.mubr.msk.f32.gmra.mrb[30].mxu1 %vm1651_vm8, %v3989_v28  ;;  %v4066_v28 = vrot.slane %v4058_v22, %v8874_v19 }
 0x226   : > { %7882 = vmatprep.mubr.msk.f32.mxu1 %vm8745_vm0, %v12485_v37 }
 0x227   : > { %8191 = vmatmul.mubr.msk.f32.gmra.mrb[32].mxu0 %vm1651_vm8, %v11636_v20  ;;  %v4049_v20 = vrot.slane %v4041_v38, %v8874_v19  ;;  %v4074_v1 = vcombine.low %v4066_v28, %v4073_v50  ;;  %v5571_v38 = vrot.slane %v5564_v58, %v8874_v19 }
 0x228   : > { %8193 = vmatprep.mubr.msk.f32.mxu0 %vm8745_vm0, %v12485_v37 }
 0x229   : > { %7883 = vmatmul.mubr.msk.f32.gmra.mrb[32].mxu1 %vm1651_vm8, %v4006_v31  ;;  %v4057_v2 = vcombine.low %v4049_v20, %v4056_v33  ;;  %v4107_v31 = vrot.slane %v4093_v62, %v8874_v19 }
 0x22a   : > { %7885 = vmatprep.mubr.msk.f32.mxu1 %vm8745_vm0, %v12485_v37 }
 0x22b   : > { %8194 = vmatmul.mubr.msk.f32.gmra.mrb[34].mxu0 %vm1651_vm8, %v5535_v45  ;;  %v4110_v45 = vcombine.low %v12938_v48, %v11459_v46  ;;  %v4108_v63 = vcombine.low %v4100_v12, %v4107_v31  ;;  %v4117_v46 = vrot.slane %v4109_v5, %v8874_v19 }
 0x22c   : > { %8196 = vmatprep.mubr.msk.f32.mxu0 %vm8745_vm0, %v12485_v37 }
 0x22d   : > { %7886 = vmatmul.mubr.msk.f32.gmra.mrb[34].mxu1 %vm1651_vm8, %v4023_v10  ;;  %v4124_v10 = vrot.slane %v4110_v45, %v8874_v19 }
 0x22e   : > { %7888 = vmatprep.mubr.msk.f32.mxu1 %vm8745_vm0, %v12485_v37 }
 0x22f   : > { %8197 = vmatmul.mubr.msk.f32.gmra.mrb[36].mxu0 %vm1651_vm8, %v11660_v21  ;;  %v12930_v21 = vld [vmem:[#allocation26_spill] sm:$0xff]  ;;  %v4125_v25 = vcombine.low %v4117_v46, %v4124_v10 }
 0x230   : > { %8199 = vmatprep.mubr.msk.f32.mxu0 %vm8745_vm0, %v12485_v37  ;;  %v5537_v23 = vcombine.low %v12887_v27, %v12930_v21  ;;  %v12934_v27 = vld [vmem:[#allocation153_spill] sm:$0xff] }
 0x231   : > { %7889 = vmatmul.mubr.msk.f32.gmra.mrb[36].mxu1 %vm1651_vm8, %v4040_v3  ;;  %v5547_v13 = vcombine.low %v12935_v24, %v12934_v27 }
 0x232   : > { %7891 = vmatprep.mubr.msk.f32.mxu1 %vm8745_vm0, %v12485_v37 }
 0x233   : > { %8200 = vmatmul.mubr.msk.f32.gmra.mrb[38].mxu0 %vm1651_vm8, %v5536_v57  ;;  %v5555_v60 = vrot.slane %v5547_v13, %v8874_v19 }
 0x234   : > { %8202 = vmatprep.mubr.msk.f32.mxu0 %vm8745_vm0, %v12485_v37 }
 0x235   : > { %7892 = vmatmul.mubr.msk.f32.gmra.mrb[38].mxu1 %vm1651_vm8, %v4057_v2 }
 0x236   : > { %7894 = vmatprep.mubr.msk.f32.mxu1 %vm8745_vm0, %v12485_v37 }
 0x237   : > { %8203 = vmatmul.mubr.msk.f32.gmra.mrb[40].mxu0 %vm1651_vm8, %v5537_v23 }
 0x238   : > { %8205 = vmatprep.mubr.msk.f32.mxu0 %vm8745_vm0, %v12485_v37 }
 0x239   : > { %7895 = vmatmul.mubr.msk.f32.gmra.mrb[40].mxu1 %vm1651_vm8, %v4074_v1 }
 0x23a   : > { %7897 = vmatprep.mubr.msk.f32.mxu1 %vm8745_vm0, %v12485_v37 }
 0x23b   : > { %8206 = vmatmul.mubr.msk.f32.gmra.mrb[42].mxu0 %vm1651_vm8, %v11696_v8  ;;  %v5563_v8 = vcombine.low %v5555_v60, %v5562_v0 }
 0x23c   : > { %8208 = vmatprep.mubr.msk.f32.mxu0 %vm8745_vm0, %v12485_v37 }
 0x23d   : > { %7898 = vmatmul.mubr.msk.f32.gmra.mrb[42].mxu1 %vm1651_vm8, %v4091_v16 }
 0x23e   : > { %7900 = vmatprep.mubr.msk.f32.mxu1 %vm8745_vm0, %v12485_v37 }
 0x23f   : > { %8209 = vmatmul.mubr.msk.f32.gmra.mrb[44].mxu0 %vm1651_vm8, %v5546_v54 }
 0x240   : > { %8211 = vmatprep.mubr.msk.f32.mxu0 %vm8745_vm0, %v12485_v37 }
 0x241   : > { %7901 = vmatmul.mubr.msk.f32.gmra.mrb[44].mxu1 %vm1651_vm8, %v4108_v63 }
 0x242   : > { %7903 = vmatprep.mubr.msk.f32.mxu1 %vm8745_vm0, %v12485_v37 }
 0x243   : > { %8212 = vmatmul.mubr.msk.f32.gmra.mrb[46].mxu0 %vm1651_vm8, %v5563_v8 }
 0x244   : > { %8214 = vmatprep.mubr.msk.f32.mxu0 %vm8745_vm0, %v12485_v37 }
 0x245   : > { %7904 = vmatmul.mubr.msk.f32.gmra.mrb[46].mxu1 %vm1651_vm8, %v4125_v25 }
 0x246   : > { %7906 = vmatprep.mubr.msk.f32.mxu1 %vm8745_vm0, %v12485_v37 }
 0x247   : > { %8215 = vmatmul.mubr.msk.f32.gmra.mrb[48].mxu0 %vm1651_vm8, %v5571_v38 }
 0x249   : > { %7907 = vmatmul.mubr.msk.f32.gmra.mrb[48].mxu1 %vm1651_vm8, %v4133_v53 }
 0x28c   : > { %v3544_v29 = vpop.f32.mrb[0].mxu1 }
 0x28d   : > { %v7759_v18 = vpop.f32.mrb[1].mxu1 }
 0x290   : > { %v3549_v11 = vpop.f32.mrb[2].mxu1 }
 0x291   : > { %v7762_v41 = vpop.f32.mrb[3].mxu1 }
 0x294   : > { %v3554_v15 = vpop.f32.mrb[4].mxu1 }
 0x295   : > { %v7765_v51 = vpop.f32.mrb[5].mxu1 }
 0x298   : > { %v3559_v3 = vpop.f32.mrb[6].mxu1 }
 0x299   : > { %v7768_v20 = vpop.f32.mrb[7].mxu1 }
 0x29c   : > { %v11883_v33 = vpop.f32.mrb[8].mxu1 }
 0x29d   : > { %v7771_v32 = vpop.f32.mrb[9].mxu1 }
 0x2a0   : > { %v11885_v4 = vpop.f32.mrb[10].mxu1 }
 0x2a1   : > { %v7774_v22 = vpop.f32.mrb[11].mxu1 }
 0x2a4   : > { %v11887_v55 = vpop.f32.mrb[12].mxu1 }
 0x2a5   : > { %v7777_v37 = vpop.f32.mrb[13].mxu1 }
 0x2a8   : > { %v11889_v43 = vpop.f32.mrb[14].mxu1 }
 0x2a9   : > { %v7780_v30 = vpop.f32.mrb[15].mxu1 }
 0x2ac   : > { %v11891_v61 = vpop.f32.mrb[16].mxu1 }
 0x2ad   : > { %v7783_v57 = vpop.f32.mrb[17].mxu1 }
 0x2b0   : > { %v11893_v52 = vpop.f32.mrb[18].mxu1 }
 0x2b1   : > { %v7786_v59 = vpop.f32.mrb[19].mxu1 }
 0x2b4   : > { %v11895_v40 = vpop.f32.mrb[20].mxu1 }
 0x2b5   : > { %v7789_v56 = vpop.f32.mrb[21].mxu1 }
 0x2b8   : > { %v11897_v6 = vpop.f32.mrb[22].mxu1 }
 0x2b9   : > { %v7792_v7 = vpop.f32.mrb[23].mxu1 }
 0x2ba   : > { %v5668_v2 = vpop.f32.mrb[0].mxu0 }
 0x2bb   : > { %v8219_v28 = vadd.f32 %v5668_v2, %v3544_v29  ;;  %v8144_v50 = vpop.f32.mrb[1].mxu0 }
 0x2bc   : > { %v11899_v21 = vpop.f32.mrb[24].mxu1 }
 0x2bd   : > { %v7795_v23 = vpop.f32.mrb[25].mxu1  ;;  %v5842_v42 = vcombine.high %v8219_v28, %v8219_v28  ;;  %v5849_v39 = vrot.slane %v8219_v28, %v8874_v19  ;;  %v6809_v24 = vmul.f32 %v8219_v28, %v8219_v28 }
 0x2be   : > { %v5673_v26 = vpop.f32.mrb[2].mxu0 }
 0x2bf   : > { %v5856_v1 = vrot.slane %v5842_v42, %v8874_v19  ;;  %v5857_v44 = vcombine.high %v5849_v39, %v5849_v39  ;;  %v8220_v34 = vadd.f32 %v5673_v26, %v3549_v11  ;;  %v8147_v47 = vpop.f32.mrb[3].mxu0 }
 0x2c1   : > { %v5858_v36 = vcombine.high %v5856_v1, %v5856_v1  ;;  %v6258_v62 = vcombine.low %v5849_v39, %v5857_v44  ;;  %v5859_v17 = vcombine.high %v8220_v34, %v8220_v34  ;;  %v5866_v27 = vrot.slane %v8220_v34, %v8874_v19 }
 0x2c2   : > { %v6776_v13 = vadd.f32 %v8220_v34, %v8219_v28  ;;  %v6810_v49 = vmul.f32 %v8220_v34, %v8220_v34  ;;  %v5678_v9 = vpop.f32.mrb[4].mxu0 }
 0x2c3   : > { %v6259_v16 = vcombine.low %v5856_v1, %v5858_v36  ;;  %v5873_v12 = vrot.slane %v5859_v17, %v8874_v19  ;;  %v5874_v31 = vcombine.high %v5866_v27, %v5866_v27  ;;  %v8150_v14 = vpop.f32.mrb[5].mxu0  ;;  %v8221_v48 = vadd.f32 %v5678_v9, %v3554_v15 }
 0x2c4   : > { %v6834_v5 = vadd.f32 %v6810_v49, %v6809_v24  ;;  %v6266_v45 = vrot.slane %v6258_v62, %v8874_v19 }
 0x2c5   : > { %v6273_v54 = vrot.slane %v6259_v16, %v8874_v19  ;;  %v6275_v60 = vcombine.low %v5866_v27, %v5874_v31  ;;  %v5875_v0 = vcombine.high %v5873_v12, %v5873_v12  ;;  %v5876_v63 = vcombine.high %v8221_v48, %v8221_v48 }
 0x2c6   : > { %v5883_v46 = vrot.slane %v8221_v48, %v8874_v19  ;;  %v6777_v10 = vadd.f32 %v8221_v48, %v6776_v13  ;;  %v6811_v8 = vmul.f32 %v8221_v48, %v8221_v48  ;;  %v5683_v58 = vpop.f32.mrb[6].mxu0  ;;  %v6289_v38 = vrot.slane %v5873_v12, %v8874_v19 }
 0x2c7   : > { %v6274_v25 = vcombine.low %v6266_v45, %v6273_v54  ;;  %v6282_v35 = vrot.slane %v6275_v60, %v8874_v19  ;;  %v8222_v53 = vadd.f32 %v5683_v58, %v3559_v3  ;;  %v8153_v29 = vpop.f32.mrb[7].mxu0  ;;  %v5890_v18 = vrot.slane %v5876_v63, %v8874_v19 }
 0x2c8   : > { %v5891_v11 = vcombine.high %v5883_v46, %v5883_v46  ;;  %v6291_v41 = vcombine.low %v5875_v0, %v5883_v46  ;;  %v6835_v15 = vadd.f32 %v6834_v5, %v6811_v8 }
 0x2c9   : > { %6748 = vst [vmem:[%s11911_s13] sm:$0xff] %v6274_v25  ;;  %v6290_v51 = vcombine.low %v6282_v35, %v6289_v38  ;;  %v5893_v20 = vcombine.high %v8222_v53, %v8222_v53  ;;  %v5900_v32 = vrot.slane %v8222_v53, %v8874_v19  ;;  %v6778_v22 = vadd.f32 %v8222_v53, %v6777_v10 }
 0x2ca   : > { %v6292_v37 = vcombine.low %v5891_v11, %v5890_v18  ;;  %v5892_v30 = vcombine.high %v5890_v18, %v5890_v18  ;;  %v6812_v57 = vmul.f32 %v8222_v53, %v8222_v53  ;;  %v5688_v59 = vpop.f32.mrb[8].mxu0  ;;  %v6299_v28 = vrot.slane %v6291_v41, %v8874_v19 }
 0x2cb   : > { %6749 = vst [vmem:[%s11911_s13 + $0x8] sm:$0x3f] %v6290_v51  ;;  %v5907_v56 = vrot.slane %v5893_v20, %v8874_v19  ;;  %v5908_v3 = vcombine.high %v5900_v32, %v5900_v32  ;;  %v8223_v7 = vadd.f32 %v5688_v59, %v11883_v33  ;;  %v8156_v2 = vpop.f32.mrb[9].mxu0 }
 0x2cc   : > { %v6306_v50 = vrot.slane %v6292_v37, %v8874_v19  ;;  %v6308_v23 = vcombine.low %v5892_v30, %v5900_v32  ;;  %v6836_v42 = vadd.f32 %v6835_v15, %v6812_v57 }
 0x2cd   : > { %v5909_v39 = vcombine.high %v5907_v56, %v5907_v56  ;;  %v6322_v26 = vrot.slane %v5908_v3, %v8874_v19  ;;  %v5910_v1 = vcombine.high %v8223_v7, %v8223_v7  ;;  %v5917_v44 = vrot.slane %v8223_v7, %v8874_v19 }
 0x2ce   : > { %v6307_v34 = vcombine.low %v6299_v28, %v6306_v50  ;;  %v6315_v47 = vrot.slane %v6308_v23, %v8874_v19  ;;  %v6779_v36 = vadd.f32 %v8223_v7, %v6778_v22  ;;  %v6813_v33 = vmul.f32 %v8223_v7, %v8223_v7  ;;  %v5693_v62 = vpop.f32.mrb[10].mxu0 }
 0x2cf   : > { %v6324_v17 = vcombine.low %v5907_v56, %v5909_v39  ;;  %v5924_v27 = vrot.slane %v5910_v1, %v8874_v19  ;;  %v5925_v24 = vcombine.high %v5917_v44, %v5917_v44  ;;  %v8224_v13 = vadd.f32 %v5693_v62, %v11885_v4  ;;  %v8159_v49 = vpop.f32.mrb[11].mxu0 }
 0x2d0   : > { %6750 = vst [vmem:[%s11911_s13 + $0x10] sm:$0xff] %v6307_v34  ;;  %v6323_v9 = vcombine.low %v6315_v47, %v6322_v26  ;;  %v6837_v16 = vadd.f32 %v6836_v42, %v6813_v33 }
 0x2d1   : > { %v5926_v12 = vcombine.high %v5924_v27, %v5924_v27  ;;  %v6325_v31 = vcombine.low %v5917_v44, %v5925_v24  ;;  %v5927_v14 = vcombine.high %v8224_v13, %v8224_v13  ;;  %v6332_v5 = vrot.slane %v6324_v17, %v8874_v19 }
 0x2d2   : > { %6751 = vst [vmem:[%s11911_s13 + $0x18] sm:$0x3f] %v6323_v9  ;;  %v5934_v48 = vrot.slane %v8224_v13, %v8874_v19  ;;  %v6780_v45 = vadd.f32 %v8224_v13, %v6779_v36  ;;  %v6814_v54 = vmul.f32 %v8224_v13, %v8224_v13  ;;  %v5698_v60 = vpop.f32.mrb[12].mxu0 }
 0x2d3   : > { %v6339_v0 = vrot.slane %v6325_v31, %v8874_v19  ;;  %v6341_v63 = vcombine.low %v5924_v27, %v5926_v12  ;;  %v5941_v4 = vrot.slane %v5927_v14, %v8874_v19  ;;  %v8225_v46 = vadd.f32 %v5698_v60, %v11887_v55  ;;  %v8162_v10 = vpop.f32.mrb[13].mxu0 }
 0x2d4   : > { %v5942_v8 = vcombine.high %v5934_v48, %v5934_v48  ;;  %v6355_v58 = vrot.slane %v5934_v48, %v8874_v19  ;;  %v6838_v25 = vadd.f32 %v6837_v16, %v6814_v54 }
 0x2d5   : > { %v6340_v35 = vcombine.low %v6332_v5, %v6339_v0  ;;  %v6348_v38 = vrot.slane %v6341_v63, %v8874_v19  ;;  %v5943_v53 = vcombine.high %v5941_v4, %v5941_v4  ;;  %v5944_v29 = vcombine.high %v8225_v46, %v8225_v46 }
 0x2d6   : > { %v6357_v18 = vcombine.low %v5942_v8, %v5941_v4  ;;  %v5951_v11 = vrot.slane %v8225_v46, %v8874_v19  ;;  %v6781_v41 = vadd.f32 %v8225_v46, %v6780_v45  ;;  %v6815_v15 = vmul.f32 %v8225_v46, %v8225_v46  ;;  %v5703_v51 = vpop.f32.mrb[14].mxu0 }
 0x2d7   : > { %6752 = vst [vmem:[%s11911_s13 + $0x20] sm:$0xff] %v6340_v35  ;;  %v6356_v20 = vcombine.low %v6348_v38, %v6355_v58  ;;  %v5958_v55 = vrot.slane %v5944_v29, %v8874_v19  ;;  %v8226_v32 = vadd.f32 %v5703_v51, %v11889_v43  ;;  %v8165_v22 = vpop.f32.mrb[15].mxu0 }
 0x2d8   : > { %v5959_v37 = vcombine.high %v5951_v11, %v5951_v11  ;;  %v6358_v30 = vcombine.low %v5943_v53, %v5951_v11  ;;  %v6839_v57 = vadd.f32 %v6838_v25, %v6815_v15  ;;  %v6365_v2 = vrot.slane %v6357_v18, %v8874_v19 }
 0x2d9   : > { %6753 = vst [vmem:[%s11911_s13 + $0x28] sm:$0x3f] %v6356_v20  ;;  %v5960_v59 = vcombine.high %v5958_v55, %v5958_v55  ;;  %v5961_v56 = vcombine.high %v8226_v32, %v8226_v32  ;;  %v5968_v3 = vrot.slane %v8226_v32, %v8874_v19  ;;  %v6782_v7 = vadd.f32 %v8226_v32, %v6781_v41 }
 0x2da   : > { %v6372_v28 = vrot.slane %v6358_v30, %v8874_v19  ;;  %v6374_v50 = vcombine.low %v5959_v37, %v5958_v55  ;;  %v6816_v23 = vmul.f32 %v8226_v32, %v8226_v32  ;;  %v5708_v42 = vpop.f32.mrb[16].mxu0 }
 0x2db   : > { %v6388_v43 = vrot.slane %v5960_v59, %v8874_v19  ;;  %v5975_v39 = vrot.slane %v5961_v56, %v8874_v19  ;;  %v5976_v26 = vcombine.high %v5968_v3, %v5968_v3  ;;  %v8227_v1 = vadd.f32 %v5708_v42, %v11891_v61  ;;  %v8168_v44 = vpop.f32.mrb[17].mxu0 }
 0x2dc   : > { %v6373_v34 = vcombine.low %v6365_v2, %v6372_v28  ;;  %v6381_v47 = vrot.slane %v6374_v50, %v8874_v19  ;;  %v6840_v36 = vadd.f32 %v6839_v57, %v6816_v23 }
 0x2dd   : > { %v5977_v33 = vcombine.high %v5975_v39, %v5975_v39  ;;  %v6390_v62 = vcombine.low %v5968_v3, %v5976_v26  ;;  %v5978_v17 = vcombine.high %v8227_v1, %v8227_v1  ;;  %v5985_v27 = vrot.slane %v8227_v1, %v8874_v19 }
 0x2de   : > { %v6389_v24 = vcombine.low %v6381_v47, %v6388_v43  ;;  %6754 = vst [vmem:[%s11911_s13 + $0x30] sm:$0xff] %v6373_v34  ;;  %v6783_v13 = vadd.f32 %v8227_v1, %v6782_v7  ;;  %v6817_v49 = vmul.f32 %v8227_v1, %v8227_v1  ;;  %v5713_v9 = vpop.f32.mrb[18].mxu0 }
 0x2df   : > { %v6391_v16 = vcombine.low %v5975_v39, %v5977_v33  ;;  %v5992_v12 = vrot.slane %v5978_v17, %v8874_v19  ;;  %v5993_v61 = vcombine.high %v5985_v27, %v5985_v27  ;;  %v8171_v31 = vpop.f32.mrb[19].mxu0  ;;  %v8228_v5 = vadd.f32 %v5713_v9, %v11893_v52 }
 0x2e0   : > { %6755 = vst [vmem:[%s11911_s13 + $0x38] sm:$0x3f] %v6389_v24  ;;  %v6841_v14 = vadd.f32 %v6840_v36, %v6817_v49  ;;  %v6398_v48 = vrot.slane %v6390_v62, %v8874_v19 }
 0x2e1   : > { %v6405_v45 = vrot.slane %v6391_v16, %v8874_v19  ;;  %v6407_v54 = vcombine.low %v5985_v27, %v5993_v61  ;;  %v5994_v60 = vcombine.high %v5992_v12, %v5992_v12  ;;  %v5995_v0 = vcombine.high %v8228_v5, %v8228_v5 }
 0x2e2   : > { %v6002_v63 = vrot.slane %v8228_v5, %v8874_v19  ;;  %v6784_v4 = vadd.f32 %v8228_v5, %v6783_v13  ;;  %v6818_v46 = vmul.f32 %v8228_v5, %v8228_v5  ;;  %v5718_v10 = vpop.f32.mrb[20].mxu0  ;;  %v6421_v25 = vrot.slane %v5992_v12, %v8874_v19 }
 0x2e3   : > { %v6406_v8 = vcombine.low %v6398_v48, %v6405_v45  ;;  %v6414_v58 = vrot.slane %v6407_v54, %v8874_v19  ;;  %v8229_v52 = vadd.f32 %v5718_v10, %v11895_v40  ;;  %v8174_v35 = vpop.f32.mrb[21].mxu0  ;;  %v6009_v38 = vrot.slane %v5995_v0, %v8874_v19 }
 0x2e4   : > { %v6010_v53 = vcombine.high %v6002_v63, %v6002_v63  ;;  %v6423_v29 = vcombine.low %v5994_v60, %v6002_v63  ;;  %v6842_v18 = vadd.f32 %v6841_v14, %v6818_v46 }
 0x2e5   : > { %6756 = vst [vmem:[%s11911_s13 + $0x40] sm:$0xff] %v6406_v8  ;;  %v6422_v11 = vcombine.low %v6414_v58, %v6421_v25  ;;  %v6012_v41 = vcombine.high %v8229_v52, %v8229_v52  ;;  %v6019_v15 = vrot.slane %v8229_v52, %v8874_v19  ;;  %v6785_v51 = vadd.f32 %v8229_v52, %v6784_v4 }
 0x2e6   : > { %v6424_v20 = vcombine.low %v6010_v53, %v6009_v38  ;;  %v6011_v55 = vcombine.high %v6009_v38, %v6009_v38  ;;  %v6819_v32 = vmul.f32 %v8229_v52, %v8229_v52  ;;  %v5723_v22 = vpop.f32.mrb[22].mxu0  ;;  %v6431_v59 = vrot.slane %v6423_v29, %v8874_v19 }
 0x2e7   : > { %6757 = vst [vmem:[%s11911_s13 + $0x48] sm:$0x3f] %v6422_v11  ;;  %v6026_v37 = vrot.slane %v6012_v41, %v8874_v19  ;;  %v6027_v40 = vcombine.high %v6019_v15, %v6019_v15  ;;  %v8230_v30 = vadd.f32 %v5723_v22, %v11897_v6  ;;  %v8177_v57 = vpop.f32.mrb[23].mxu0 }
 0x2e8   : > { %v6438_v56 = vrot.slane %v6424_v20, %v8874_v19  ;;  %v6440_v3 = vcombine.low %v6011_v55, %v6019_v15  ;;  %v6843_v7 = vadd.f32 %v6842_v18, %v6819_v32 }
 0x2e9   : > { %v6028_v2 = vcombine.high %v6026_v37, %v6026_v37  ;;  %v6454_v28 = vrot.slane %v6027_v40, %v8874_v19  ;;  %v6029_v50 = vcombine.high %v8230_v30, %v8230_v30  ;;  %v6036_v23 = vrot.slane %v8230_v30, %v8874_v19 }
 0x2ea   : > { %v6439_v42 = vcombine.low %v6431_v59, %v6438_v56  ;;  %v6447_v43 = vrot.slane %v6440_v3, %v8874_v19  ;;  %v6786_v39 = vadd.f32 %v8230_v30, %v6785_v51  ;;  %v6820_v6 = vmul.f32 %v8230_v30, %v8230_v30  ;;  %v5728_v26 = vpop.f32.mrb[24].mxu0 }
 0x2eb   : > { %v6456_v1 = vcombine.low %v6026_v37, %v6028_v2  ;;  %v6043_v44 = vrot.slane %v6029_v50, %v8874_v19  ;;  %v6044_v34 = vcombine.high %v6036_v23, %v6036_v23  ;;  %v8231_v47 = vadd.f32 %v5728_v26, %v11899_v21  ;;  %v8180_v36 = vpop.f32.mrb[25].mxu0 }
 0x2ec   : > { %6758 = vst [vmem:[%s11911_s13 + $0x50] sm:$0xff] %v6439_v42  ;;  %v6455_v33 = vcombine.low %v6447_v43, %v6454_v28  ;;  %v6844_v62 = vadd.f32 %v6843_v7, %v6820_v6 }
 0x2ed   : > { %v6045_v17 = vcombine.high %v6043_v44, %v6043_v44  ;;  %v6457_v27 = vcombine.low %v6036_v23, %v6044_v34  ;;  %v6046_v24 = vcombine.high %v8231_v47, %v8231_v47  ;;  %v6053_v13 = vrot.slane %v8231_v47, %v8874_v19 }
 0x2ee   : > { %6759 = vst [vmem:[%s11911_s13 + $0x58] sm:$0x3f] %v6455_v33  ;;  %v6787_v49 = vadd.f32 %v8231_v47, %v6786_v39  ;;  %v6821_v9 = vmul.f32 %v8231_v47, %v8231_v47  ;;  %v5733_v16 = vpop.f32.mrb[26].mxu0  ;;  %v6464_v12 = vrot.slane %v6456_v1, %v8874_v19 }
 0x2ef   : > { %v6471_v61 = vrot.slane %v6457_v27, %v8874_v19  ;;  %v6473_v31 = vcombine.low %v6043_v44, %v6045_v17  ;;  %v6060_v21 = vrot.slane %v6046_v24, %v8874_v19  ;;  %v8183_v14 = vpop.f32.mrb[27].mxu0  ;;  %v6061_v48 = vcombine.high %v6053_v13, %v6053_v13 }
 0x2f0   : > { %v4315_v5 = vpop.f32.mrb[26].mxu1  ;;  %v6487_v45 = vrot.slane %v6053_v13, %v8874_v19  ;;  %v6845_v54 = vadd.f32 %v6844_v62, %v6821_v9 }
 0x2f1   : > { %v6472_v60 = vcombine.low %v6464_v12, %v6471_v61  ;;  %v6480_v0 = vrot.slane %v6473_v31, %v8874_v19  ;;  %v7875_v63 = vpop.f32.mrb[27].mxu1  ;;  %v8232_v4 = vadd.f32 %v5733_v16, %v4315_v5  ;;  %v6062_v46 = vcombine.high %v6060_v21, %v6060_v21 }
 0x2f2   : > { %v6489_v10 = vcombine.low %v6061_v48, %v6060_v21  ;;  %v5738_v8 = vpop.f32.mrb[28].mxu0 }
 0x2f3   : > { %6760 = vst [vmem:[%s11911_s13 + $0x60] sm:$0xff] %v6472_v60  ;;  %v6488_v58 = vcombine.low %v6480_v0, %v6487_v45  ;;  %v6063_v25 = vcombine.high %v8232_v4, %v8232_v4  ;;  %v6070_v52 = vrot.slane %v8232_v4, %v8874_v19  ;;  %v6788_v35 = vadd.f32 %v8232_v4, %v6787_v49  ;;  %v8186_v38 = vpop.f32.mrb[29].mxu0 }
 0x2f4   : > { %v4320_v53 = vpop.f32.mrb[28].mxu1  ;;  %v6822_v29 = vmul.f32 %v8232_v4, %v8232_v4  ;;  %v6497_v20 = vrot.slane %v6489_v10, %v8874_v19 }
 0x2f5   : > { %6761 = vst [vmem:[%s11911_s13 + $0x68] sm:$0x3f] %v6488_v58  ;;  %v6077_v18 = vrot.slane %v6063_v25, %v8874_v19  ;;  %v6078_v11 = vcombine.high %v6070_v52, %v6070_v52  ;;  %v6490_v41 = vcombine.low %v6062_v46, %v6070_v52  ;;  %v7878_v15 = vpop.f32.mrb[29].mxu1  ;;  %v8233_v51 = vadd.f32 %v5738_v8, %v4320_v53 }
 0x2f6   : > { %v6846_v55 = vadd.f32 %v6845_v54, %v6822_v29  ;;  %v5743_v32 = vpop.f32.mrb[30].mxu0 }
 0x2f7   : > { %v6079_v22 = vcombine.high %v6077_v18, %v6077_v18  ;;  %v6504_v37 = vrot.slane %v6490_v41, %v8874_v19  ;;  %v6506_v40 = vcombine.low %v6078_v11, %v6077_v18  ;;  %v6080_v30 = vcombine.high %v8233_v51, %v8233_v51  ;;  %v8189_v57 = vpop.f32.mrb[31].mxu0 }
 0x2f8   : > { %v4325_v59 = vpop.f32.mrb[30].mxu1  ;;  %v6087_v56 = vrot.slane %v8233_v51, %v8874_v19  ;;  %v6789_v3 = vadd.f32 %v8233_v51, %v6788_v35  ;;  %v6823_v7 = vmul.f32 %v8233_v51, %v8233_v51 }
 0x2f9   : > { %v6505_v2 = vcombine.low %v6497_v20, %v6504_v37  ;;  %v6513_v28 = vrot.slane %v6506_v40, %v8874_v19  ;;  %v6520_v50 = vrot.slane %v6079_v22, %v8874_v19  ;;  %v6094_v23 = vrot.slane %v6080_v30, %v8874_v19  ;;  %v7881_v42 = vpop.f32.mrb[31].mxu1 }
 0x2fa   : > { %v6095_v43 = vcombine.high %v6087_v56, %v6087_v56  ;;  %v6847_v39 = vadd.f32 %v6846_v55, %v6823_v7  ;;  %v8234_v6 = vadd.f32 %v5743_v32, %v4325_v59  ;;  %v5748_v26 = vpop.f32.mrb[32].mxu0 }
 0x2fb   : > { %v6521_v1 = vcombine.low %v6513_v28, %v6520_v50  ;;  %6762 = vst [vmem:[%s11911_s13 + $0x70] sm:$0xff] %v6505_v2  ;;  %v6096_v44 = vcombine.high %v6094_v23, %v6094_v23  ;;  %v8192_v34 = vpop.f32.mrb[33].mxu0 }
 0x2fc   : > { %v6522_v47 = vcombine.low %v6087_v56, %v6095_v43  ;;  %v4330_v36 = vpop.f32.mrb[32].mxu1  ;;  %v6097_v33 = vcombine.high %v8234_v6, %v8234_v6  ;;  %v6104_v62 = vrot.slane %v8234_v6, %v8874_v19  ;;  %v6790_v17 = vadd.f32 %v8234_v6, %v6789_v3 }
 0x2fd   : > { %6763 = vst [vmem:[%s11911_s13 + $0x78] sm:$0x3f] %v6521_v1  ;;  %v6523_v27 = vcombine.low %v6094_v23, %v6096_v44  ;;  %v6824_v24 = vmul.f32 %v8234_v6, %v8234_v6  ;;  %v7884_v13 = vpop.f32.mrb[33].mxu1  ;;  %v8235_v49 = vadd.f32 %v5748_v26, %v4330_v36 }
 0x2fe   : > { %v6530_v9 = vrot.slane %v6522_v47, %v8874_v19  ;;  %v6111_v16 = vrot.slane %v6097_v33, %v8874_v19  ;;  %v6112_v12 = vcombine.high %v6104_v62, %v6104_v62  ;;  %v5753_v61 = vpop.f32.mrb[34].mxu0 }
 0x2ff   : > { %v6537_v31 = vrot.slane %v6523_v27, %v8874_v19  ;;  %v6848_v21 = vadd.f32 %v6847_v39, %v6824_v24  ;;  %v6114_v14 = vcombine.high %v8235_v49, %v8235_v49  ;;  %v6121_v5 = vrot.slane %v8235_v49, %v8874_v19  ;;  %v8195_v48 = vpop.f32.mrb[35].mxu0 }
 0x300   : > { %v6539_v45 = vcombine.low %v6104_v62, %v6112_v12  ;;  %v4335_v54 = vpop.f32.mrb[34].mxu1  ;;  %v6113_v60 = vcombine.high %v6111_v16, %v6111_v16  ;;  %v6791_v0 = vadd.f32 %v8235_v49, %v6790_v17  ;;  %v6825_v10 = vmul.f32 %v8235_v49, %v8235_v49 }
 0x301   : > { %v6538_v63 = vcombine.low %v6530_v9, %v6537_v31  ;;  %v6128_v4 = vrot.slane %v6114_v14, %v8874_v19  ;;  %v6129_v46 = vcombine.high %v6121_v5, %v6121_v5  ;;  %v7887_v8 = vpop.f32.mrb[35].mxu1  ;;  %v6553_v25 = vrot.slane %v6111_v16, %v8874_v19 }
 0x302   : > { %v6546_v58 = vrot.slane %v6539_v45, %v8874_v19  ;;  %v6555_v52 = vcombine.low %v6113_v60, %v6121_v5  ;;  %v8236_v35 = vadd.f32 %v5753_v61, %v4335_v54  ;;  %v5758_v38 = vpop.f32.mrb[36].mxu0  ;;  %v6849_v29 = vadd.f32 %v6848_v21, %v6825_v10 }
 0x303   : > { %6764 = vst [vmem:[%s11911_s13 + $0x80] sm:$0xff] %v6538_v63  ;;  %v6556_v53 = vcombine.low %v6129_v46, %v6128_v4  ;;  %v6130_v18 = vcombine.high %v6128_v4, %v6128_v4  ;;  %v8198_v11 = vpop.f32.mrb[37].mxu0 }
 0x304   : > { %v6554_v41 = vcombine.low %v6546_v58, %v6553_v25  ;;  %v6563_v15 = vrot.slane %v6555_v52, %v8874_v19  ;;  %v4340_v51 = vpop.f32.mrb[36].mxu1  ;;  %v6131_v20 = vcombine.high %v8236_v35, %v8236_v35  ;;  %v6138_v55 = vrot.slane %v8236_v35, %v8874_v19 }
 0x305   : > { %v6570_v32 = vrot.slane %v6556_v53, %v8874_v19  ;;  %v6792_v22 = vadd.f32 %v8236_v35, %v6791_v0  ;;  %v6826_v37 = vmul.f32 %v8236_v35, %v8236_v35  ;;  %v7890_v40 = vpop.f32.mrb[37].mxu1  ;;  %v8237_v30 = vadd.f32 %v5758_v38, %v4340_v51 }
 0x306   : > { %6765 = vst [vmem:[%s11911_s13 + $0x88] sm:$0x3f] %v6554_v41  ;;  %v6145_v57 = vrot.slane %v6131_v20, %v8874_v19  ;;  %v6146_v59 = vcombine.high %v6138_v55, %v6138_v55  ;;  %v6572_v56 = vcombine.low %v6130_v18, %v6138_v55  ;;  %v5763_v3 = vpop.f32.mrb[38].mxu0 }
 0x307   : > { %v6571_v7 = vcombine.low %v6563_v15, %v6570_v32  ;;  %v6850_v2 = vadd.f32 %v6849_v29, %v6826_v37  ;;  %v6148_v28 = vcombine.high %v8237_v30, %v8237_v30  ;;  %v6155_v50 = vrot.slane %v8237_v30, %v8874_v19  ;;  %v8201_v23 = vpop.f32.mrb[39].mxu0 }
 0x308   : > { %v6147_v42 = vcombine.high %v6145_v57, %v6145_v57  ;;  %v6579_v43 = vrot.slane %v6572_v56, %v8874_v19  ;;  %v6586_v39 = vrot.slane %v6146_v59, %v8874_v19  ;;  %v4345_v6 = vpop.f32.mrb[38].mxu1  ;;  %v6793_v26 = vadd.f32 %v8237_v30, %v6792_v22 }
 0x309   : > { %6766 = vst [vmem:[%s11911_s13 + $0x90] sm:$0xff] %v6571_v7  ;;  %v6162_v1 = vrot.slane %v6148_v28, %v8874_v19  ;;  %v6163_v44 = vcombine.high %v6155_v50, %v6155_v50  ;;  %v6827_v34 = vmul.f32 %v8237_v30, %v8237_v30  ;;  %v7893_v47 = vpop.f32.mrb[39].mxu1  ;;  %v8238_v36 = vadd.f32 %v5763_v3, %v4345_v6 }
 0x30a   : > { %v6587_v33 = vcombine.low %v6579_v43, %v6586_v39  ;;  %v6588_v62 = vcombine.low %v6145_v57, %v6147_v42  ;;  %v5768_v17 = vpop.f32.mrb[40].mxu0 }
 0x30b   : > { %v6164_v27 = vcombine.high %v6162_v1, %v6162_v1  ;;  %v6589_v24 = vcombine.low %v6155_v50, %v6163_v44  ;;  %v6851_v13 = vadd.f32 %v6850_v2, %v6827_v34  ;;  %v6165_v49 = vcombine.high %v8238_v36, %v8238_v36  ;;  %v8204_v9 = vpop.f32.mrb[41].mxu0 }
 0x30c   : > { %v6596_v16 = vrot.slane %v6588_v62, %v8874_v19  ;;  %6767 = vst [vmem:[%s11911_s13 + $0x98] sm:$0x3f] %v6587_v33  ;;  %v4350_v12 = vpop.f32.mrb[40].mxu1  ;;  %v6172_v61 = vrot.slane %v8238_v36, %v8874_v19  ;;  %v6794_v31 = vadd.f32 %v8238_v36, %v6793_v26  ;;  %v6828_v21 = vmul.f32 %v8238_v36, %v8238_v36 }
 0x30d   : > { %v6603_v14 = vrot.slane %v6589_v24, %v8874_v19  ;;  %v6605_v5 = vcombine.low %v6162_v1, %v6164_v27  ;;  %v6179_v48 = vrot.slane %v6165_v49, %v8874_v19  ;;  %v7896_v45 = vpop.f32.mrb[41].mxu1  ;;  %v8239_v54 = vadd.f32 %v5768_v17, %v4350_v12 }
 0x30e   : > { %v6180_v60 = vcombine.high %v6172_v61, %v6172_v61  ;;  %v6619_v0 = vrot.slane %v6172_v61, %v8874_v19  ;;  %v6852_v63 = vadd.f32 %v6851_v13, %v6828_v21  ;;  %v5773_v4 = vpop.f32.mrb[42].mxu0 }
 0x30f   : > { %v6604_v46 = vcombine.low %v6596_v16, %v6603_v14  ;;  %v6612_v10 = vrot.slane %v6605_v5, %v8874_v19  ;;  %v6181_v8 = vcombine.high %v6179_v48, %v6179_v48  ;;  %v6182_v58 = vcombine.high %v8239_v54, %v8239_v54  ;;  %v8207_v25 = vpop.f32.mrb[43].mxu0 }
 0x310   : > { %v6621_v52 = vcombine.low %v6180_v60, %v6179_v48  ;;  %v4355_v35 = vpop.f32.mrb[42].mxu1  ;;  %v6189_v38 = vrot.slane %v8239_v54, %v8874_v19  ;;  %v6795_v53 = vadd.f32 %v8239_v54, %v6794_v31  ;;  %v6829_v29 = vmul.f32 %v8239_v54, %v8239_v54 }
 0x311   : > { %6768 = vst [vmem:[%s11911_s13 + $0xa0] sm:$0xff] %v6604_v46  ;;  %v6620_v18 = vcombine.low %v6612_v10, %v6619_v0  ;;  %v6196_v11 = vrot.slane %v6182_v58, %v8874_v19  ;;  %v7899_v41 = vpop.f32.mrb[43].mxu1  ;;  %v8240_v15 = vadd.f32 %v5773_v4, %v4355_v35 }
 0x312   : > { %v6197_v51 = vcombine.high %v6189_v38, %v6189_v38  ;;  %v6622_v20 = vcombine.low %v6181_v8, %v6189_v38  ;;  %v6853_v55 = vadd.f32 %v6852_v63, %v6829_v29  ;;  %v5778_v32 = vpop.f32.mrb[44].mxu0  ;;  %v6629_v59 = vrot.slane %v6621_v52, %v8874_v19 }
 0x313   : > { %6769 = vst [vmem:[%s11911_s13 + $0xa8] sm:$0x3f] %v6620_v18  ;;  %v6198_v22 = vcombine.high %v6196_v11, %v6196_v11  ;;  %v6199_v37 = vcombine.high %v8240_v15, %v8240_v15  ;;  %v6206_v40 = vrot.slane %v8240_v15, %v8874_v19  ;;  %v6796_v30 = vadd.f32 %v8240_v15, %v6795_v53  ;;  %v8210_v57 = vpop.f32.mrb[45].mxu0 }
 0x314   : > { %v6636_v56 = vrot.slane %v6622_v20, %v8874_v19  ;;  %v6638_v3 = vcombine.low %v6197_v51, %v6196_v11  ;;  %v4360_v7 = vpop.f32.mrb[44].mxu1  ;;  %v6830_v2 = vmul.f32 %v8240_v15, %v8240_v15 }
 0x315   : > { %v6652_v28 = vrot.slane %v6198_v22, %v8874_v19  ;;  %v6213_v50 = vrot.slane %v6199_v37, %v8874_v19  ;;  %v6214_v23 = vcombine.high %v6206_v40, %v6206_v40  ;;  %v7902_v42 = vpop.f32.mrb[45].mxu1  ;;  %v8241_v43 = vadd.f32 %v5778_v32, %v4360_v7 }
 0x316   : > { %v6637_v39 = vcombine.low %v6629_v59, %v6636_v56  ;;  %v6645_v6 = vrot.slane %v6638_v3, %v8874_v19  ;;  %v6854_v26 = vadd.f32 %v6853_v55, %v6830_v2  ;;  %v5783_v1 = vpop.f32.mrb[46].mxu0 }
 0x317   : > { %v6215_v44 = vcombine.high %v6213_v50, %v6213_v50  ;;  %v6654_v34 = vcombine.low %v6206_v40, %v6214_v23  ;;  %v6216_v47 = vcombine.high %v8241_v43, %v8241_v43  ;;  %v6223_v36 = vrot.slane %v8241_v43, %v8874_v19  ;;  %v8213_v33 = vpop.f32.mrb[47].mxu0 }
 0x318   : > { %v6653_v62 = vcombine.low %v6645_v6, %v6652_v28  ;;  %6770 = vst [vmem:[%s11911_s13 + $0xb0] sm:$0xff] %v6637_v39  ;;  %v4365_v17 = vpop.f32.mrb[46].mxu1  ;;  %v6797_v27 = vadd.f32 %v8241_v43, %v6796_v30  ;;  %v6831_v24 = vmul.f32 %v8241_v43, %v8241_v43 }
 0x319   : > { %v6655_v13 = vcombine.low %v6213_v50, %v6215_v44  ;;  %v6230_v49 = vrot.slane %v6216_v47, %v8874_v19  ;;  %v6231_v9 = vcombine.high %v6223_v36, %v6223_v36  ;;  %v7905_v16 = vpop.f32.mrb[47].mxu1  ;;  %v8242_v61 = vadd.f32 %v5783_v1, %v4365_v17 }
 0x31a   : > { %6771 = vst [vmem:[%s11911_s13 + $0xb8] sm:$0x3f] %v6653_v62  ;;  %v6855_v12 = vadd.f32 %v6854_v26, %v6831_v24  ;;  %v5788_v31 = vpop.f32.mrb[48].mxu0  ;;  %v6662_v21 = vrot.slane %v6654_v34, %v8874_v19 }
 0x31b   : > { %v6669_v14 = vrot.slane %v6655_v13, %v8874_v19  ;;  %v6671_v5 = vcombine.low %v6223_v36, %v6231_v9  ;;  %v6232_v48 = vcombine.high %v6230_v49, %v6230_v49  ;;  %v8216_v45 = vpop.f32.mrb[49].mxu0  ;;  %v6233_v60 = vcombine.high %v8242_v61, %v8242_v61 }
 0x31c   : > { %v4370_v54 = vpop.f32.mrb[48].mxu1  ;;  %v6240_v0 = vrot.slane %v8242_v61, %v8874_v19  ;;  %v6832_v63 = vmul.f32 %v8242_v61, %v8242_v61  ;;  %v6798_v4 = vadd.f32 %v8242_v61, %v6797_v27  ;;  %v6685_v8 = vrot.slane %v6230_v49, %v8874_v19 }
 0x31d   : > { %v6670_v46 = vcombine.low %v6662_v21, %v6669_v14  ;;  %v6678_v10 = vrot.slane %v6671_v5, %v8874_v19  ;;  %v7908_v58 = vpop.f32.mrb[49].mxu1  ;;  %v8243_v25 = vadd.f32 %v5788_v31, %v4370_v54  ;;  %v6247_v52 = vrot.slane %v6233_v60, %v8874_v19 }
 0x31e   : > { %v6248_v35 = vcombine.high %v6240_v0, %v6240_v0  ;;  %v6687_v38 = vcombine.low %v6232_v48, %v6240_v0  ;;  %v6856_v53 = vadd.f32 %v6855_v12, %v6832_v63 }
 0x31f   : > { %6772 = vst [vmem:[%s11911_s13 + $0xc0] sm:$0xff] %v6670_v46  ;;  %v6686_v29 = vcombine.low %v6678_v10, %v6685_v8  ;;  %v6256_v18 = vrot.slane %v8243_v25, %v8874_v19  ;;  %v6800_v11 = vsel %vm6799_vm9, %v8243_v25, 0.0  ;;  %v6833_v41 = vmul.f32 %v8243_v25, %v8243_v25 }
 0x320   : > { %v6688_v15 = vcombine.low %v6248_v35, %v6247_v52  ;;  %v6249_v51 = vcombine.high %v6247_v52, %v6247_v52  ;;  %v6801_v20 = vadd.f32 %v6800_v11, %v6798_v4  ;;  %v6695_v55 = vrot.slane %v6687_v38, %v8874_v19 }
 0x321   : > { %6773 = vst [vmem:[%s11911_s13 + $0xc8] sm:$0x3f] %v6686_v29  ;;  %v6257_v32 = vcombine.high %v6256_v18, %v6256_v18  ;;  %v6857_v22 = vsel %vm6799_vm9, %v6833_v41, 0.0 }
 0x322   : > { %v6702_v37 = vrot.slane %v6688_v15, %v8874_v19  ;;  %v6704_v40 = vcombine.low %v6249_v51, %v6256_v18  ;;  %v6802_v30 = vrot.slane %v6801_v20, 4  ;;  %v6858_v57 = vadd.f32 %v6857_v22, %v6856_v53 }
 0x323   : > { %v6718_v59 = vrot.slane %v6257_v32, %v8874_v19 }
 0x324   : > { %v6703_v56 = vcombine.low %v6695_v55, %v6702_v37  ;;  %v6711_v3 = vrot.slane %v6704_v40, %v8874_v19  ;;  %v6803_v7 = vadd.f32 %v6802_v30, %v6801_v20  ;;  %v6859_v2 = vrot.slane %v6858_v57, 4 }
 0x326   : > { %6774 = vst [vmem:[%s11911_s13 + $0xd0] sm:$0xff] %v6703_v56  ;;  %v6719_v28 = vcombine.low %v6711_v3, %v6718_v59  ;;  %v6804_v50 = vrot.slane %v6803_v7, 2  ;;  %v6860_v23 = vadd.f32 %v6859_v2, %v6858_v57 }
 0x328   : > { %6775 = vst [vmem:[%s11911_s13 + $0xd8] sm:$0x3f] %v6719_v28  ;;  %v6805_v42 = vadd.f32 %v6804_v50, %v6803_v7  ;;  %v6861_v43 = vrot.slane %v6860_v23, 2  ;;  %s8651_s13 = sshll.u32 %s8746_s26, 4  ;;  %s8652_s13 = int_to_ptr.vmem [resolvable:$false] %s8651_s13 }
 0x329   : > { %s8653_s14 = scalar_lea.vmem %s8652_s13, 32  ;;  %p8654_p0 = scmp.lt.s32.totalorder %s12064_s10, %s8652_s13 }
 0x32a   : > { %v6806_v39 = vrot.slane %v6805_v42, 1  ;;  %v6862_v6 = vadd.f32 %v6861_v43, %v6860_v23  ;;  %p8655_p1 = scmp.lt.s32.totalorder %s8653_s14, %s8647_s20 }
 0x32c   : > { %v6807_v19 = vadd.f32 %v6806_v39, %v6805_v42  ;;  %v6863_v26 = vrot.slane %v6862_v6, 1  ;;  %p8656_p2 = por %p8655_p1, %p8654_p0 }
 0x32e   : > { %6808 = vst [vmem:[%s254_s9] sm:$0x1] %v6807_v19  ;;  %v6864_v1 = vadd.f32 %v6863_v26, %v6862_v6  ;;  %p8657_p3 = pnand %p8656_p2, %p8650_p13 }
 0x330   : > { %8660 = shalt.err (!%p8657_p3)
}
 0x331   : > { %s8661_s29 = scalar_lea.hbm %s12062_s15, 16  ;;  %s8665_s25 = scalar_lea.hbm %s12141_s5, 32 }
 0x332   : > { %p8662_p4 = scmp.ne.s32.totalorder %s12062_s15, %s8661_s29  ;;  %p8666_p9 = scmp.lt.u32.totalorder %s12062_s15, %s12141_s5 }
 0x333   : > { %p8667_p10 = scmp.lt.u32.totalorder %s8665_s25, %s8661_s29  ;;  %p8669_p12 = scmp.lt.u32.totalorder %s8661_s29, %s12062_s15 }
 0x334   : > { %p8663_p7 = pnand %p8662_p4, %p8821_p5 }
 0x335   : > { %p8668_p11 = por %p8667_p10, %p8666_p9 }
 0x336   : > { %p8664_p8 = pneg %p8663_p7 }
 0x337   : > { %p8670_p13 = por %p8669_p12, %p8668_p11 }
 0x339   : > { %p8671_p0 = pnand %p8670_p13, %p8664_p8 }
 0x33b   : > { %8674 = shalt.err (!%p8671_p0)
}
 0x33c   : > { %8595 = dma.vmem_to_hbm [thread:$0]  (%p8821_p5), %s12064_s10, 16, %s12062_s15, %s6872_s18   ;;  %6865 = vst [vmem:[%s260_s11] sm:$0x1] %v6864_v1 }
 0x33d   : > { %s6876_s20 = scalar_lea.sflag [#allocation5], %s12049_s28  ;;  %s8675_s13 = scalar_lea.vmem %s12071_s12, 16 }
 0x33e   : > { %p8676_p1 = scmp.ne.s32.totalorder %s12071_s12, %s8675_s13  ;;  %s8747_s14 = smov [#allocation4]  }
 0x33f   : > { %s8679_s29 = sshll.u32 %s8747_s14, 4  ;;  %s8680_s29 = int_to_ptr.vmem [resolvable:$false] %s8679_s29 }
 0x340   : > { %p8677_p2 = pnand %p8676_p1, %p8821_p5  ;;  %s8681_s9 = scalar_lea.vmem %s8680_s29, 32 }
 0x341   : > { %p8682_p4 = scmp.lt.s32.totalorder %s12071_s12, %s8680_s29  ;;  %p8683_p7 = scmp.lt.s32.totalorder %s8681_s9, %s8675_s13 }
 0x342   : > { %p8678_p3 = pneg %p8677_p2 }
 0x343   : > { %p8684_p8 = por %p8683_p7, %p8682_p4 }
 0x345   : > { %p8685_p9 = pnand %p8684_p8, %p8678_p3 }
 0x347   : > { %8688 = shalt.err (!%p8685_p9)
}
 0x348   : > { %s8689_s28 = scalar_lea.hbm %s12069_s17, 16  ;;  %s8693_s15 = scalar_lea.hbm %s12142_s6, 32 }
 0x349   : > { %p8690_p10 = scmp.ne.s32.totalorder %s12069_s17, %s8689_s28  ;;  %p8694_p13 = scmp.lt.u32.totalorder %s12069_s17, %s12142_s6 }
 0x34a   : > { %p8695_p0 = scmp.lt.u32.totalorder %s8693_s15, %s8689_s28  ;;  %p8697_p2 = scmp.lt.u32.totalorder %s8689_s28, %s12069_s17 }
 0x34b   : > { %p8691_p11 = pnand %p8690_p10, %p8821_p5 }
 0x34c   : > { %p8696_p1 = por %p8695_p0, %p8694_p13 }
 0x34d   : > { %p8692_p12 = pneg %p8691_p11 }
 0x34e   : > { %p8698_p3 = por %p8697_p2, %p8696_p1 }
 0x350   : > { %p8699_p4 = pnand %p8698_p3, %p8692_p12 }
 0x352   : > { %8702 = shalt.err (!%p8699_p4)
}
 0x353   : > { %8596 = dma.vmem_to_hbm [thread:$0]  (%p8821_p5), %s12071_s12, 16, %s12069_s17, %s6876_s20  }
 0x354 PF: > { %p8606_p7 = scmp.ge.s32.totalorder %s8741_s24, 2  ;;  %s6924_s25 = sand.u32 1, %s8729_s21  }
 0x355   : > { %s6925_s16 = scalar_lea.sflag [#allocation3], %s6924_s25 }
 0x356   : > { %p8600_p8 = pnand %p8606_p7, %p8825_p6 }
 0x358   : > { %8720 = dma.done.wait (!%p8600_p8), %s6925_s16, 16  }
 0x359   : > { %8722 = vsyncadd (!%p8600_p8), %s6925_s16, 4294967280  ;;  %s6933_s26 = scalar_lea.sflag [#allocation5], %s6924_s25 }
 0x35a   : > { %8724 = dma.done.wait (!%p8600_p8), %s6933_s26, 16  }
 0x35b   : > { %8726 = vsyncadd (!%p8600_p8), %s6933_s26, 4294967280  ;;  %p20_p5 = scmp.ge.s32.totalorder %s8808_s27, 4   ;;  %s12939_s21 = smov %s8733_s22 }
 0x35c   : > { %s12940_s22 = smov %s8737_s23  ;;  %s12941_s23 = smov %s8819_s30 }
 0x35d   : > { %s12942_s24 = smov %s8808_s27  ;;  %22 = sbr.rel (!%p20_p5) target bundleno = 5 (0x5), region = 108 }
 0x364   :  { %6937 = vsyncpa [#allocation3], 1 }
 0x365   :  { %6939 = vsyncpa [#allocation3 + $0x1], 1 }
 0x366   :  { %6940 = vsyncpa [#allocation5], 1 }
 0x367   :  { %6942 = vsyncpa [#allocation5 + $0x1], 1 }

</bundles_post_ra>
